<compile_context>
chip_gen: v6e
topology: v6e:2x2x1
jax: 0.10.0
libtpu: 0.0.40
codegen_flags: <defaults>
</compile_context>

<pallas_src>
import jax
import jax.numpy as jnp
from jax.experimental import pallas as pl
from jax.experimental.pallas import tpu as pltpu

BN_EPS = 1e-5  # nn.BatchNorm2d default eps
# TODO(synk): BatchNorm2d is implemented in inference mode (running stats); PyTorch
# training-mode batch statistics are not computed here.


def _maxpool2x2(y_flat, H, W):
    """2x2 stride-2 max-pool of a row-major (H*W, C) activation -> (H//2, W//2, C)."""
    C = y_flat.shape[-1]
    # pool along w: adjacent flat rows (2q, 2q+1) share the same h (W is even)
    y = jnp.max(y_flat.reshape(H * W // 2, 2, C), axis=1)      # (H*W//2, C)
    # pool along h: rows h=2r and h=2r+1 are W//2 apart in the new flat index
    y = jnp.max(y.reshape(H // 2, 2, W // 2, C), axis=1)       # (H//2, W//2, C)
    return y


def _make_protonet_kernel(H0, W0, C):
    """Fused 4x (conv3x3 + BN + ReLU + maxpool2) for one sample."""
    dims = [(H0 >> i, W0 >> i) for i in range(4)]   # per-layer input (H, W)

    def kernel(x0_ref, w0_ref, w1_ref, w2_ref, w3_ref, sc_ref, sh_ref,
               out_ref, pad1, pad2, pad3):
        # x0_ref : (1, H0*W0, 9) bf16   im2col'd layer-0 input (Cin=1 -> taps in K)
        # w0_ref : (9, C)        bf16   layer-0 weights, row = tap dy*3+dx
        # w{1,2,3}_ref : (9, C, C) bf16 per-tap (Cin, Cout) weight matrices
        # sc_ref / sh_ref : (4, C) f32  folded conv-bias+BatchNorm scale / shift
        # out_ref: (1, H0//16, W0//16, C)
        # pad{1,2,3}: f32 VMEM scratch holding zero-padded layer-{1,2,3} inputs
        pads = (pad1, pad2, pad3)
        w_refs = (w1_ref, w2_ref, w3_ref)

        # ---- layer 0: one matmul, M = H0*W0, K = 9 ----
        acc = jnp.dot(x0_ref[0], w0_ref[...],
                      preferred_element_type=jnp.float32)            # (H0*W0, C)
        y = jnp.maximum(acc * sc_ref[0:1, :] + sh_ref[0:1, :], 0.0)
        a = _maxpool2x2(y, H0, W0)                                    # (H1, W1, C)

        # ---- layers 1..3: 9 accumulated shifted matmuls, M = H*W ----
        for li in range(1, 4):
            H, W = dims[li]
            pad, w_ref = pads[li - 1], w_refs[li - 1]
            pad[...] = jnp.zeros(pad.shape, dtype=pad.dtype)          # zero halo
            pad[1:H + 1, 1:W + 1, :] = a                              # interior
            acc = None
            for dy in range(3):
                for dx in range(3):
                    win = pad[dy:dy + H, dx:dx + W, :]                # (H, W, C)
                    win = win.reshape(H * W, C).astype(jnp.bfloat16)
                    part = jnp.dot(win, w_ref[dy * 3 + dx],
                                   preferred_element_type=jnp.float32)
                    acc = part if acc is None else acc + part         # (H*W, C)
            y = jnp.maximum(acc * sc_ref[li:li + 1, :] + sh_ref[li:li + 1, :], 0.0)
            a = _maxpool2x2(y, H, W)                                  # (H/2, W/2, C)

        out_ref[0] = a.astype(out_ref.dtype)

    return kernel


def protonet_encoder_pallas(x0, w0, w1, w2, w3, scales, shifts, *, H0, W0):
    """Runs the fused 4-block encoder.  Returns NHWC (N, H0//16, W0//16, C)."""
    N = x0.shape[0]
    C = w0.shape[-1]
    Hf, Wf = H0 // 16, W0 // 16
    kernel = _make_protonet_kernel(H0, W0, C)
    # NB: weight / BN-param blocks have constant index_maps, so Pallas keeps the
    # same VMEM block across grid steps (no per-step re-DMA of the weights).
    return pl.pallas_call(
        kernel,
        out_shape=jax.ShapeDtypeStruct((N, Hf, Wf, C), jnp.float32),
        grid_spec=pltpu.PrefetchScalarGridSpec(
            num_scalar_prefetch=0,
            grid=(N,),
            in_specs=[
                pl.BlockSpec((1, H0 * W0, 9), lambda n: (n, 0, 0)),
                pl.BlockSpec((9, C), lambda n: (0, 0)),
                pl.BlockSpec((9, C, C), lambda n: (0, 0, 0)),
                pl.BlockSpec((9, C, C), lambda n: (0, 0, 0)),
                pl.BlockSpec((9, C, C), lambda n: (0, 0, 0)),
                pl.BlockSpec((4, C), lambda n: (0, 0)),
                pl.BlockSpec((4, C), lambda n: (0, 0)),
            ],
            out_specs=pl.BlockSpec((1, Hf, Wf, C), lambda n: (n, 0, 0, 0)),
            scratch_shapes=[
                pltpu.VMEM((H0 // 2 + 2, W0 // 2 + 2, C), jnp.float32),
                pltpu.VMEM((H0 // 4 + 2, W0 // 4 + 2, C), jnp.float32),
                pltpu.VMEM((H0 // 8 + 2, W0 // 8 + 2, C), jnp.float32),
            ],
        ),
        compiler_params=pltpu.CompilerParams(
            dimension_semantics=("parallel",)),   # v7x: shard batch over 2 TCs
    )(x0, w0, w1, w2, w3, scales, shifts)


def init_params(key):
    """Deterministic synthetic parameters matching Protonet.encoder shapes."""
    params = []
    cins, cout = [1, 128, 128, 128], 128
    for cin in cins:
        key, k1, k2 = jax.random.split(key, 3)
        fan_in = cin * 9
        params.append(dict(
            w_oihw=jax.random.normal(k1, (cout, cin, 3, 3), jnp.float32)
                   * jnp.sqrt(2.0 / fan_in),
            b=jax.random.normal(k2, (cout,), jnp.float32) * 0.01,
            gamma=jnp.ones((cout,), jnp.float32),   # nn.BatchNorm2d defaults
            beta=jnp.zeros((cout,), jnp.float32),
            mean=jnp.zeros((cout,), jnp.float32),
            var=jnp.ones((cout,), jnp.float32),
        ))
    return params


def protonet_forward(x, params):
    """x: (num_samples, seq_len, mel_bins) — same signature as Protonet.forward."""
    N, S, M = x.shape
    assert S % 16 == 0 and M % 16 == 0, "spatial dims must survive 4 MaxPool2d(2)"
    H0, W0 = S, M
    C = params[0]["w_oihw"].shape[0]

    # layer-0 im2col (Cin=1): (N, H0*W0, 9), tap order (dy, dx) — layout plumbing only
    xp = jnp.pad(x.astype(jnp.float32), ((0, 0), (1, 1), (1, 1)))
    taps = [xp[:, dy:dy + H0, dx:dx + W0] for dy in range(3) for dx in range(3)]
    x0 = jnp.stack(taps, axis=-1).reshape(N, H0 * W0, 9).astype(jnp.bfloat16)

    # conv weights OIHW -> per-tap (Cin, Cout) matrices, bf16 MXU operands
    w_hwio = [jnp.transpose(p["w_oihw"], (2, 3, 1, 0)) for p in params]  # (3,3,I,O)
    w0 = w_hwio[0].reshape(9, C).astype(jnp.bfloat16)                    # Cin = 1
    w1, w2, w3 = [w.reshape(9, C, C).astype(jnp.bfloat16) for w in w_hwio[1:]]

    # fold conv bias + BatchNorm (inference) into a single scale/shift per layer
    scales, shifts = [], []
    for p in params:
        s = p["gamma"] * jax.lax.rsqrt(p["var"] + BN_EPS)
        scales.append(s)
        shifts.append((p["b"] - p["mean"]) * s + p["beta"])
    scales = jnp.stack(scales).astype(jnp.float32)                       # (4, C)
    shifts = jnp.stack(shifts).astype(jnp.float32)                       # (4, C)

    out = protonet_encoder_pallas(x0, w0, w1, w2, w3, scales, shifts, H0=H0, W0=W0)
    # flatten exactly like the PyTorch NCHW out.view(N, -1)
    return jnp.transpose(out, (0, 3, 1, 2)).reshape(N, -1)


def protonet_reference(x, params, eps=BN_EPS):
    """Pure-JAX f32 reference of the same forward pass (for validation)."""
    N = x.shape[0]
    h = x[:, :, :, None].astype(jnp.float32)
    for p in params:
        w_hwio = jnp.transpose(p["w_oihw"], (2, 3, 1, 0))
        y = jax.lax.conv_general_dilated(
            h, w_hwio, window_strides=(1, 1), padding=((1, 1), (1, 1)),
            dimension_numbers=("NHWC", "HWIO", "NHWC"))
        y = y + p["b"]
        y = (y - p["mean"]) * (p["gamma"] / jnp.sqrt(p["var"] + eps)) + p["beta"]
        y = jnp.maximum(y, 0.0)
        h = jax.lax.reduce_window(y, -jnp.inf, jax.lax.max,
                                  (1, 2, 2, 1), (1, 2, 2, 1), "VALID")
    return jnp.transpose(h, (0, 3, 1, 2)).reshape(N, -1)


if __name__ == "__main__":
    key = jax.random.PRNGKey(0)
    kx, kp = jax.random.split(key)
    num_samples, seq_len, mel_bins = 2, 16, 16
    x = jax.random.normal(kx, (num_samples, seq_len, mel_bins), jnp.float32)
    params = init_params(kp)

    out = jax.block_until_ready(protonet_forward(x, params))
    assert out.shape == (num_samples, 128), out.shape
    assert bool(jnp.all(jnp.isfinite(out)))

    ref = jax.block_until_ready(protonet_reference(x, params))
    abs_err = float(jnp.max(jnp.abs(out - ref)))
    rel_err = abs_err / max(float(jnp.max(jnp.abs(ref))), 1e-6)
    # bf16 MXU operands with f32 accumulation -> a few-percent tolerance
    assert rel_err < 5e-2, f"rel err vs reference: {rel_err} (abs {abs_err})"
    print("KERNEL_OK")
</pallas_src>

<mosaic_0001>
module attributes {stable_mosaic.version = 11 : i64} {
  func.func @kernel(%arg0: i32, %arg1: memref<1x256x9xbf16, #tpu.memory_space<vmem>>, %arg2: memref<9x128xbf16, #tpu.memory_space<vmem>>, %arg3: memref<9x128x128xbf16, #tpu.memory_space<vmem>>, %arg4: memref<9x128x128xbf16, #tpu.memory_space<vmem>>, %arg5: memref<9x128x128xbf16, #tpu.memory_space<vmem>>, %arg6: memref<4x128xf32, #tpu.memory_space<vmem>>, %arg7: memref<4x128xf32, #tpu.memory_space<vmem>>, %arg8: memref<1x1x1x128xf32, #tpu.memory_space<vmem>>, %arg9: memref<10x10x128xf32, #tpu.memory_space<vmem>>, %arg10: memref<6x6x128xf32, #tpu.memory_space<vmem>>, %arg11: memref<4x4x128xf32, #tpu.memory_space<vmem>>) attributes {dimension_semantics = [#tpu.dimension_semantics<parallel>], iteration_bounds = array<i64: 2>, scalar_prefetch = 0 : i64, scratch_operands = 3 : i64, tpu.core_type = #tpu.core_type<tc>, window_params = [{transform_indices = @transform_0, window_bounds = array<i64: 1, 256, 9>}, {pipeline_mode = #tpu.pipeline_mode<synchronous>, transform_indices = @transform_1, window_bounds = array<i64: 9, 128>}, {pipeline_mode = #tpu.pipeline_mode<synchronous>, transform_indices = @transform_2, window_bounds = array<i64: 9, 128, 128>}, {pipeline_mode = #tpu.pipeline_mode<synchronous>, transform_indices = @transform_3, window_bounds = array<i64: 9, 128, 128>}, {pipeline_mode = #tpu.pipeline_mode<synchronous>, transform_indices = @transform_4, window_bounds = array<i64: 9, 128, 128>}, {pipeline_mode = #tpu.pipeline_mode<synchronous>, transform_indices = @transform_5, window_bounds = array<i64: 4, 128>}, {pipeline_mode = #tpu.pipeline_mode<synchronous>, transform_indices = @transform_6, window_bounds = array<i64: 4, 128>}, {transform_indices = @transform_7, window_bounds = array<i64: 1, 1, 1, 128>}]} {
    %c0 = arith.constant 0 : index
    %c0_0 = arith.constant 0 : index
    %c0_1 = arith.constant 0 : index
    %0 = vector.load %arg1[%c0, %c0_0, %c0_1] : memref<1x256x9xbf16, #tpu.memory_space<vmem>>, vector<1x256x9xbf16>
    %1 = vector.shape_cast %0 : vector<1x256x9xbf16> to vector<256x9xbf16>
    %c0_2 = arith.constant 0 : index
    %c0_3 = arith.constant 0 : index
    %2 = vector.load %arg2[%c0_2, %c0_3] : memref<9x128xbf16, #tpu.memory_space<vmem>>, vector<9x128xbf16>
    %cst = arith.constant dense<0.000000e+00> : vector<256x128xf32>
    %3 = tpu.matmul %1, %2, %cst {dimension_numbers = #tpu.dot_dimension_numbers<[1], [0], [0], [1], [0, 0, 1, 1], [], []>} : vector<256x9xbf16>, vector<9x128xbf16>, vector<256x128xf32> -> vector<256x128xf32>
    %c0_4 = arith.constant 0 : index
    %c0_5 = arith.constant 0 : index
    %4 = vector.load %arg6[%c0_4, %c0_5] : memref<4x128xf32, #tpu.memory_space<vmem>>, vector<1x128xf32>
    %5 = vector.broadcast %4 : vector<1x128xf32> to vector<256x128xf32>
    %6 = arith.mulf %3, %5 : vector<256x128xf32>
    %c0_6 = arith.constant 0 : index
    %c0_7 = arith.constant 0 : index
    %7 = vector.load %arg7[%c0_6, %c0_7] : memref<4x128xf32, #tpu.memory_space<vmem>>, vector<1x128xf32>
    %8 = vector.broadcast %7 : vector<1x128xf32> to vector<256x128xf32>
    %9 = arith.addf %6, %8 : vector<256x128xf32>
    %cst_8 = arith.constant 0.000000e+00 : f32
    %10 = vector.broadcast %cst_8 : f32 to vector<256x128xf32>
    %11 = arith.maximumf %9, %10 : vector<256x128xf32>
    %12 = vector.shape_cast %11 : vector<256x128xf32> to vector<128x2x128xf32>
    %cst_9 = arith.constant dense<0xFF800000> : vector<128x128xf32>
    %13 = vector.multi_reduction <maximumf>, %12, %cst_9 [1] : vector<128x2x128xf32> to vector<128x128xf32>
    %14 = vector.shape_cast %13 : vector<128x128xf32> to vector<8x2x8x128xf32>
    %cst_10 = arith.constant dense<0xFF800000> : vector<8x8x128xf32>
    %15 = vector.multi_reduction <maximumf>, %14, %cst_10 [1] : vector<8x2x8x128xf32> to vector<8x8x128xf32>
    %cst_11 = arith.constant 0.000000e+00 : f32
    %16 = vector.broadcast %cst_11 : f32 to vector<10x10x128xf32>
    %c0_12 = arith.constant 0 : index
    %c0_13 = arith.constant 0 : index
    %c0_14 = arith.constant 0 : index
    %17 = vector.load %arg9[%c0_12, %c0_13, %c0_14] : memref<10x10x128xf32, #tpu.memory_space<vmem>>, vector<10x10x128xf32>
    tpu.vector_store %arg9[%c0_12, %c0_13, %c0_14], %16 {strides = array<i32>} : memref<10x10x128xf32, #tpu.memory_space<vmem>>, vector<10x10x128xf32>,
    %c1 = arith.constant 1 : index
    %c1_15 = arith.constant 1 : index
    %c0_16 = arith.constant 0 : index
    %18 = vector.load %arg9[%c1, %c1_15, %c0_16] : memref<10x10x128xf32, #tpu.memory_space<vmem>>, vector<8x8x128xf32>
    tpu.vector_store %arg9[%c1, %c1_15, %c0_16], %15 {strides = array<i32>} : memref<10x10x128xf32, #tpu.memory_space<vmem>>, vector<8x8x128xf32>,
    %c0_17 = arith.constant 0 : index
    %c0_18 = arith.constant 0 : index
    %c0_19 = arith.constant 0 : index
    %19 = vector.load %arg9[%c0_17, %c0_18, %c0_19] : memref<10x10x128xf32, #tpu.memory_space<vmem>>, vector<8x8x128xf32>
    %20 = vector.shape_cast %19 : vector<8x8x128xf32> to vector<64x128xf32>
    %21 = arith.truncf %20 : vector<64x128xf32> to vector<64x128xbf16>
    %c0_20 = arith.constant 0 : index
    %c0_21 = arith.constant 0 : index
    %c0_22 = arith.constant 0 : index
    %22 = vector.load %arg3[%c0_20, %c0_21, %c0_22] : memref<9x128x128xbf16, #tpu.memory_space<vmem>>, vector<1x128x128xbf16>
    %23 = vector.shape_cast %22 : vector<1x128x128xbf16> to vector<128x128xbf16>
    %cst_23 = arith.constant dense<0.000000e+00> : vector<64x128xf32>
    %24 = tpu.matmul %21, %23, %cst_23 {dimension_numbers = #tpu.dot_dimension_numbers<[1], [0], [0], [1], [0, 0, 1, 1], [], []>} : vector<64x128xbf16>, vector<128x128xbf16>, vector<64x128xf32> -> vector<64x128xf32>
    %c0_24 = arith.constant 0 : index
    %c1_25 = arith.constant 1 : index
    %c0_26 = arith.constant 0 : index
    %25 = vector.load %arg9[%c0_24, %c1_25, %c0_26] : memref<10x10x128xf32, #tpu.memory_space<vmem>>, vector<8x8x128xf32>
    %26 = vector.shape_cast %25 : vector<8x8x128xf32> to vector<64x128xf32>
    %27 = arith.truncf %26 : vector<64x128xf32> to vector<64x128xbf16>
    %c1_27 = arith.constant 1 : index
    %c0_28 = arith.constant 0 : index
    %c0_29 = arith.constant 0 : index
    %28 = vector.load %arg3[%c1_27, %c0_28, %c0_29] : memref<9x128x128xbf16, #tpu.memory_space<vmem>>, vector<1x128x128xbf16>
    %29 = vector.shape_cast %28 : vector<1x128x128xbf16> to vector<128x128xbf16>
    %cst_30 = arith.constant dense<0.000000e+00> : vector<64x128xf32>
    %30 = tpu.matmul %27, %29, %cst_30 {dimension_numbers = #tpu.dot_dimension_numbers<[1], [0], [0], [1], [0, 0, 1, 1], [], []>} : vector<64x128xbf16>, vector<128x128xbf16>, vector<64x128xf32> -> vector<64x128xf32>
    %31 = arith.addf %24, %30 : vector<64x128xf32>
    %c0_31 = arith.constant 0 : index
    %c2 = arith.constant 2 : index
    %c0_32 = arith.constant 0 : index
    %32 = vector.load %arg9[%c0_31, %c2, %c0_32] : memref<10x10x128xf32, #tpu.memory_space<vmem>>, vector<8x8x128xf32>
    %33 = vector.shape_cast %32 : vector<8x8x128xf32> to vector<64x128xf32>
    %34 = arith.truncf %33 : vector<64x128xf32> to vector<64x128xbf16>
    %c2_33 = arith.constant 2 : index
    %c0_34 = arith.constant 0 : index
    %c0_35 = arith.constant 0 : index
    %35 = vector.load %arg3[%c2_33, %c0_34, %c0_35] : memref<9x128x128xbf16, #tpu.memory_space<vmem>>, vector<1x128x128xbf16>
    %36 = vector.shape_cast %35 : vector<1x128x128xbf16> to vector<128x128xbf16>
    %cst_36 = arith.constant dense<0.000000e+00> : vector<64x128xf32>
    %37 = tpu.matmul %34, %36, %cst_36 {dimension_numbers = #tpu.dot_dimension_numbers<[1], [0], [0], [1], [0, 0, 1, 1], [], []>} : vector<64x128xbf16>, vector<128x128xbf16>, vector<64x128xf32> -> vector<64x128xf32>
    %38 = arith.addf %31, %37 : vector<64x128xf32>
    %c1_37 = arith.constant 1 : index
    %c0_38 = arith.constant 0 : index
    %c0_39 = arith.constant 0 : index
    %39 = vector.load %arg9[%c1_37, %c0_38, %c0_39] : memref<10x10x128xf32, #tpu.memory_space<vmem>>, vector<8x8x128xf32>
    %40 = vector.shape_cast %39 : vector<8x8x128xf32> to vector<64x128xf32>
    %41 = arith.truncf %40 : vector<64x128xf32> to vector<64x128xbf16>
    %c3 = arith.constant 3 : index
    %c0_40 = arith.constant 0 : index
    %c0_41 = arith.constant 0 : index
    %42 = vector.load %arg3[%c3, %c0_40, %c0_41] : memref<9x128x128xbf16, #tpu.memory_space<vmem>>, vector<1x128x128xbf16>
    %43 = vector.shape_cast %42 : vector<1x128x128xbf16> to vector<128x128xbf16>
    %cst_42 = arith.constant dense<0.000000e+00> : vector<64x128xf32>
    %44 = tpu.matmul %41, %43, %cst_42 {dimension_numbers = #tpu.dot_dimension_numbers<[1], [0], [0], [1], [0, 0, 1, 1], [], []>} : vector<64x128xbf16>, vector<128x128xbf16>, vector<64x128xf32> -> vector<64x128xf32>
    %45 = arith.addf %38, %44 : vector<64x128xf32>
    %c1_43 = arith.constant 1 : index
    %c1_44 = arith.constant 1 : index
    %c0_45 = arith.constant 0 : index
    %46 = vector.load %arg9[%c1_43, %c1_44, %c0_45] : memref<10x10x128xf32, #tpu.memory_space<vmem>>, vector<8x8x128xf32>
    %47 = vector.shape_cast %46 : vector<8x8x128xf32> to vector<64x128xf32>
    %48 = arith.truncf %47 : vector<64x128xf32> to vector<64x128xbf16>
    %c4 = arith.constant 4 : index
    %c0_46 = arith.constant 0 : index
    %c0_47 = arith.constant 0 : index
    %49 = vector.load %arg3[%c4, %c0_46, %c0_47] : memref<9x128x128xbf16, #tpu.memory_space<vmem>>, vector<1x128x128xbf16>
    %50 = vector.shape_cast %49 : vector<1x128x128xbf16> to vector<128x128xbf16>
    %cst_48 = arith.constant dense<0.000000e+00> : vector<64x128xf32>
    %51 = tpu.matmul %48, %50, %cst_48 {dimension_numbers = #tpu.dot_dimension_numbers<[1], [0], [0], [1], [0, 0, 1, 1], [], []>} : vector<64x128xbf16>, vector<128x128xbf16>, vector<64x128xf32> -> vector<64x128xf32>
    %52 = arith.addf %45, %51 : vector<64x128xf32>
    %c1_49 = arith.constant 1 : index
    %c2_50 = arith.constant 2 : index
    %c0_51 = arith.constant 0 : index
    %53 = vector.load %arg9[%c1_49, %c2_50, %c0_51] : memref<10x10x128xf32, #tpu.memory_space<vmem>>, vector<8x8x128xf32>
    %54 = vector.shape_cast %53 : vector<8x8x128xf32> to vector<64x128xf32>
    %55 = arith.truncf %54 : vector<64x128xf32> to vector<64x128xbf16>
    %c5 = arith.constant 5 : index
    %c0_52 = arith.constant 0 : index
    %c0_53 = arith.constant 0 : index
    %56 = vector.load %arg3[%c5, %c0_52, %c0_53] : memref<9x128x128xbf16, #tpu.memory_space<vmem>>, vector<1x128x128xbf16>
    %57 = vector.shape_cast %56 : vector<1x128x128xbf16> to vector<128x128xbf16>
    %cst_54 = arith.constant dense<0.000000e+00> : vector<64x128xf32>
    %58 = tpu.matmul %55, %57, %cst_54 {dimension_numbers = #tpu.dot_dimension_numbers<[1], [0], [0], [1], [0, 0, 1, 1], [], []>} : vector<64x128xbf16>, vector<128x128xbf16>, vector<64x128xf32> -> vector<64x128xf32>
    %59 = arith.addf %52, %58 : vector<64x128xf32>
    %c2_55 = arith.constant 2 : index
    %c0_56 = arith.constant 0 : index
    %c0_57 = arith.constant 0 : index
    %60 = vector.load %arg9[%c2_55, %c0_56, %c0_57] : memref<10x10x128xf32, #tpu.memory_space<vmem>>, vector<8x8x128xf32>
    %61 = vector.shape_cast %60 : vector<8x8x128xf32> to vector<64x128xf32>
    %62 = arith.truncf %61 : vector<64x128xf32> to vector<64x128xbf16>
    %c6 = arith.constant 6 : index
    %c0_58 = arith.constant 0 : index
    %c0_59 = arith.constant 0 : index
    %63 = vector.load %arg3[%c6, %c0_58, %c0_59] : memref<9x128x128xbf16, #tpu.memory_space<vmem>>, vector<1x128x128xbf16>
    %64 = vector.shape_cast %63 : vector<1x128x128xbf16> to vector<128x128xbf16>
    %cst_60 = arith.constant dense<0.000000e+00> : vector<64x128xf32>
    %65 = tpu.matmul %62, %64, %cst_60 {dimension_numbers = #tpu.dot_dimension_numbers<[1], [0], [0], [1], [0, 0, 1, 1], [], []>} : vector<64x128xbf16>, vector<128x128xbf16>, vector<64x128xf32> -> vector<64x128xf32>
    %66 = arith.addf %59, %65 : vector<64x128xf32>
    %c2_61 = arith.constant 2 : index
    %c1_62 = arith.constant 1 : index
    %c0_63 = arith.constant 0 : index
    %67 = vector.load %arg9[%c2_61, %c1_62, %c0_63] : memref<10x10x128xf32, #tpu.memory_space<vmem>>, vector<8x8x128xf32>
    %68 = vector.shape_cast %67 : vector<8x8x128xf32> to vector<64x128xf32>
    %69 = arith.truncf %68 : vector<64x128xf32> to vector<64x128xbf16>
    %c7 = arith.constant 7 : index
    %c0_64 = arith.constant 0 : index
    %c0_65 = arith.constant 0 : index
    %70 = vector.load %arg3[%c7, %c0_64, %c0_65] : memref<9x128x128xbf16, #tpu.memory_space<vmem>>, vector<1x128x128xbf16>
    %71 = vector.shape_cast %70 : vector<1x128x128xbf16> to vector<128x128xbf16>
    %cst_66 = arith.constant dense<0.000000e+00> : vector<64x128xf32>
    %72 = tpu.matmul %69, %71, %cst_66 {dimension_numbers = #tpu.dot_dimension_numbers<[1], [0], [0], [1], [0, 0, 1, 1], [], []>} : vector<64x128xbf16>, vector<128x128xbf16>, vector<64x128xf32> -> vector<64x128xf32>
    %73 = arith.addf %66, %72 : vector<64x128xf32>
    %c2_67 = arith.constant 2 : index
    %c2_68 = arith.constant 2 : index
    %c0_69 = arith.constant 0 : index
    %74 = vector.load %arg9[%c2_67, %c2_68, %c0_69] : memref<10x10x128xf32, #tpu.memory_space<vmem>>, vector<8x8x128xf32>
    %75 = vector.shape_cast %74 : vector<8x8x128xf32> to vector<64x128xf32>
    %76 = arith.truncf %75 : vector<64x128xf32> to vector<64x128xbf16>
    %c8 = arith.constant 8 : index
    %c0_70 = arith.constant 0 : index
    %c0_71 = arith.constant 0 : index
    %77 = vector.load %arg3[%c8, %c0_70, %c0_71] : memref<9x128x128xbf16, #tpu.memory_space<vmem>>, vector<1x128x128xbf16>
    %78 = vector.shape_cast %77 : vector<1x128x128xbf16> to vector<128x128xbf16>
    %cst_72 = arith.constant dense<0.000000e+00> : vector<64x128xf32>
    %79 = tpu.matmul %76, %78, %cst_72 {dimension_numbers = #tpu.dot_dimension_numbers<[1], [0], [0], [1], [0, 0, 1, 1], [], []>} : vector<64x128xbf16>, vector<128x128xbf16>, vector<64x128xf32> -> vector<64x128xf32>
    %80 = arith.addf %73, %79 : vector<64x128xf32>
    %c1_73 = arith.constant 1 : index
    %c0_74 = arith.constant 0 : index
    %81 = vector.load %arg6[%c1_73, %c0_74] : memref<4x128xf32, #tpu.memory_space<vmem>>, vector<1x128xf32>
    %82 = vector.broadcast %81 : vector<1x128xf32> to vector<64x128xf32>
    %83 = arith.mulf %80, %82 : vector<64x128xf32>
    %c1_75 = arith.constant 1 : index
    %c0_76 = arith.constant 0 : index
    %84 = vector.load %arg7[%c1_75, %c0_76] : memref<4x128xf32, #tpu.memory_space<vmem>>, vector<1x128xf32>
    %85 = vector.broadcast %84 : vector<1x128xf32> to vector<64x128xf32>
    %86 = arith.addf %83, %85 : vector<64x128xf32>
    %cst_77 = arith.constant 0.000000e+00 : f32
    %87 = vector.broadcast %cst_77 : f32 to vector<64x128xf32>
    %88 = arith.maximumf %86, %87 : vector<64x128xf32>
    %89 = vector.shape_cast %88 : vector<64x128xf32> to vector<32x2x128xf32>
    %cst_78 = arith.constant dense<0xFF800000> : vector<32x128xf32>
    %90 = vector.multi_reduction <maximumf>, %89, %cst_78 [1] : vector<32x2x128xf32> to vector<32x128xf32>
    %91 = vector.shape_cast %90 : vector<32x128xf32> to vector<4x2x4x128xf32>
    %cst_79 = arith.constant dense<0xFF800000> : vector<4x4x128xf32>
    %92 = vector.multi_reduction <maximumf>, %91, %cst_79 [1] : vector<4x2x4x128xf32> to vector<4x4x128xf32>
    %cst_80 = arith.constant 0.000000e+00 : f32
    %93 = vector.broadcast %cst_80 : f32 to vector<6x6x128xf32>
    %c0_81 = arith.constant 0 : index
    %c0_82 = arith.constant 0 : index
    %c0_83 = arith.constant 0 : index
    %94 = vector.load %arg10[%c0_81, %c0_82, %c0_83] : memref<6x6x128xf32, #tpu.memory_space<vmem>>, vector<6x6x128xf32>
    tpu.vector_store %arg10[%c0_81, %c0_82, %c0_83], %93 {strides = array<i32>} : memref<6x6x128xf32, #tpu.memory_space<vmem>>, vector<6x6x128xf32>,
    %c1_84 = arith.constant 1 : index
    %c1_85 = arith.constant 1 : index
    %c0_86 = arith.constant 0 : index
    %95 = vector.load %arg10[%c1_84, %c1_85, %c0_86] : memref<6x6x128xf32, #tpu.memory_space<vmem>>, vector<4x4x128xf32>
    tpu.vector_store %arg10[%c1_84, %c1_85, %c0_86], %92 {strides = array<i32>} : memref<6x6x128xf32, #tpu.memory_space<vmem>>, vector<4x4x128xf32>,
    %c0_87 = arith.constant 0 : index
    %c0_88 = arith.constant 0 : index
    %c0_89 = arith.constant 0 : index
    %96 = vector.load %arg10[%c0_87, %c0_88, %c0_89] : memref<6x6x128xf32, #tpu.memory_space<vmem>>, vector<4x4x128xf32>
    %97 = vector.shape_cast %96 : vector<4x4x128xf32> to vector<16x128xf32>
    %98 = arith.truncf %97 : vector<16x128xf32> to vector<16x128xbf16>
    %c0_90 = arith.constant 0 : index
    %c0_91 = arith.constant 0 : index
    %c0_92 = arith.constant 0 : index
    %99 = vector.load %arg4[%c0_90, %c0_91, %c0_92] : memref<9x128x128xbf16, #tpu.memory_space<vmem>>, vector<1x128x128xbf16>
    %100 = vector.shape_cast %99 : vector<1x128x128xbf16> to vector<128x128xbf16>
    %cst_93 = arith.constant dense<0.000000e+00> : vector<16x128xf32>
    %101 = tpu.matmul %98, %100, %cst_93 {dimension_numbers = #tpu.dot_dimension_numbers<[1], [0], [0], [1], [0, 0, 1, 1], [], []>} : vector<16x128xbf16>, vector<128x128xbf16>, vector<16x128xf32> -> vector<16x128xf32>
    %c0_94 = arith.constant 0 : index
    %c1_95 = arith.constant 1 : index
    %c0_96 = arith.constant 0 : index
    %102 = vector.load %arg10[%c0_94, %c1_95, %c0_96] : memref<6x6x128xf32, #tpu.memory_space<vmem>>, vector<4x4x128xf32>
    %103 = vector.shape_cast %102 : vector<4x4x128xf32> to vector<16x128xf32>
    %104 = arith.truncf %103 : vector<16x128xf32> to vector<16x128xbf16>
    %c1_97 = arith.constant 1 : index
    %c0_98 = arith.constant 0 : index
    %c0_99 = arith.constant 0 : index
    %105 = vector.load %arg4[%c1_97, %c0_98, %c0_99] : memref<9x128x128xbf16, #tpu.memory_space<vmem>>, vector<1x128x128xbf16>
    %106 = vector.shape_cast %105 : vector<1x128x128xbf16> to vector<128x128xbf16>
    %cst_100 = arith.constant dense<0.000000e+00> : vector<16x128xf32>
    %107 = tpu.matmul %104, %106, %cst_100 {dimension_numbers = #tpu.dot_dimension_numbers<[1], [0], [0], [1], [0, 0, 1, 1], [], []>} : vector<16x128xbf16>, vector<128x128xbf16>, vector<16x128xf32> -> vector<16x128xf32>
    %108 = arith.addf %101, %107 : vector<16x128xf32>
    %c0_101 = arith.constant 0 : index
    %c2_102 = arith.constant 2 : index
    %c0_103 = arith.constant 0 : index
    %109 = vector.load %arg10[%c0_101, %c2_102, %c0_103] : memref<6x6x128xf32, #tpu.memory_space<vmem>>, vector<4x4x128xf32>
    %110 = vector.shape_cast %109 : vector<4x4x128xf32> to vector<16x128xf32>
    %111 = arith.truncf %110 : vector<16x128xf32> to vector<16x128xbf16>
    %c2_104 = arith.constant 2 : index
    %c0_105 = arith.constant 0 : index
    %c0_106 = arith.constant 0 : index
    %112 = vector.load %arg4[%c2_104, %c0_105, %c0_106] : memref<9x128x128xbf16, #tpu.memory_space<vmem>>, vector<1x128x128xbf16>
    %113 = vector.shape_cast %112 : vector<1x128x128xbf16> to vector<128x128xbf16>
    %cst_107 = arith.constant dense<0.000000e+00> : vector<16x128xf32>
    %114 = tpu.matmul %111, %113, %cst_107 {dimension_numbers = #tpu.dot_dimension_numbers<[1], [0], [0], [1], [0, 0, 1, 1], [], []>} : vector<16x128xbf16>, vector<128x128xbf16>, vector<16x128xf32> -> vector<16x128xf32>
    %115 = arith.addf %108, %114 : vector<16x128xf32>
    %c1_108 = arith.constant 1 : index
    %c0_109 = arith.constant 0 : index
    %c0_110 = arith.constant 0 : index
    %116 = vector.load %arg10[%c1_108, %c0_109, %c0_110] : memref<6x6x128xf32, #tpu.memory_space<vmem>>, vector<4x4x128xf32>
    %117 = vector.shape_cast %116 : vector<4x4x128xf32> to vector<16x128xf32>
    %118 = arith.truncf %117 : vector<16x128xf32> to vector<16x128xbf16>
    %c3_111 = arith.constant 3 : index
    %c0_112 = arith.constant 0 : index
    %c0_113 = arith.constant 0 : index
    %119 = vector.load %arg4[%c3_111, %c0_112, %c0_113] : memref<9x128x128xbf16, #tpu.memory_space<vmem>>, vector<1x128x128xbf16>
    %120 = vector.shape_cast %119 : vector<1x128x128xbf16> to vector<128x128xbf16>
    %cst_114 = arith.constant dense<0.000000e+00> : vector<16x128xf32>
    %121 = tpu.matmul %118, %120, %cst_114 {dimension_numbers = #tpu.dot_dimension_numbers<[1], [0], [0], [1], [0, 0, 1, 1], [], []>} : vector<16x128xbf16>, vector<128x128xbf16>, vector<16x128xf32> -> vector<16x128xf32>
    %122 = arith.addf %115, %121 : vector<16x128xf32>
    %c1_115 = arith.constant 1 : index
    %c1_116 = arith.constant 1 : index
    %c0_117 = arith.constant 0 : index
    %123 = vector.load %arg10[%c1_115, %c1_116, %c0_117] : memref<6x6x128xf32, #tpu.memory_space<vmem>>, vector<4x4x128xf32>
    %124 = vector.shape_cast %123 : vector<4x4x128xf32> to vector<16x128xf32>
    %125 = arith.truncf %124 : vector<16x128xf32> to vector<16x128xbf16>
    %c4_118 = arith.constant 4 : index
    %c0_119 = arith.constant 0 : index
    %c0_120 = arith.constant 0 : index
    %126 = vector.load %arg4[%c4_118, %c0_119, %c0_120] : memref<9x128x128xbf16, #tpu.memory_space<vmem>>, vector<1x128x128xbf16>
    %127 = vector.shape_cast %126 : vector<1x128x128xbf16> to vector<128x128xbf16>
    %cst_121 = arith.constant dense<0.000000e+00> : vector<16x128xf32>
    %128 = tpu.matmul %125, %127, %cst_121 {dimension_numbers = #tpu.dot_dimension_numbers<[1], [0], [0], [1], [0, 0, 1, 1], [], []>} : vector<16x128xbf16>, vector<128x128xbf16>, vector<16x128xf32> -> vector<16x128xf32>
    %129 = arith.addf %122, %128 : vector<16x128xf32>
    %c1_122 = arith.constant 1 : index
    %c2_123 = arith.constant 2 : index
    %c0_124 = arith.constant 0 : index
    %130 = vector.load %arg10[%c1_122, %c2_123, %c0_124] : memref<6x6x128xf32, #tpu.memory_space<vmem>>, vector<4x4x128xf32>
    %131 = vector.shape_cast %130 : vector<4x4x128xf32> to vector<16x128xf32>
    %132 = arith.truncf %131 : vector<16x128xf32> to vector<16x128xbf16>
    %c5_125 = arith.constant 5 : index
    %c0_126 = arith.constant 0 : index
    %c0_127 = arith.constant 0 : index
    %133 = vector.load %arg4[%c5_125, %c0_126, %c0_127] : memref<9x128x128xbf16, #tpu.memory_space<vmem>>, vector<1x128x128xbf16>
    %134 = vector.shape_cast %133 : vector<1x128x128xbf16> to vector<128x128xbf16>
    %cst_128 = arith.constant dense<0.000000e+00> : vector<16x128xf32>
    %135 = tpu.matmul %132, %134, %cst_128 {dimension_numbers = #tpu.dot_dimension_numbers<[1], [0], [0], [1], [0, 0, 1, 1], [], []>} : vector<16x128xbf16>, vector<128x128xbf16>, vector<16x128xf32> -> vector<16x128xf32>
    %136 = arith.addf %129, %135 : vector<16x128xf32>
    %c2_129 = arith.constant 2 : index
    %c0_130 = arith.constant 0 : index
    %c0_131 = arith.constant 0 : index
    %137 = vector.load %arg10[%c2_129, %c0_130, %c0_131] : memref<6x6x128xf32, #tpu.memory_space<vmem>>, vector<4x4x128xf32>
    %138 = vector.shape_cast %137 : vector<4x4x128xf32> to vector<16x128xf32>
    %139 = arith.truncf %138 : vector<16x128xf32> to vector<16x128xbf16>
    %c6_132 = arith.constant 6 : index
    %c0_133 = arith.constant 0 : index
    %c0_134 = arith.constant 0 : index
    %140 = vector.load %arg4[%c6_132, %c0_133, %c0_134] : memref<9x128x128xbf16, #tpu.memory_space<vmem>>, vector<1x128x128xbf16>
    %141 = vector.shape_cast %140 : vector<1x128x128xbf16> to vector<128x128xbf16>
    %cst_135 = arith.constant dense<0.000000e+00> : vector<16x128xf32>
    %142 = tpu.matmul %139, %141, %cst_135 {dimension_numbers = #tpu.dot_dimension_numbers<[1], [0], [0], [1], [0, 0, 1, 1], [], []>} : vector<16x128xbf16>, vector<128x128xbf16>, vector<16x128xf32> -> vector<16x128xf32>
    %143 = arith.addf %136, %142 : vector<16x128xf32>
    %c2_136 = arith.constant 2 : index
    %c1_137 = arith.constant 1 : index
    %c0_138 = arith.constant 0 : index
    %144 = vector.load %arg10[%c2_136, %c1_137, %c0_138] : memref<6x6x128xf32, #tpu.memory_space<vmem>>, vector<4x4x128xf32>
    %145 = vector.shape_cast %144 : vector<4x4x128xf32> to vector<16x128xf32>
    %146 = arith.truncf %145 : vector<16x128xf32> to vector<16x128xbf16>
    %c7_139 = arith.constant 7 : index
    %c0_140 = arith.constant 0 : index
    %c0_141 = arith.constant 0 : index
    %147 = vector.load %arg4[%c7_139, %c0_140, %c0_141] : memref<9x128x128xbf16, #tpu.memory_space<vmem>>, vector<1x128x128xbf16>
    %148 = vector.shape_cast %147 : vector<1x128x128xbf16> to vector<128x128xbf16>
    %cst_142 = arith.constant dense<0.000000e+00> : vector<16x128xf32>
    %149 = tpu.matmul %146, %148, %cst_142 {dimension_numbers = #tpu.dot_dimension_numbers<[1], [0], [0], [1], [0, 0, 1, 1], [], []>} : vector<16x128xbf16>, vector<128x128xbf16>, vector<16x128xf32> -> vector<16x128xf32>
    %150 = arith.addf %143, %149 : vector<16x128xf32>
    %c2_143 = arith.constant 2 : index
    %c2_144 = arith.constant 2 : index
    %c0_145 = arith.constant 0 : index
    %151 = vector.load %arg10[%c2_143, %c2_144, %c0_145] : memref<6x6x128xf32, #tpu.memory_space<vmem>>, vector<4x4x128xf32>
    %152 = vector.shape_cast %151 : vector<4x4x128xf32> to vector<16x128xf32>
    %153 = arith.truncf %152 : vector<16x128xf32> to vector<16x128xbf16>
    %c8_146 = arith.constant 8 : index
    %c0_147 = arith.constant 0 : index
    %c0_148 = arith.constant 0 : index
    %154 = vector.load %arg4[%c8_146, %c0_147, %c0_148] : memref<9x128x128xbf16, #tpu.memory_space<vmem>>, vector<1x128x128xbf16>
    %155 = vector.shape_cast %154 : vector<1x128x128xbf16> to vector<128x128xbf16>
    %cst_149 = arith.constant dense<0.000000e+00> : vector<16x128xf32>
    %156 = tpu.matmul %153, %155, %cst_149 {dimension_numbers = #tpu.dot_dimension_numbers<[1], [0], [0], [1], [0, 0, 1, 1], [], []>} : vector<16x128xbf16>, vector<128x128xbf16>, vector<16x128xf32> -> vector<16x128xf32>
    %157 = arith.addf %150, %156 : vector<16x128xf32>
    %c2_150 = arith.constant 2 : index
    %c0_151 = arith.constant 0 : index
    %158 = vector.load %arg6[%c2_150, %c0_151] : memref<4x128xf32, #tpu.memory_space<vmem>>, vector<1x128xf32>
    %159 = vector.broadcast %158 : vector<1x128xf32> to vector<16x128xf32>
    %160 = arith.mulf %157, %159 : vector<16x128xf32>
    %c2_152 = arith.constant 2 : index
    %c0_153 = arith.constant 0 : index
    %161 = vector.load %arg7[%c2_152, %c0_153] : memref<4x128xf32, #tpu.memory_space<vmem>>, vector<1x128xf32>
    %162 = vector.broadcast %161 : vector<1x128xf32> to vector<16x128xf32>
    %163 = arith.addf %160, %162 : vector<16x128xf32>
    %cst_154 = arith.constant 0.000000e+00 : f32
    %164 = vector.broadcast %cst_154 : f32 to vector<16x128xf32>
    %165 = arith.maximumf %163, %164 : vector<16x128xf32>
    %166 = vector.shape_cast %165 : vector<16x128xf32> to vector<8x2x128xf32>
    %cst_155 = arith.constant dense<0xFF800000> : vector<8x128xf32>
    %167 = vector.multi_reduction <maximumf>, %166, %cst_155 [1] : vector<8x2x128xf32> to vector<8x128xf32>
    %168 = vector.shape_cast %167 : vector<8x128xf32> to vector<2x2x2x128xf32>
    %cst_156 = arith.constant dense<0xFF800000> : vector<2x2x128xf32>
    %169 = vector.multi_reduction <maximumf>, %168, %cst_156 [1] : vector<2x2x2x128xf32> to vector<2x2x128xf32>
    %cst_157 = arith.constant 0.000000e+00 : f32
    %170 = vector.broadcast %cst_157 : f32 to vector<4x4x128xf32>
    %c0_158 = arith.constant 0 : index
    %c0_159 = arith.constant 0 : index
    %c0_160 = arith.constant 0 : index
    %171 = vector.load %arg11[%c0_158, %c0_159, %c0_160] : memref<4x4x128xf32, #tpu.memory_space<vmem>>, vector<4x4x128xf32>
    tpu.vector_store %arg11[%c0_158, %c0_159, %c0_160], %170 {strides = array<i32>} : memref<4x4x128xf32, #tpu.memory_space<vmem>>, vector<4x4x128xf32>,
    %c1_161 = arith.constant 1 : index
    %c1_162 = arith.constant 1 : index
    %c0_163 = arith.constant 0 : index
    %172 = vector.load %arg11[%c1_161, %c1_162, %c0_163] : memref<4x4x128xf32, #tpu.memory_space<vmem>>, vector<2x2x128xf32>
    tpu.vector_store %arg11[%c1_161, %c1_162, %c0_163], %169 {strides = array<i32>} : memref<4x4x128xf32, #tpu.memory_space<vmem>>, vector<2x2x128xf32>,
    %c0_164 = arith.constant 0 : index
    %c0_165 = arith.constant 0 : index
    %c0_166 = arith.constant 0 : index
    %173 = vector.load %arg11[%c0_164, %c0_165, %c0_166] : memref<4x4x128xf32, #tpu.memory_space<vmem>>, vector<2x2x128xf32>
    %174 = vector.shape_cast %173 : vector<2x2x128xf32> to vector<4x128xf32>
    %175 = arith.truncf %174 : vector<4x128xf32> to vector<4x128xbf16>
    %c0_167 = arith.constant 0 : index
    %c0_168 = arith.constant 0 : index
    %c0_169 = arith.constant 0 : index
    %176 = vector.load %arg5[%c0_167, %c0_168, %c0_169] : memref<9x128x128xbf16, #tpu.memory_space<vmem>>, vector<1x128x128xbf16>
    %177 = vector.shape_cast %176 : vector<1x128x128xbf16> to vector<128x128xbf16>
    %cst_170 = arith.constant dense<0.000000e+00> : vector<4x128xf32>
    %178 = tpu.matmul %175, %177, %cst_170 {dimension_numbers = #tpu.dot_dimension_numbers<[1], [0], [0], [1], [0, 0, 1, 1], [], []>} : vector<4x128xbf16>, vector<128x128xbf16>, vector<4x128xf32> -> vector<4x128xf32>
    %c0_171 = arith.constant 0 : index
    %c1_172 = arith.constant 1 : index
    %c0_173 = arith.constant 0 : index
    %179 = vector.load %arg11[%c0_171, %c1_172, %c0_173] : memref<4x4x128xf32, #tpu.memory_space<vmem>>, vector<2x2x128xf32>
    %180 = vector.shape_cast %179 : vector<2x2x128xf32> to vector<4x128xf32>
    %181 = arith.truncf %180 : vector<4x128xf32> to vector<4x128xbf16>
    %c1_174 = arith.constant 1 : index
    %c0_175 = arith.constant 0 : index
    %c0_176 = arith.constant 0 : index
    %182 = vector.load %arg5[%c1_174, %c0_175, %c0_176] : memref<9x128x128xbf16, #tpu.memory_space<vmem>>, vector<1x128x128xbf16>
    %183 = vector.shape_cast %182 : vector<1x128x128xbf16> to vector<128x128xbf16>
    %cst_177 = arith.constant dense<0.000000e+00> : vector<4x128xf32>
    %184 = tpu.matmul %181, %183, %cst_177 {dimension_numbers = #tpu.dot_dimension_numbers<[1], [0], [0], [1], [0, 0, 1, 1], [], []>} : vector<4x128xbf16>, vector<128x128xbf16>, vector<4x128xf32> -> vector<4x128xf32>
    %185 = arith.addf %178, %184 : vector<4x128xf32>
    %c0_178 = arith.constant 0 : index
    %c2_179 = arith.constant 2 : index
    %c0_180 = arith.constant 0 : index
    %186 = vector.load %arg11[%c0_178, %c2_179, %c0_180] : memref<4x4x128xf32, #tpu.memory_space<vmem>>, vector<2x2x128xf32>
    %187 = vector.shape_cast %186 : vector<2x2x128xf32> to vector<4x128xf32>
    %188 = arith.truncf %187 : vector<4x128xf32> to vector<4x128xbf16>
    %c2_181 = arith.constant 2 : index
    %c0_182 = arith.constant 0 : index
    %c0_183 = arith.constant 0 : index
    %189 = vector.load %arg5[%c2_181, %c0_182, %c0_183] : memref<9x128x128xbf16, #tpu.memory_space<vmem>>, vector<1x128x128xbf16>
    %190 = vector.shape_cast %189 : vector<1x128x128xbf16> to vector<128x128xbf16>
    %cst_184 = arith.constant dense<0.000000e+00> : vector<4x128xf32>
    %191 = tpu.matmul %188, %190, %cst_184 {dimension_numbers = #tpu.dot_dimension_numbers<[1], [0], [0], [1], [0, 0, 1, 1], [], []>} : vector<4x128xbf16>, vector<128x128xbf16>, vector<4x128xf32> -> vector<4x128xf32>
    %192 = arith.addf %185, %191 : vector<4x128xf32>
    %c1_185 = arith.constant 1 : index
    %c0_186 = arith.constant 0 : index
    %c0_187 = arith.constant 0 : index
    %193 = vector.load %arg11[%c1_185, %c0_186, %c0_187] : memref<4x4x128xf32, #tpu.memory_space<vmem>>, vector<2x2x128xf32>
    %194 = vector.shape_cast %193 : vector<2x2x128xf32> to vector<4x128xf32>
    %195 = arith.truncf %194 : vector<4x128xf32> to vector<4x128xbf16>
    %c3_188 = arith.constant 3 : index
    %c0_189 = arith.constant 0 : index
    %c0_190 = arith.constant 0 : index
    %196 = vector.load %arg5[%c3_188, %c0_189, %c0_190] : memref<9x128x128xbf16, #tpu.memory_space<vmem>>, vector<1x128x128xbf16>
    %197 = vector.shape_cast %196 : vector<1x128x128xbf16> to vector<128x128xbf16>
    %cst_191 = arith.constant dense<0.000000e+00> : vector<4x128xf32>
    %198 = tpu.matmul %195, %197, %cst_191 {dimension_numbers = #tpu.dot_dimension_numbers<[1], [0], [0], [1], [0, 0, 1, 1], [], []>} : vector<4x128xbf16>, vector<128x128xbf16>, vector<4x128xf32> -> vector<4x128xf32>
    %199 = arith.addf %192, %198 : vector<4x128xf32>
    %c1_192 = arith.constant 1 : index
    %c1_193 = arith.constant 1 : index
    %c0_194 = arith.constant 0 : index
    %200 = vector.load %arg11[%c1_192, %c1_193, %c0_194] : memref<4x4x128xf32, #tpu.memory_space<vmem>>, vector<2x2x128xf32>
    %201 = vector.shape_cast %200 : vector<2x2x128xf32> to vector<4x128xf32>
    %202 = arith.truncf %201 : vector<4x128xf32> to vector<4x128xbf16>
    %c4_195 = arith.constant 4 : index
    %c0_196 = arith.constant 0 : index
    %c0_197 = arith.constant 0 : index
    %203 = vector.load %arg5[%c4_195, %c0_196, %c0_197] : memref<9x128x128xbf16, #tpu.memory_space<vmem>>, vector<1x128x128xbf16>
    %204 = vector.shape_cast %203 : vector<1x128x128xbf16> to vector<128x128xbf16>
    %cst_198 = arith.constant dense<0.000000e+00> : vector<4x128xf32>
    %205 = tpu.matmul %202, %204, %cst_198 {dimension_numbers = #tpu.dot_dimension_numbers<[1], [0], [0], [1], [0, 0, 1, 1], [], []>} : vector<4x128xbf16>, vector<128x128xbf16>, vector<4x128xf32> -> vector<4x128xf32>
    %206 = arith.addf %199, %205 : vector<4x128xf32>
    %c1_199 = arith.constant 1 : index
    %c2_200 = arith.constant 2 : index
    %c0_201 = arith.constant 0 : index
    %207 = vector.load %arg11[%c1_199, %c2_200, %c0_201] : memref<4x4x128xf32, #tpu.memory_space<vmem>>, vector<2x2x128xf32>
    %208 = vector.shape_cast %207 : vector<2x2x128xf32> to vector<4x128xf32>
    %209 = arith.truncf %208 : vector<4x128xf32> to vector<4x128xbf16>
    %c5_202 = arith.constant 5 : index
    %c0_203 = arith.constant 0 : index
    %c0_204 = arith.constant 0 : index
    %210 = vector.load %arg5[%c5_202, %c0_203, %c0_204] : memref<9x128x128xbf16, #tpu.memory_space<vmem>>, vector<1x128x128xbf16>
    %211 = vector.shape_cast %210 : vector<1x128x128xbf16> to vector<128x128xbf16>
    %cst_205 = arith.constant dense<0.000000e+00> : vector<4x128xf32>
    %212 = tpu.matmul %209, %211, %cst_205 {dimension_numbers = #tpu.dot_dimension_numbers<[1], [0], [0], [1], [0, 0, 1, 1], [], []>} : vector<4x128xbf16>, vector<128x128xbf16>, vector<4x128xf32> -> vector<4x128xf32>
    %213 = arith.addf %206, %212 : vector<4x128xf32>
    %c2_206 = arith.constant 2 : index
    %c0_207 = arith.constant 0 : index
    %c0_208 = arith.constant 0 : index
    %214 = vector.load %arg11[%c2_206, %c0_207, %c0_208] : memref<4x4x128xf32, #tpu.memory_space<vmem>>, vector<2x2x128xf32>
    %215 = vector.shape_cast %214 : vector<2x2x128xf32> to vector<4x128xf32>
    %216 = arith.truncf %215 : vector<4x128xf32> to vector<4x128xbf16>
    %c6_209 = arith.constant 6 : index
    %c0_210 = arith.constant 0 : index
    %c0_211 = arith.constant 0 : index
    %217 = vector.load %arg5[%c6_209, %c0_210, %c0_211] : memref<9x128x128xbf16, #tpu.memory_space<vmem>>, vector<1x128x128xbf16>
    %218 = vector.shape_cast %217 : vector<1x128x128xbf16> to vector<128x128xbf16>
    %cst_212 = arith.constant dense<0.000000e+00> : vector<4x128xf32>
    %219 = tpu.matmul %216, %218, %cst_212 {dimension_numbers = #tpu.dot_dimension_numbers<[1], [0], [0], [1], [0, 0, 1, 1], [], []>} : vector<4x128xbf16>, vector<128x128xbf16>, vector<4x128xf32> -> vector<4x128xf32>
    %220 = arith.addf %213, %219 : vector<4x128xf32>
    %c2_213 = arith.constant 2 : index
    %c1_214 = arith.constant 1 : index
    %c0_215 = arith.constant 0 : index
    %221 = vector.load %arg11[%c2_213, %c1_214, %c0_215] : memref<4x4x128xf32, #tpu.memory_space<vmem>>, vector<2x2x128xf32>
    %222 = vector.shape_cast %221 : vector<2x2x128xf32> to vector<4x128xf32>
    %223 = arith.truncf %222 : vector<4x128xf32> to vector<4x128xbf16>
    %c7_216 = arith.constant 7 : index
    %c0_217 = arith.constant 0 : index
    %c0_218 = arith.constant 0 : index
    %224 = vector.load %arg5[%c7_216, %c0_217, %c0_218] : memref<9x128x128xbf16, #tpu.memory_space<vmem>>, vector<1x128x128xbf16>
    %225 = vector.shape_cast %224 : vector<1x128x128xbf16> to vector<128x128xbf16>
    %cst_219 = arith.constant dense<0.000000e+00> : vector<4x128xf32>
    %226 = tpu.matmul %223, %225, %cst_219 {dimension_numbers = #tpu.dot_dimension_numbers<[1], [0], [0], [1], [0, 0, 1, 1], [], []>} : vector<4x128xbf16>, vector<128x128xbf16>, vector<4x128xf32> -> vector<4x128xf32>
    %227 = arith.addf %220, %226 : vector<4x128xf32>
    %c2_220 = arith.constant 2 : index
    %c2_221 = arith.constant 2 : index
    %c0_222 = arith.constant 0 : index
    %228 = vector.load %arg11[%c2_220, %c2_221, %c0_222] : memref<4x4x128xf32, #tpu.memory_space<vmem>>, vector<2x2x128xf32>
    %229 = vector.shape_cast %228 : vector<2x2x128xf32> to vector<4x128xf32>
    %230 = arith.truncf %229 : vector<4x128xf32> to vector<4x128xbf16>
    %c8_223 = arith.constant 8 : index
    %c0_224 = arith.constant 0 : index
    %c0_225 = arith.constant 0 : index
    %231 = vector.load %arg5[%c8_223, %c0_224, %c0_225] : memref<9x128x128xbf16, #tpu.memory_space<vmem>>, vector<1x128x128xbf16>
    %232 = vector.shape_cast %231 : vector<1x128x128xbf16> to vector<128x128xbf16>
    %cst_226 = arith.constant dense<0.000000e+00> : vector<4x128xf32>
    %233 = tpu.matmul %230, %232, %cst_226 {dimension_numbers = #tpu.dot_dimension_numbers<[1], [0], [0], [1], [0, 0, 1, 1], [], []>} : vector<4x128xbf16>, vector<128x128xbf16>, vector<4x128xf32> -> vector<4x128xf32>
    %234 = arith.addf %227, %233 : vector<4x128xf32>
    %c3_227 = arith.constant 3 : index
    %c0_228 = arith.constant 0 : index
    %235 = vector.load %arg6[%c3_227, %c0_228] : memref<4x128xf32, #tpu.memory_space<vmem>>, vector<1x128xf32>
    %236 = vector.broadcast %235 : vector<1x128xf32> to vector<4x128xf32>
    %237 = arith.mulf %234, %236 : vector<4x128xf32>
    %c3_229 = arith.constant 3 : index
    %c0_230 = arith.constant 0 : index
    %238 = vector.load %arg7[%c3_229, %c0_230] : memref<4x128xf32, #tpu.memory_space<vmem>>, vector<1x128xf32>
    %239 = vector.broadcast %238 : vector<1x128xf32> to vector<4x128xf32>
    %240 = arith.addf %237, %239 : vector<4x128xf32>
    %cst_231 = arith.constant 0.000000e+00 : f32
    %241 = vector.broadcast %cst_231 : f32 to vector<4x128xf32>
    %242 = arith.maximumf %240, %241 : vector<4x128xf32>
    %243 = vector.shape_cast %242 : vector<4x128xf32> to vector<2x2x128xf32>
    %cst_232 = arith.constant dense<0xFF800000> : vector<2x128xf32>
    %244 = vector.multi_reduction <maximumf>, %243, %cst_232 [1] : vector<2x2x128xf32> to vector<2x128xf32>
    %245 = vector.shape_cast %244 : vector<2x128xf32> to vector<1x2x1x128xf32>
    %cst_233 = arith.constant dense<0xFF800000> : vector<1x1x128xf32>
    %246 = vector.multi_reduction <maximumf>, %245, %cst_233 [1] : vector<1x2x1x128xf32> to vector<1x1x128xf32>
    %c0_234 = arith.constant 0 : index
    %c0_235 = arith.constant 0 : index
    %c0_236 = arith.constant 0 : index
    %c0_237 = arith.constant 0 : index
    %247 = vector.load %arg8[%c0_234, %c0_235, %c0_236, %c0_237] : memref<1x1x1x128xf32, #tpu.memory_space<vmem>>, vector<1x1x1x128xf32>
    %248 = vector.shape_cast %247 : vector<1x1x1x128xf32> to vector<1x1x128xf32>
    %249 = vector.shape_cast %246 : vector<1x1x128xf32> to vector<1x1x1x128xf32>
    tpu.vector_store %arg8[%c0_234, %c0_235, %c0_236, %c0_237], %249 {strides = array<i32>} : memref<1x1x1x128xf32, #tpu.memory_space<vmem>>, vector<1x1x1x128xf32>,
    return
  }
  func.func @transform_0(%arg0: i32) -> (i32, i32, i32) {
    %c0_i32 = arith.constant 0 : i32
    %c0_i32_0 = arith.constant 0 : i32
    %c0_i32_1 = arith.constant 0 : i32
    return %arg0, %c0_i32, %c0_i32_0 : i32, i32, i32
  }
  func.func @transform_1(%arg0: i32) -> (i32, i32) {
    %c0_i32 = arith.constant 0 : i32
    %c0_i32_0 = arith.constant 0 : i32
    %c0_i32_1 = arith.constant 0 : i32
    return %c0_i32, %c0_i32_0 : i32, i32
  }
  func.func @transform_2(%arg0: i32) -> (i32, i32, i32) {
    %c0_i32 = arith.constant 0 : i32
    %c0_i32_0 = arith.constant 0 : i32
    %c0_i32_1 = arith.constant 0 : i32
    %c0_i32_2 = arith.constant 0 : i32
    return %c0_i32, %c0_i32_0, %c0_i32_1 : i32, i32, i32
  }
  func.func @transform_3(%arg0: i32) -> (i32, i32, i32) {
    %c0_i32 = arith.constant 0 : i32
    %c0_i32_0 = arith.constant 0 : i32
    %c0_i32_1 = arith.constant 0 : i32
    %c0_i32_2 = arith.constant 0 : i32
    return %c0_i32, %c0_i32_0, %c0_i32_1 : i32, i32, i32
  }
  func.func @transform_4(%arg0: i32) -> (i32, i32, i32) {
    %c0_i32 = arith.constant 0 : i32
    %c0_i32_0 = arith.constant 0 : i32
    %c0_i32_1 = arith.constant 0 : i32
    %c0_i32_2 = arith.constant 0 : i32
    return %c0_i32, %c0_i32_0, %c0_i32_1 : i32, i32, i32
  }
  func.func @transform_5(%arg0: i32) -> (i32, i32) {
    %c0_i32 = arith.constant 0 : i32
    %c0_i32_0 = arith.constant 0 : i32
    %c0_i32_1 = arith.constant 0 : i32
    return %c0_i32, %c0_i32_0 : i32, i32
  }
  func.func @transform_6(%arg0: i32) -> (i32, i32) {
    %c0_i32 = arith.constant 0 : i32
    %c0_i32_0 = arith.constant 0 : i32
    %c0_i32_1 = arith.constant 0 : i32
    return %c0_i32, %c0_i32_0 : i32, i32
  }
  func.func @transform_7(%arg0: i32) -> (i32, i32, i32, i32) {
    %c0_i32 = arith.constant 0 : i32
    %c0_i32_0 = arith.constant 0 : i32
    %c0_i32_1 = arith.constant 0 : i32
    %c0_i32_2 = arith.constant 0 : i32
    return %arg0, %c0_i32, %c0_i32_0, %c0_i32_1 : i32, i32, i32, i32
  }
}

</mosaic_0001>

<bundles_post_ra>
// kernel: tpu_custom_call.1
= control target key start
LH: loop header
LB: loop body
LE: loop exit
PB: predicated region body
PF: predicated region fallthrough
CT: control target
= control target key end

     0   :  { %12 = vsyncpa [#allocation6], 0  ;;  %s9828_s0 = inlined_call_operand.vmem [shape: bf16[2,256,9], index: 0, kind: input, shape index: {}]   ;;  %s9829_s1 = inlined_call_operand.vmem [shape: bf16[9,128], index: 1, kind: input, shape index: {}]   ;;  %s9830_s2 = inlined_call_operand.hbm [shape: bf16[9,128,128], index: 2, kind: input, shape index: {}]   ;;  %s9831_s3 = inlined_call_operand.hbm [shape: bf16[9,128,128], index: 3, kind: input, shape index: {}]   ;;  %s9832_s4 = inlined_call_operand.hbm [shape: bf16[9,128,128], index: 4, kind: input, shape index: {}]   ;;  %s9833_s5 = inlined_call_operand.vmem [shape: f32[4,128], index: 5, kind: input, shape index: {}]   ;;  %s9834_s6 = inlined_call_operand.vmem [shape: f32[4,128], index: 6, kind: input, shape index: {}]   ;;  %s9835_s7 = inlined_call_operand.hbm [shape: f32[2,1,1,128], index: 7, kind: output, shape index: {}]  }
   0x1   :  { %13 = vsyncpa [#allocation9], 0 }
   0x2   :  { %14 = vsyncpa [#allocation7], 0 }
   0x3   :  { %16 = vsyncpa [#allocation7 + $0x1], 0  ;;  %s8577_s24 = smov 0   ;;  %s8579_s25 = smov 0  }
   0x4   :  { %s8581_s26 = smov 0   ;;  %s8583_s27 = smov 0  }
   0x5 LB: > { %s8598_s28 = sadd.s32 4294967295, %s8525_s27   ;;  %s6856_s29 = sadd.s32 4294967294, %s8525_s27   ;;  %s8525_s27 = sphi %s8583_s27, %s9851_s27   ;;  %s8521_s26 = sphi %s8581_s26, %s9850_s26   ;;  %s8517_s25 = sphi %s8579_s25, %s9849_s25   ;;  %s8513_s24 = sphi %s8577_s24, %s9848_s24  }
   0x6   : > { %s8602_s30 = sadd.s32 1, %s8525_s27   ;;  %s181_s8 = sadd.s32 1, %s8521_s26 }
   0x7   : > { %s178_s9 = ssub.s32 %s8525_s27, %s8602_s30  ;;  %p191_p0 = scmp.ne.s32.totalorder %s8521_s26, %s8517_s25 }
   0x8   : > { %p179_p1 = scmp.eq.s32.totalorder %s178_s9, 0  ;;  %p192_p2 = scmp.eq.s32.totalorder %s8598_s28, 1 }
   0x9   : > { %p197_p3 = scmp.ne.s32.totalorder %s8517_s25, %s8513_s24  ;;  %p198_p4 = scmp.eq.s32.totalorder %s6856_s29, 1 }
   0xa   : > { %s8613_s10 = scalar_select %p179_p1, %s8521_s26, %s181_s8  }
   0xb   : > { %p8615_p5 = por %p192_p2, %p191_p0  ;;  %p8619_p6 = por %p198_p4, %p197_p3 }
   0xc   : > { %p6857_p7 = scmp.ge.s32.totalorder %s8525_s27, 1  ;;  %p205_p8 = scmp.lt.s32.totalorder %s8525_s27, 3 }
   0xd   : > { %s9838_s11 = scalar_select %p8615_p5, 1, 0 }
   0xe   : > { %s9839_s12 = scalar_select %p8619_p6, 1, 0 }
   0xf   : > { %p9836_p9 = scmp.eq.s32.totalorder %s8598_s28, 0  ;;  %p8626_p10 = pnand %p6857_p7, %p205_p8 }
  0x10   : > { %s8527_s14 = smov [#allocation8]   ;;  %s8528_s17 = smov [#allocation5]  }
  0x11   : > { %p8040_p11 = pneg %p8626_p10  ;;  %s233_s15 = sshll.u32 %s8527_s14, 4  ;;  %s234_s15 = int_to_ptr.vmem [resolvable:$true] %s233_s15 }
  0x12   : > { %s220_s18 = sshll.u32 %s8528_s17, 4  ;;  %s8529_s19 = smov [#allocation10]   ;;  %s221_s18 = int_to_ptr.vmem [resolvable:$true] %s220_s18 }
  0x13   : > { %p8634_p12 = pnand %p9836_p9, %p8040_p11  ;;  %s246_s20 = sshll.u32 %s8529_s19, 4  ;;  %s247_s20 = int_to_ptr.vmem [resolvable:$true] %s246_s20 }
  0x14   : > { %s8390_s21 = scalar_lea.vmem %s234_s15, 9216  ;;  %p8398_p3 = scmp.lt.s32.totalorder %s234_s15, %s234_s15 }
  0x15   : > { %p8381_p13 = pneg %p8634_p12  ;;  %p8391_p0 = scmp.ne.s32.totalorder %s234_s15, %s8390_s21 }
  0x16   : > { %p8399_p4 = scmp.lt.s32.totalorder %s8390_s21, %s8390_s21 }
  0x17   : > { %p8393_p1 = pnand %p8391_p0, %p8381_p13 }
  0x18   : > { %p8400_p7 = por %p8399_p4, %p8398_p3 }
  0x19   : > { %p8394_p2 = pneg %p8393_p1 }
  0x1b   : > { %p8401_p8 = pnand %p8400_p7, %p8394_p2 }
  0x1d   : > { %8404 = shalt.err (!%p8401_p8)
}
  0x1e   : > { %s8530_s22 = smov 64   ;;  %s8531_s23 = smov 4  }
  0x1f   : > { %8046 = dma.hbm_to_vmem [thread:$0]  (!%p8634_p12), %s9831_s3, 9216, %s234_s15, [#allocation9], %s8530_s22, %s8530_s22, %s8531_s23  }
  0x20   : > { %s8416_s9 = scalar_lea.vmem %s221_s18, 9216  ;;  %p8424_p9 = scmp.lt.s32.totalorder %s221_s18, %s221_s18 }
  0x21   : > { %p8417_p11 = scmp.ne.s32.totalorder %s221_s18, %s8416_s9  ;;  %p8425_p6 = scmp.lt.s32.totalorder %s8416_s9, %s8416_s9 }
  0x23   : > { %p8419_p0 = pnand %p8417_p11, %p8381_p13  ;;  %p8426_p3 = por %p8425_p6, %p8424_p9 }
  0x25   : > { %p8420_p1 = pneg %p8419_p0 }
  0x27   : > { %p8427_p2 = pnand %p8426_p3, %p8420_p1 }
  0x29   : > { %8430 = shalt.err (!%p8427_p2)
}
  0x2a   : > { %8043 = dma.hbm_to_vmem [thread:$0]  (!%p8634_p12), %s9830_s2, 9216, %s221_s18, [#allocation6], %s8530_s22, %s8530_s22, %s8531_s23  }
  0x2b   : > { %s8442_s15 = scalar_lea.vmem %s247_s20, 9216  ;;  %p8450_p11 = scmp.lt.s32.totalorder %s247_s20, %s247_s20 }
  0x2c   : > { %p8443_p4 = scmp.ne.s32.totalorder %s247_s20, %s8442_s15  ;;  %p8451_p0 = scmp.lt.s32.totalorder %s8442_s15, %s8442_s15 }
  0x2e   : > { %p8445_p7 = pnand %p8443_p4, %p8381_p13  ;;  %p8452_p5 = por %p8451_p0, %p8450_p11 }
  0x30   : > { %p8446_p8 = pneg %p8445_p7 }
  0x32   : > { %p8453_p6 = pnand %p8452_p5, %p8446_p8 }
  0x34   : > { %8456 = shalt.err (!%p8453_p6)
}
  0x35   : > { %8049 = dma.hbm_to_vmem [thread:$0]  (!%p8634_p12), %s9832_s4, 9216, %s247_s20, [#allocation9], %s8530_s22, %s8530_s22, %s8531_s23  }
  0x36   : > { %276 = sbr.rel (%p8626_p10) target bundleno = 1709 (0x6ad), region = 48  ;;  %p9842_p9 = scmp.eq.s32.totalorder (!%p8626_p10), %s8598_s28, 0 }
  0x3b   : > { %8500 = dma.done.wait (%p9842_p9), [#allocation6], 9216   ;;  %p9843_p13 = pmov %p9842_p9 }
  0x3c   : > { %p9844_p1 = pmov %p9842_p9 }
  0x3d   : > { %8502 = vsyncadd (%p9843_p13), [#allocation6], 4294958080 }
  0x3e   : > { %8504 = dma.done.wait (%p9844_p1), [#allocation9], 18432   ;;  %p9845_p5 = pmov %p9844_p1 }
  0x3f   : > { %vm489_vm0 = vcmask 1043456   ;;  %p315_p3 = scmp.lt.s32.totalorder %s8598_s28, 1  ;;  %vm490_vm1 = vcmask 1044480   ;;  %v8532_v0 = vmov 65535   ;;  %vm440_vm2 = vcmask 72704   ;;  %v8119_v36 = vld [vmem:[#allocation5 + $0x78] sm:$0xff]  }
  0x40   : > { %8506 = vsyncadd (%p9845_p5), [#allocation9], 4294948864  ;;  %v491_v1 = vsel %vm489_vm0, 4294967295, %v8532_v0  ;;  %v8102_v3 = vld [vmem:[%s9829_s1] sm:$0x1f]   ;;  %v8533_v21 = vmov 0.0   ;;  %v799_v24 = vlaneseq  ;;  %7450 = vmatprep.subr.bf16.mxu1 %v8119_v36 }
  0x41   : > { %s316_s16 = scalar_select %p315_p3, %s8598_s28, 1  ;;  %v492_v2 = vsel %vm490_vm1, %v491_v1, 0  ;;  %2430 = vst [vmem:[#allocation2 + $0x10] sm:$0xff] %v8533_v21  ;;  %2431 = vst [vmem:[#allocation2 + $0x18] sm:$0x3] %v8533_v21  ;;  %v8120_v40 = vld [vmem:[#allocation5 + $0xb8] sm:$0xff]   ;;  %7451 = vmatpush3.bf16.msra.mxu1 %v8119_v36 }
  0x42   : > { %v494_v5 = vand.u32 %v8102_v3, %v492_v2  ;;  %2428 = vst [vmem:[#allocation2] sm:$0xff] %v8533_v21  ;;  %2429 = vst [vmem:[#allocation2 + $0x8] sm:$0x3] %v8533_v21  ;;  %v8534_v22 = vmov 1983009808   ;;  %v800_v27 = vshrl.u32 %v799_v24, 7 }
  0x43   : > { %s7128_s13 = sshll.u32 %s316_s16, 7  ;;  %2432 = vst [vmem:[#allocation2 + $0x20] sm:$0xff] %v8533_v21  ;;  %2433 = vst [vmem:[#allocation2 + $0x28] sm:$0x3] %v8533_v21  ;;  %v797_v23 = vunpack.c.l.s4 %v8534_v22  ;;  %v8719_v25 = vld [vmem:[%s9833_s5] ss:$0 sm:$0xff] }
  0x44   : > { %s8679_s22 = scalar_lea.vmem %s9828_s0, %s7128_s13  ;;  %7416 = vmatprep.subr.bf16.mxu0 %v494_v5  ;;  %2434 = vst [vmem:[#allocation2 + $0x30] sm:$0xff] %v8533_v21  ;;  %2435 = vst [vmem:[#allocation2 + $0x38] sm:$0x3] %v8533_v21  ;;  %v8724_v29 = vld [vmem:[%s9834_s6] ss:$0 sm:$0xff]  ;;  %vm1467_vm3 = vcmask 1041408  }
  0x45   : > { %v8103_v4 = vld [vmem:[%s8679_s22] sm:$0xff]   ;;  %v8104_v6 = vld [vmem:[%s8679_s22 + $0x8] sm:$0xff]   ;;  %7417 = vmatpush3.bf16.msra.mxu0 %v494_v5  ;;  %v8105_v7 = vld [vmem:[%s8679_s22 + $0x10] sm:$0xff]   ;;  %2436 = vst [vmem:[#allocation2 + $0x40] sm:$0xff] %v8533_v21  ;;  %v798_v26 = vunpack.c.0.s8 %v797_v23  ;;  %vm2512_vm4 = vcmask 1041409   ;;  %vm2514_vm5 = vcmask 1042434  }
  0x46   : > { %7418 = vmatprep.mubr.msk.bf16.mxu0 %vm440_vm2, %v8103_v4  ;;  %v8106_v8 = vld [vmem:[%s8679_s22 + $0x18] sm:$0xff]   ;;  %v8107_v9 = vld [vmem:[%s8679_s22 + $0x20] sm:$0xff]   ;;  %v8108_v10 = vld [vmem:[%s8679_s22 + $0x28] sm:$0xff]   ;;  %2437 = vst [vmem:[#allocation2 + $0x48] sm:$0x3] %v8533_v21  ;;  %7498 = vmatprep.subr.bf16.mxu0 %v8120_v40  ;;  %vm2516_vm6 = vcmask 1043459  }
  0x47   : > { %v8109_v11 = vld [vmem:[%s8679_s22 + $0x30] sm:$0xff]   ;;  %v8110_v12 = vld [vmem:[%s8679_s22 + $0x38] sm:$0xff]   ;;  %v8111_v13 = vld [vmem:[%s8679_s22 + $0x40] sm:$0xff]   ;;  %2438 = vst [vmem:[#allocation2 + $0x50] sm:$0xff] %v8533_v21  ;;  %v8728_v33 = vsub.s32 %v798_v26, %v800_v27  ;;  %vm2518_vm7 = vcmask 1044484   ;;  %vm2520_vm8 = vcmask 1045509  }
  0x48   : > { %7419 = vmatmul.mubr.msk.bf16.vlgmr.msra.gmra.mxu0 %vm440_vm2, %v8104_v6  ;;  %v8112_v14 = vld [vmem:[%s8679_s22 + $0x48] sm:$0xff]   ;;  %v8113_v15 = vld [vmem:[%s8679_s22 + $0x50] sm:$0xff]   ;;  %v8114_v16 = vld [vmem:[%s8679_s22 + $0x58] sm:$0xff]   ;;  %2439 = vst [vmem:[#allocation2 + $0x58] sm:$0x3] %v8533_v21  ;;  %vm2522_vm9 = vcmask 1046534  }
  0x49   : > { %7422 = vmatprep.mubr.msk.bf16.mxu0 %vm440_vm2, %v8105_v7  ;;  %v8115_v17 = vld [vmem:[%s8679_s22 + $0x60] sm:$0xff]   ;;  %v8116_v18 = vld [vmem:[%s8679_s22 + $0x68] sm:$0xff]   ;;  %v8117_v19 = vld [vmem:[%s8679_s22 + $0x70] sm:$0xff]   ;;  %2440 = vst [vmem:[#allocation2 + $0x60] sm:$0xff] %v8533_v21  ;;  %7499 = vmatpush3.bf16.msra.mxu0 %v8120_v40  ;;  %vm2524_vm10 = vcmask 1047559   ;;  %vm8535_vm11 = vmmov 0  }
  0x4a   : > { %v8118_v20 = vld [vmem:[%s8679_s22 + $0x78] sm:$0xff]   ;;  %2441 = vst [vmem:[#allocation2 + $0x68] sm:$0x3] %v8533_v21  ;;  %2442 = vst [vmem:[#allocation2 + $0x70] sm:$0xff] %v8533_v21  ;;  %s313_s20 = sand.u32 1, %s8517_s25   ;;  %s7125_s22 = sshll.u32 %s8598_s28, 4 }
  0x4b   : > { %2443 = vst [vmem:[#allocation2 + $0x78] sm:$0x3] %v8533_v21  ;;  %2444 = vst [vmem:[#allocation2 + $0x80] sm:$0xff] %v8533_v21  ;;  %s314_s23 = scalar_lea.vmem [#allocation11], %s313_s20  ;;  %s6768_s14 = scalar_lea.hbm %s9835_s7, %s7125_s22 }
  0x4c   : > { %2445 = vst [vmem:[#allocation2 + $0x88] sm:$0x3] %v8533_v21  ;;  %2446 = vst [vmem:[#allocation2 + $0x90] sm:$0xff] %v8533_v21  ;;  %s6770_s29 = sshll.u32 %s314_s23, 4  ;;  %s6758_s17 = scalar_lea.sflag [#allocation7], %s313_s20  ;;  %s6771_s29 = int_to_ptr.vmem [resolvable:$true] %s6770_s29 }
  0x4d   : > { %2447 = vst [vmem:[#allocation2 + $0x98] sm:$0x3] %v8533_v21  ;;  %4376 = vst [vmem:[#allocation3] sm:$0x3f] %v8533_v21  ;;  %s8457_s15 = scalar_lea.vmem %s6771_s29, 16  ;;  %p9846_p12 = scmp.ne.s32.totalorder %s9838_s11, 0 }
  0x4e   : > { %4377 = vst [vmem:[#allocation3 + $0x8] sm:$0x3f] %v8533_v21  ;;  %4378 = vst [vmem:[#allocation3 + $0x10] sm:$0x3f] %v8533_v21  ;;  %p8458_p10 = scmp.ne.s32.totalorder %s6771_s29, %s8457_s15  ;;  %s8536_s19 = smov [#allocation11]  }
  0x4f   : > { %4379 = vst [vmem:[#allocation3 + $0x18] sm:$0x3f] %v8533_v21  ;;  %4380 = vst [vmem:[#allocation3 + $0x20] sm:$0x3f] %v8533_v21  ;;  %s8461_s21 = sshll.u32 %s8536_s19, 4  ;;  %s8462_s21 = int_to_ptr.vmem [resolvable:$false] %s8461_s21 }
  0x50   : > { %7423 = vmatmul.mubr.msk.bf16.gmra.mxu0 %vm440_vm2, %v8106_v8  ;;  %4381 = vst [vmem:[#allocation3 + $0x28] sm:$0x3f] %v8533_v21  ;;  %5624 = vst [vmem:[#allocation4] sm:$0xf] %v8533_v21  ;;  %p8459_p2 = pnand %p8458_p10, %p9846_p12  ;;  %s8463_s28 = scalar_lea.vmem %s8462_s21, 32 }
  0x51   : > { %7426 = vmatprep.mubr.msk.bf16.mxu0 %vm440_vm2, %v8107_v9  ;;  %5625 = vst [vmem:[#allocation4 + $0x4] sm:$0xf] %v8533_v21  ;;  %5626 = vst [vmem:[#allocation4 + $0x8] sm:$0xf] %v8533_v21  ;;  %p8464_p7 = scmp.lt.s32.totalorder %s6771_s29, %s8462_s21  ;;  %p8465_p8 = scmp.lt.s32.totalorder %s8463_s28, %s8457_s15 }
  0x52   : > { %5627 = vst [vmem:[#allocation4 + $0xc] sm:$0xf] %v8533_v21  ;;  %p8460_p4 = pneg %p8459_p2 }
  0x53   : > { %p8466_p11 = por %p8465_p8, %p8464_p7 }
  0x55   : > { %p8467_p0 = pnand %p8466_p11, %p8460_p4 }
  0x58   : > { %7427 = vmatmul.mubr.msk.bf16.gmra.mxu0 %vm440_vm2, %v8108_v10 }
  0x59   : > { %7430 = vmatprep.mubr.msk.bf16.mxu0 %vm440_vm2, %v8109_v11 }
  0x60   : > { %7431 = vmatmul.mubr.msk.bf16.gmra.mxu0 %vm440_vm2, %v8110_v12 }
  0x61   : > { %7434 = vmatprep.mubr.msk.bf16.mxu0 %vm440_vm2, %v8111_v13 }
  0x68   : > { %7435 = vmatmul.mubr.msk.bf16.gmra.mxu0 %vm440_vm2, %v8112_v14 }
  0x69   : > { %7438 = vmatprep.mubr.msk.bf16.mxu0 %vm440_vm2, %v8113_v15 }
  0x70   : > { %7439 = vmatmul.mubr.msk.bf16.gmra.mxu0 %vm440_vm2, %v8114_v16 }
  0x71   : > { %7442 = vmatprep.mubr.msk.bf16.mxu0 %vm440_vm2, %v8115_v17 }
  0x78   : > { %7443 = vmatmul.mubr.msk.bf16.gmra.mxu0 %vm440_vm2, %v8116_v18 }
  0x79   : > { %7446 = vmatprep.mubr.msk.bf16.mxu0 %vm440_vm2, %v8117_v19 }
  0x80   : > { %7447 = vmatmul.mubr.msk.bf16.gmra.mxu0 %vm440_vm2, %v8118_v20 }
 0x108   : > { %v7420_v28 = vpop.f32.mrf.mxu0 }
 0x109   : > { %v664_v30 = vmul.f32 %v7420_v28, %v8719_v25 }
 0x10a   : > { %v530_v31 = vpop.f32.mrf.mxu0 }
 0x10b   : > { %v701_v32 = vadd.f32 %v8724_v29, %v664_v30  ;;  %v662_v34 = vmul.f32 %v8719_v25, %v530_v31 }
 0x10c   : > { %v7421_v35 = vpop.f32.mrf.mxu0 }
 0x10d   : > { %v733_v37 = vmax.f32 %v701_v32, 0.0  ;;  %v699_v38 = vadd.f32 %v8724_v29, %v662_v34  ;;  %v665_v39 = vmul.f32 %v7421_v35, %v8719_v25 }
 0x10e   : > { %v533_v41 = vpop.f32.mrf.mxu0 }
 0x10f   : > { %v829_v42 = vcombine.high %v733_v37, %v733_v37  ;;  %v836_v43 = vrot.slane %v733_v37, %v8728_v33  ;;  %v731_v44 = vmax.f32 %v699_v38, 0.0  ;;  %v702_v45 = vadd.f32 %v8724_v29, %v665_v39 }
 0x110   : > { %v663_v46 = vmul.f32 %v8719_v25, %v533_v41 }
 0x111   : > { %v843_v47 = vrot.slane %v829_v42, %v8728_v33  ;;  %v844_v48 = vcombine.high %v836_v43, %v836_v43  ;;  %v1524_v49 = vsel %vm1467_vm3, %v836_v43, -inf  ;;  %v795_v50 = vcombine.high %v731_v44, %v731_v44 }
 0x112   : > { %v1525_v51 = vrot.slane %v1524_v49, 4  ;;  %v802_v52 = vrot.slane %v731_v44, %v8728_v33  ;;  %v734_v53 = vmax.f32 %v702_v45, 0.0  ;;  %v700_v54 = vadd.f32 %v8724_v29, %v663_v46 }
 0x113   : > { %v845_v55 = vcombine.high %v843_v47, %v843_v47  ;;  %v1531_v56 = vsel %vm1467_vm3, %v844_v48, -inf  ;;  %v1538_v57 = vsel %vm1467_vm3, %v843_v47, -inf  ;;  %v809_v58 = vrot.slane %v795_v50, %v8728_v33 }
 0x114   : > { %v1526_v59 = vmax.f32 %v1524_v49, %v1525_v51  ;;  %v1532_v60 = vrot.slane %v1531_v56, 4  ;;  %v1539_v61 = vrot.slane %v1538_v57, 4  ;;  %v810_v62 = vcombine.high %v802_v52, %v802_v52 }
 0x115   : > { %v1545_v63 = vsel %vm1467_vm3, %v845_v55, -inf  ;;  %v811_v0 = vcombine.high %v809_v58, %v809_v58  ;;  %v1468_v1 = vsel %vm1467_vm3, %v802_v52, -inf  ;;  %v1482_v2 = vsel %vm1467_vm3, %v809_v58, -inf }
 0x116   : > { %v1527_v3 = vrot.slane %v1526_v59, 2  ;;  %v1533_v4 = vmax.f32 %v1531_v56, %v1532_v60  ;;  %v1540_v5 = vmax.f32 %v1538_v57, %v1539_v61  ;;  %v1546_v6 = vrot.slane %v1545_v63, 4  ;;  %v8121_v56 = vld [vmem:[#allocation5 + $0x70] sm:$0xff]  }
 0x117   : > { %v1469_v7 = vrot.slane %v1468_v1, 4  ;;  %v1475_v8 = vsel %vm1467_vm3, %v810_v62, -inf  ;;  %v1483_v9 = vrot.slane %v1482_v2, 4  ;;  %v1489_v10 = vsel %vm1467_vm3, %v811_v0, -inf  ;;  %v8122_v61 = vld [vmem:[#allocation5 + $0xb0] sm:$0xff]   ;;  %7452 = vmatprep.subr.bf16.mxu1 %v8121_v56 }
 0x118   : > { %v1528_v11 = vmax.f32 %v1526_v59, %v1527_v3  ;;  %v1534_v12 = vrot.slane %v1533_v4, 2  ;;  %v1541_v13 = vrot.slane %v1540_v5, 2  ;;  %v1547_v14 = vmax.f32 %v1545_v63, %v1546_v6  ;;  %7500 = vmatprep.subr.bf16.mxu0 %v8122_v61  ;;  %7453 = vmatpush3.bf16.msra.mxu1 %v8121_v56 }
 0x119   : > { %v1470_v15 = vmax.f32 %v1468_v1, %v1469_v7  ;;  %v1476_v16 = vrot.slane %v1475_v8, 4  ;;  %v1484_v17 = vmax.f32 %v1482_v2, %v1483_v9  ;;  %v1490_v18 = vrot.slane %v1489_v10, 4  ;;  %v7424_v1 = vpop.f32.mrf.mxu0  ;;  %7501 = vmatpush3.bf16.msra.mxu0 %v8122_v61 }
 0x11a   : > { %v1529_v19 = vrot.slane %v1528_v11, 1  ;;  %v1535_v20 = vmax.f32 %v1533_v4, %v1534_v12  ;;  %v1542_v21 = vmax.f32 %v1540_v5, %v1541_v13  ;;  %v1548_v22 = vrot.slane %v1547_v14, 2 }
 0x11b   : > { %v1471_v23 = vrot.slane %v1470_v15, 2  ;;  %v1477_v24 = vmax.f32 %v1475_v8, %v1476_v16  ;;  %v1485_v26 = vrot.slane %v1484_v17, 2  ;;  %v1491_v27 = vmax.f32 %v1489_v10, %v1490_v18 }
 0x11c   : > { %v1530_v28 = vmax.f32 %v1528_v11, %v1529_v19  ;;  %v1536_v30 = vrot.slane %v1535_v20, 1  ;;  %v1543_v31 = vrot.slane %v1542_v21, 1  ;;  %v1549_v32 = vmax.f32 %v1547_v14, %v1548_v22 }
 0x11d   : > { %v1472_v34 = vmax.f32 %v1470_v15, %v1471_v23  ;;  %v1478_v35 = vrot.slane %v1477_v24, 2  ;;  %v1486_v36 = vmax.f32 %v1484_v17, %v1485_v26  ;;  %v1492_v37 = vrot.slane %v1491_v27, 2  ;;  %v546_v17 = vpop.f32.mrf.mxu0 }
 0x11e   : > { %v1537_v38 = vmax.f32 %v1535_v20, %v1536_v30  ;;  %v1544_v39 = vmax.f32 %v1542_v21, %v1543_v31  ;;  %v1550_v40 = vrot.slane %v1549_v32, 1  ;;  %v846_v41 = vcombine.high %v734_v53, %v734_v53 }
 0x11f   : > { %v1473_v42 = vrot.slane %v1472_v34, 1  ;;  %v1479_v43 = vmax.f32 %v1477_v24, %v1478_v35  ;;  %v1487_v44 = vrot.slane %v1486_v36, 1  ;;  %v1493_v45 = vmax.f32 %v1491_v27, %v1492_v37  ;;  %v7425_v37 = vpop.f32.mrf.mxu0 }
 0x120   : > { %v8748_v46 = vmax.f32 %v1549_v32, %v1550_v40  ;;  %v853_v47 = vrot.slane %v734_v53, %v8728_v33  ;;  %v860_v48 = vrot.slane %v846_v41, %v8728_v33  ;;  %v732_v49 = vmax.f32 %v700_v54, 0.0 }
 0x121   : > { %v1474_v50 = vmax.f32 %v1472_v34, %v1473_v42  ;;  %v1480_v51 = vrot.slane %v1479_v43, 1  ;;  %v1488_v52 = vmax.f32 %v1486_v36, %v1487_v44  ;;  %v1494_v55 = vrot.slane %v1493_v45, 1  ;;  %v549_v56 = vpop.f32.mrf.mxu0 }
 0x122   : > { %v861_v57 = vcombine.high %v853_v47, %v853_v47  ;;  %v862_v58 = vcombine.high %v860_v48, %v860_v48  ;;  %v1552_v59 = vsel %vm1467_vm3, %v853_v47, -inf  ;;  %v1566_v60 = vsel %vm1467_vm3, %v860_v48, -inf }
 0x123   : > { %v1481_v62 = vmax.f32 %v1479_v43, %v1480_v51  ;;  %v8754_v63 = vmax.f32 %v1493_v45, %v1494_v55  ;;  %v2364_v0 = vmax.f32 %v1474_v50, %v1530_v28  ;;  %v2366_v53 = vmax.f32 %v1488_v52, %v1544_v39 }
 0x124   : > { %v1553_v54 = vrot.slane %v1552_v59, 4  ;;  %v1559_v2 = vsel %vm1467_vm3, %v861_v57, -inf  ;;  %v1567_v3 = vrot.slane %v1566_v60, 4  ;;  %v1573_v4 = vsel %vm1467_vm3, %v862_v58, -inf }
 0x125   : > { %v2365_v5 = vmax.f32 %v1481_v62, %v1537_v38  ;;  %v2367_v6 = vmax.f32 %v8754_v63, %v8748_v46  ;;  %v1560_v7 = vrot.slane %v1559_v2, 4  ;;  %v1574_v8 = vrot.slane %v1573_v4, 4 }
 0x126   : > { %v1554_v9 = vmax.f32 %v1552_v59, %v1553_v54  ;;  %v1568_v10 = vmax.f32 %v1566_v60, %v1567_v3  ;;  %v812_v11 = vcombine.high %v732_v49, %v732_v49  ;;  %v819_v12 = vrot.slane %v732_v49, %v8728_v33  ;;  %v8123_v3 = vld [vmem:[#allocation5 + $0x68] sm:$0xff]  }
 0x127   : > { %v2513_v13 = vsel %vm2512_vm4, %v2365_v5, %v2364_v0  ;;  %v1561_v14 = vmax.f32 %v1559_v2, %v1560_v7  ;;  %v1575_v15 = vmax.f32 %v1573_v4, %v1574_v8  ;;  %v668_v16 = vmul.f32 %v7424_v1, %v8719_v25  ;;  %v8124_v8 = vld [vmem:[#allocation5 + $0xa8] sm:$0xff]   ;;  %7454 = vmatprep.subr.bf16.mxu1 %v8123_v3 }
 0x128   : > { %v2515_v18 = vsel %vm2514_vm5, %v2366_v53, %v2513_v13  ;;  %v1555_v19 = vrot.slane %v1554_v9, 2  ;;  %v1569_v20 = vrot.slane %v1568_v10, 2  ;;  %v826_v21 = vrot.slane %v812_v11, %v8728_v33  ;;  %7502 = vmatprep.subr.bf16.mxu0 %v8124_v8  ;;  %7455 = vmatpush3.bf16.msra.mxu1 %v8123_v3 }
 0x129   : > { %v1562_v22 = vrot.slane %v1561_v14, 2  ;;  %v1576_v23 = vrot.slane %v1575_v15, 2  ;;  %v827_v24 = vcombine.high %v819_v12, %v819_v12  ;;  %v1496_v26 = vsel %vm1467_vm3, %v819_v12, -inf  ;;  %7503 = vmatpush3.bf16.msra.mxu0 %v8124_v8 }
 0x12a   : > { %v1556_v27 = vmax.f32 %v1554_v9, %v1555_v19  ;;  %v1570_v28 = vmax.f32 %v1568_v10, %v1569_v20  ;;  %v828_v30 = vcombine.high %v826_v21, %v826_v21  ;;  %v1497_v31 = vrot.slane %v1496_v26, 4 }
 0x12b   : > { %v1563_v32 = vmax.f32 %v1561_v14, %v1562_v22  ;;  %v1577_v34 = vmax.f32 %v1575_v15, %v1576_v23  ;;  %v1503_v35 = vsel %vm1467_vm3, %v827_v24, -inf  ;;  %v1510_v36 = vsel %vm1467_vm3, %v826_v21, -inf }
 0x12c   : > { %v1557_v38 = vrot.slane %v1556_v27, 1  ;;  %v1571_v39 = vrot.slane %v1570_v28, 1  ;;  %v1498_v40 = vmax.f32 %v1496_v26, %v1497_v31  ;;  %v1504_v41 = vrot.slane %v1503_v35, 4 }
 0x12d   : > { %v1564_v42 = vrot.slane %v1563_v32, 1  ;;  %v1578_v43 = vrot.slane %v1577_v34, 1  ;;  %v1511_v44 = vrot.slane %v1510_v36, 4  ;;  %v1517_v45 = vsel %vm1467_vm3, %v828_v30, -inf }
 0x12e   : > { %v1558_v46 = vmax.f32 %v1556_v27, %v1557_v38  ;;  %v8769_v47 = vmax.f32 %v1570_v28, %v1571_v39  ;;  %v1499_v48 = vrot.slane %v1498_v40, 2  ;;  %v1505_v49 = vmax.f32 %v1503_v35, %v1504_v41 }
 0x12f   : > { %v1565_v50 = vmax.f32 %v1563_v32, %v1564_v42  ;;  %v8771_v51 = vmax.f32 %v1577_v34, %v1578_v43  ;;  %v1512_v52 = vmax.f32 %v1510_v36, %v1511_v44  ;;  %v1518_v55 = vrot.slane %v1517_v45, 4 }
 0x130   : > { %v1500_v57 = vmax.f32 %v1498_v40, %v1499_v48  ;;  %v1506_v58 = vrot.slane %v1505_v49, 2  ;;  %v2517_v59 = vsel %vm2516_vm6, %v2367_v6, %v2515_v18  ;;  %v705_v60 = vadd.f32 %v8724_v29, %v668_v16 }
 0x131   : > { %v1513_v61 = vrot.slane %v1512_v52, 2  ;;  %v1519_v62 = vmax.f32 %v1517_v45, %v1518_v55  ;;  %v666_v63 = vmul.f32 %v8719_v25, %v546_v17  ;;  %v669_v0 = vmul.f32 %v7425_v37, %v8719_v25 }
 0x132   : > { %v1501_v53 = vrot.slane %v1500_v57, 1  ;;  %v1507_v1 = vmax.f32 %v1505_v49, %v1506_v58  ;;  %v737_v54 = vmax.f32 %v705_v60, 0.0  ;;  %v8778_v2 = vmul.f32 %v8719_v25, %v549_v56 }
 0x133   : > { %v1514_v4 = vmax.f32 %v1512_v52, %v1513_v61  ;;  %v1520_v5 = vrot.slane %v1519_v62, 2  ;;  %v703_v6 = vadd.f32 %v8724_v29, %v666_v63  ;;  %v706_v7 = vadd.f32 %v8724_v29, %v669_v0 }
 0x134   : > { %v1502_v9 = vmax.f32 %v1500_v57, %v1501_v53  ;;  %v1508_v10 = vrot.slane %v1507_v1, 1  ;;  %v897_v11 = vcombine.high %v737_v54, %v737_v54  ;;  %v904_v12 = vrot.slane %v737_v54, %v8728_v33 }
 0x135   : > { %v1515_v13 = vrot.slane %v1514_v4, 1  ;;  %v1521_v14 = vmax.f32 %v1519_v62, %v1520_v5  ;;  %v735_v15 = vmax.f32 %v703_v6, 0.0  ;;  %v8783_v16 = vmax.f32 %v706_v7, 0.0 }
 0x136   : > { %v1509_v17 = vmax.f32 %v1507_v1, %v1508_v10  ;;  %v2368_v18 = vmax.f32 %v1502_v9, %v1558_v46  ;;  %v911_v19 = vrot.slane %v897_v11, %v8728_v33  ;;  %v912_v20 = vcombine.high %v904_v12, %v904_v12 }
 0x137   : > { %v1516_v21 = vmax.f32 %v1514_v4, %v1515_v13  ;;  %v1522_v22 = vrot.slane %v1521_v14, 1  ;;  %v1636_v23 = vsel %vm1467_vm3, %v904_v12, -inf  ;;  %v863_v24 = vcombine.high %v735_v15, %v735_v15 }
 0x138   : > { %v2369_v26 = vmax.f32 %v1509_v17, %v1565_v50  ;;  %v2519_v27 = vsel %vm2518_vm7, %v2368_v18, %v2517_v59  ;;  %v913_v28 = vcombine.high %v911_v19, %v911_v19  ;;  %v1637_v30 = vrot.slane %v1636_v23, 4 }
 0x139   : > { %v1523_v31 = vmax.f32 %v1521_v14, %v1522_v22  ;;  %v2370_v32 = vmax.f32 %v1516_v21, %v8769_v47  ;;  %v1643_v34 = vsel %vm1467_vm3, %v912_v20, -inf  ;;  %v1650_v35 = vsel %vm1467_vm3, %v911_v19, -inf }
 0x13a   : > { %v2521_v36 = vsel %vm2520_vm8, %v2369_v26, %v2519_v27  ;;  %v1638_v37 = vmax.f32 %v1636_v23, %v1637_v30  ;;  %v1644_v38 = vrot.slane %v1643_v34, 4  ;;  %v1651_v39 = vrot.slane %v1650_v35, 4 }
 0x13b   : > { %v2371_v40 = vmax.f32 %v1523_v31, %v8771_v51  ;;  %v2523_v41 = vsel %vm2522_vm9, %v2370_v32, %v2521_v36  ;;  %v1657_v42 = vsel %vm1467_vm3, %v913_v28, -inf  ;;  %v870_v43 = vrot.slane %v735_v15, %v8728_v33 }
 0x13c   : > { %v1639_v44 = vrot.slane %v1638_v37, 2  ;;  %v1645_v45 = vmax.f32 %v1643_v34, %v1644_v38  ;;  %v1652_v46 = vmax.f32 %v1650_v35, %v1651_v39  ;;  %v1658_v47 = vrot.slane %v1657_v42, 4 }
 0x13d   : > { %v2525_v48 = vsel %vm2524_vm10, %v2371_v40, %v2523_v41  ;;  %v877_v49 = vrot.slane %v863_v24, %v8728_v33  ;;  %v878_v50 = vcombine.high %v870_v43, %v870_v43  ;;  %v1580_v52 = vsel %vm1467_vm3, %v870_v43, -inf  ;;  %v7428_v43 = vpop.f32.mrf.mxu0 }
 0x13e   : > { %2584 = vst [vmem:[#allocation2 + $0x11] sm:$0xff] %v2525_v48  ;;  %v1640_v55 = vmax.f32 %v1638_v37, %v1639_v44  ;;  %v1646_v51 = vrot.slane %v1645_v45, 2  ;;  %v1653_v56 = vrot.slane %v1652_v46, 2  ;;  %v1659_v57 = vmax.f32 %v1657_v42, %v1658_v47 }
 0x13f   : > { %v879_v58 = vcombine.high %v877_v49, %v877_v49  ;;  %v1581_v59 = vrot.slane %v1580_v52, 4  ;;  %v1587_v60 = vsel %vm1467_vm3, %v878_v50, -inf  ;;  %v1594_v61 = vsel %vm1467_vm3, %v877_v49, -inf }
 0x140   : > { %v1641_v62 = vrot.slane %v1640_v55, 1  ;;  %v1647_v63 = vmax.f32 %v1645_v45, %v1646_v51  ;;  %v1654_v0 = vmax.f32 %v1652_v46, %v1653_v56  ;;  %v1660_v53 = vrot.slane %v1659_v57, 2 }
 0x141   : > { %v1582_v1 = vmax.f32 %v1580_v52, %v1581_v59  ;;  %v1588_v54 = vrot.slane %v1587_v60, 4  ;;  %v1595_v3 = vrot.slane %v1594_v61, 4  ;;  %v1601_v4 = vsel %vm1467_vm3, %v879_v58, -inf  ;;  %v8126_v59 = vld [vmem:[#allocation5 + $0xa0] sm:$0xff]  }
 0x142   : > { %v1642_v5 = vmax.f32 %v1640_v55, %v1641_v62  ;;  %v1648_v6 = vrot.slane %v1647_v63, 1  ;;  %v1655_v7 = vrot.slane %v1654_v0, 1  ;;  %v1661_v8 = vmax.f32 %v1659_v57, %v1660_v53  ;;  %v8125_v55 = vld [vmem:[#allocation5 + $0x60] sm:$0xff]   ;;  %7504 = vmatprep.subr.bf16.mxu0 %v8126_v59 }
 0x143   : > { %v1583_v9 = vrot.slane %v1582_v1, 2  ;;  %v1589_v10 = vmax.f32 %v1587_v60, %v1588_v54  ;;  %v1596_v11 = vmax.f32 %v1594_v61, %v1595_v3  ;;  %v1602_v12 = vrot.slane %v1601_v4, 4  ;;  %7456 = vmatprep.subr.bf16.mxu1 %v8125_v55  ;;  %7505 = vmatpush3.bf16.msra.mxu0 %v8126_v59 }
 0x144   : > { %v1649_v13 = vmax.f32 %v1647_v63, %v1648_v6  ;;  %v1656_v14 = vmax.f32 %v1654_v0, %v1655_v7  ;;  %v1662_v15 = vrot.slane %v1661_v8, 1  ;;  %v914_v17 = vcombine.high %v8783_v16, %v8783_v16  ;;  %v562_v0 = vpop.f32.mrf.mxu0  ;;  %7457 = vmatpush3.bf16.msra.mxu1 %v8125_v55 }
 0x145   : > { %v1584_v18 = vmax.f32 %v1582_v1, %v1583_v9  ;;  %v1590_v19 = vrot.slane %v1589_v10, 2  ;;  %v1597_v20 = vrot.slane %v1596_v11, 2  ;;  %v1603_v21 = vmax.f32 %v1601_v4, %v1602_v12 }
 0x146   : > { %v8804_v22 = vmax.f32 %v1661_v8, %v1662_v15  ;;  %v921_v23 = vrot.slane %v8783_v16, %v8728_v33  ;;  %v928_v24 = vrot.slane %v914_v17, %v8728_v33  ;;  %v704_v26 = vadd.f32 %v8724_v29, %v8778_v2  ;;  %v7429_v17 = vpop.f32.mrf.mxu0 }
 0x147   : > { %v1585_v27 = vrot.slane %v1584_v18, 1  ;;  %v1591_v28 = vmax.f32 %v1589_v10, %v1590_v19  ;;  %v1598_v30 = vmax.f32 %v1596_v11, %v1597_v20  ;;  %v1604_v31 = vrot.slane %v1603_v21, 2 }
 0x148   : > { %v929_v32 = vcombine.high %v921_v23, %v921_v23  ;;  %v930_v34 = vcombine.high %v928_v24, %v928_v24  ;;  %v1664_v35 = vsel %vm1467_vm3, %v921_v23, -inf  ;;  %v1678_v36 = vsel %vm1467_vm3, %v928_v24, -inf }
 0x149   : > { %v1586_v37 = vmax.f32 %v1584_v18, %v1585_v27  ;;  %v1592_v38 = vrot.slane %v1591_v28, 1  ;;  %v1599_v39 = vrot.slane %v1598_v30, 1  ;;  %v1605_v40 = vmax.f32 %v1603_v21, %v1604_v31 }
 0x14a   : > { %v1665_v16 = vrot.slane %v1664_v35, 4  ;;  %v1671_v41 = vsel %vm1467_vm3, %v929_v32, -inf  ;;  %v1679_v42 = vrot.slane %v1678_v36, 4  ;;  %v1685_v2 = vsel %vm1467_vm3, %v930_v34, -inf }
 0x14b   : > { %v1593_v44 = vmax.f32 %v1591_v28, %v1592_v38  ;;  %v1600_v45 = vmax.f32 %v1598_v30, %v1599_v39  ;;  %v1606_v46 = vrot.slane %v1605_v40, 1  ;;  %v2372_v47 = vmax.f32 %v1586_v37, %v1642_v5  ;;  %v565_v37 = vpop.f32.mrf.mxu0 }
 0x14c   : > { %v1666_v48 = vmax.f32 %v1664_v35, %v1665_v16  ;;  %v1672_v49 = vrot.slane %v1671_v41, 4  ;;  %v1680_v50 = vmax.f32 %v1678_v36, %v1679_v42  ;;  %v1686_v52 = vrot.slane %v1685_v2, 4 }
 0x14d   : > { %v1607_v51 = vmax.f32 %v1605_v40, %v1606_v46  ;;  %v2373_v56 = vmax.f32 %v1593_v44, %v1649_v13  ;;  %v2374_v57 = vmax.f32 %v1600_v45, %v1656_v14  ;;  %v736_v58 = vmax.f32 %v704_v26, 0.0 }
 0x14e   : > { %v1667_v60 = vrot.slane %v1666_v48, 2  ;;  %v1673_v61 = vmax.f32 %v1671_v41, %v1672_v49  ;;  %v1681_v62 = vrot.slane %v1680_v50, 2  ;;  %v1687_v63 = vmax.f32 %v1685_v2, %v1686_v52 }
 0x14f   : > { %v2375_v53 = vmax.f32 %v1607_v51, %v8804_v22  ;;  %v2526_v1 = vsel %vm2512_vm4, %v2373_v56, %v2372_v47  ;;  %v880_v54 = vcombine.high %v736_v58, %v736_v58  ;;  %v887_v3 = vrot.slane %v736_v58, %v8728_v33 }
 0x150   : > { %v2527_v4 = vsel %vm2514_vm5, %v2374_v57, %v2526_v1  ;;  %v1668_v5 = vmax.f32 %v1666_v48, %v1667_v60  ;;  %v1674_v6 = vrot.slane %v1673_v61, 2  ;;  %v1682_v7 = vmax.f32 %v1680_v50, %v1681_v62  ;;  %v8127_v1 = vld [vmem:[#allocation5 + $0x58] sm:$0xff]  }
 0x151   : > { %v1688_v8 = vrot.slane %v1687_v63, 2  ;;  %v894_v9 = vrot.slane %v880_v54, %v8728_v33  ;;  %v895_v10 = vcombine.high %v887_v3, %v887_v3  ;;  %v1608_v11 = vsel %vm1467_vm3, %v887_v3, -inf  ;;  %7458 = vmatprep.subr.bf16.mxu1 %v8127_v1 }
 0x152   : > { %v1669_v12 = vrot.slane %v1668_v5, 1  ;;  %v1675_v13 = vmax.f32 %v1673_v61, %v1674_v6  ;;  %v1683_v14 = vrot.slane %v1682_v7, 1  ;;  %v1609_v15 = vrot.slane %v1608_v11, 4  ;;  %v8128_v6 = vld [vmem:[#allocation5 + $0x98] sm:$0xff]   ;;  %7459 = vmatpush3.bf16.msra.mxu1 %v8127_v1 }
 0x153   : > { %v1689_v18 = vmax.f32 %v1687_v63, %v1688_v8  ;;  %v896_v19 = vcombine.high %v894_v9, %v894_v9  ;;  %v1615_v20 = vsel %vm1467_vm3, %v895_v10, -inf  ;;  %v1622_v21 = vsel %vm1467_vm3, %v894_v9, -inf  ;;  %7506 = vmatprep.subr.bf16.mxu0 %v8128_v6 }
 0x154   : > { %v1670_v22 = vmax.f32 %v1668_v5, %v1669_v12  ;;  %v1676_v23 = vrot.slane %v1675_v13, 1  ;;  %v8823_v24 = vmax.f32 %v1682_v7, %v1683_v14  ;;  %v1610_v26 = vmax.f32 %v1608_v11, %v1609_v15  ;;  %7507 = vmatpush3.bf16.msra.mxu0 %v8128_v6 }
 0x155   : > { %v1690_v27 = vrot.slane %v1689_v18, 1  ;;  %v1616_v28 = vrot.slane %v1615_v20, 4  ;;  %v1623_v30 = vrot.slane %v1622_v21, 4  ;;  %v1629_v31 = vsel %vm1467_vm3, %v896_v19, -inf }
 0x156   : > { %v1677_v32 = vmax.f32 %v1675_v13, %v1676_v23  ;;  %v1611_v34 = vrot.slane %v1610_v26, 2  ;;  %v1630_v35 = vrot.slane %v1629_v31, 4  ;;  %v2528_v36 = vsel %vm2516_vm6, %v2375_v53, %v2527_v4 }
 0x157   : > { %v8827_v38 = vmax.f32 %v1689_v18, %v1690_v27  ;;  %v1617_v39 = vmax.f32 %v1615_v20, %v1616_v28  ;;  %v1624_v40 = vmax.f32 %v1622_v21, %v1623_v30  ;;  %v672_v16 = vmul.f32 %v7428_v43, %v8719_v25 }
 0x158   : > { %v1612_v41 = vmax.f32 %v1610_v26, %v1611_v34  ;;  %v1631_v42 = vmax.f32 %v1629_v31, %v1630_v35  ;;  %v670_v2 = vmul.f32 %v8719_v25, %v562_v0  ;;  %v673_v44 = vmul.f32 %v7429_v17, %v8719_v25 }
 0x159   : > { %v1618_v45 = vrot.slane %v1617_v39, 2  ;;  %v1625_v46 = vrot.slane %v1624_v40, 2  ;;  %v709_v47 = vadd.f32 %v8724_v29, %v672_v16  ;;  %v671_v48 = vmul.f32 %v8719_v25, %v565_v37 }
 0x15a   : > { %v1613_v49 = vrot.slane %v1612_v41, 1  ;;  %v1632_v50 = vrot.slane %v1631_v42, 2  ;;  %v707_v52 = vadd.f32 %v8724_v29, %v670_v2  ;;  %v710_v55 = vadd.f32 %v8724_v29, %v673_v44 }
 0x15b   : > { %v1619_v51 = vmax.f32 %v1617_v39, %v1618_v45  ;;  %v1626_v43 = vmax.f32 %v1624_v40, %v1625_v46  ;;  %v741_v56 = vmax.f32 %v709_v47, 0.0  ;;  %v8837_v57 = vadd.f32 %v8724_v29, %v671_v48 }
 0x15c   : > { %v1614_v58 = vmax.f32 %v1612_v41, %v1613_v49  ;;  %v1633_v59 = vmax.f32 %v1631_v42, %v1632_v50  ;;  %v739_v60 = vmax.f32 %v707_v52, 0.0  ;;  %v8839_v61 = vmax.f32 %v710_v55, 0.0 }
 0x15d   : > { %v1620_v62 = vrot.slane %v1619_v51, 1  ;;  %v1627_v63 = vrot.slane %v1626_v43, 1  ;;  %v965_v0 = vcombine.high %v741_v56, %v741_v56  ;;  %v972_v53 = vrot.slane %v741_v56, %v8728_v33 }
 0x15e   : > { %v1634_v54 = vrot.slane %v1633_v59, 1  ;;  %v2376_v3 = vmax.f32 %v1614_v58, %v1670_v22  ;;  %v931_v4 = vcombine.high %v739_v60, %v739_v60  ;;  %v938_v5 = vrot.slane %v739_v60, %v8728_v33 }
 0x15f   : > { %v1621_v7 = vmax.f32 %v1619_v51, %v1620_v62  ;;  %v1628_v29 = vmax.f32 %v1626_v43, %v1627_v63  ;;  %v979_v8 = vrot.slane %v965_v0, %v8728_v33  ;;  %v980_v9 = vcombine.high %v972_v53, %v972_v53 }
 0x160   : > { %v1635_v10 = vmax.f32 %v1633_v59, %v1634_v54  ;;  %v2529_v11 = vsel %vm2518_vm7, %v2376_v3, %v2528_v36  ;;  %v1748_v12 = vsel %vm1467_vm3, %v972_v53, -inf  ;;  %v945_v13 = vrot.slane %v931_v4, %v8728_v33 }
 0x161   : > { %v2377_v14 = vmax.f32 %v1621_v7, %v1677_v32  ;;  %v2378_v15 = vmax.f32 %v1628_v29, %v8823_v24  ;;  %v981_v17 = vcombine.high %v979_v8, %v979_v8  ;;  %v1749_v18 = vrot.slane %v1748_v12, 4 }
 0x162   : > { %v2379_v19 = vmax.f32 %v1635_v10, %v8827_v38  ;;  %v1755_v20 = vsel %vm1467_vm3, %v980_v9, -inf  ;;  %v1762_v21 = vsel %vm1467_vm3, %v979_v8, -inf  ;;  %v946_v22 = vcombine.high %v938_v5, %v938_v5 }
 0x163   : > { %v2530_v23 = vsel %vm2520_vm8, %v2377_v14, %v2529_v11  ;;  %v1750_v26 = vmax.f32 %v1748_v12, %v1749_v18  ;;  %v1756_v27 = vrot.slane %v1755_v20, 4  ;;  %v1763_v28 = vrot.slane %v1762_v21, 4 }
 0x164   : > { %v2531_v30 = vsel %vm2522_vm9, %v2378_v15, %v2530_v23  ;;  %v1769_v31 = vsel %vm1467_vm3, %v981_v17, -inf  ;;  %v947_v24 = vcombine.high %v945_v13, %v945_v13  ;;  %v1692_v32 = vsel %vm1467_vm3, %v938_v5, -inf  ;;  %v8129_v23 = vld [vmem:[#allocation5 + $0x50] sm:$0xff]  }
 0x165   : > { %v2532_v34 = vsel %vm2524_vm10, %v2379_v19, %v2531_v30  ;;  %v1751_v35 = vrot.slane %v1750_v26, 2  ;;  %v1757_v36 = vmax.f32 %v1755_v20, %v1756_v27  ;;  %v1764_v37 = vmax.f32 %v1762_v21, %v1763_v28  ;;  %7460 = vmatprep.subr.bf16.mxu1 %v8129_v23 }
 0x166   : > { %2585 = vst [vmem:[#allocation2 + $0x21] sm:$0xff] %v2532_v34  ;;  %v1770_v38 = vrot.slane %v1769_v31, 4  ;;  %v1693_v39 = vrot.slane %v1692_v32, 4  ;;  %v1699_v40 = vsel %vm1467_vm3, %v946_v22, -inf  ;;  %v1706_v16 = vsel %vm1467_vm3, %v945_v13, -inf  ;;  %7461 = vmatpush3.bf16.msra.mxu1 %v8129_v23 }
 0x167   : > { %v1752_v41 = vmax.f32 %v1750_v26, %v1751_v35  ;;  %v1758_v42 = vrot.slane %v1757_v36, 2  ;;  %v1765_v2 = vrot.slane %v1764_v37, 2  ;;  %v1700_v44 = vrot.slane %v1699_v40, 4 }
 0x168   : > { %v1771_v45 = vmax.f32 %v1769_v31, %v1770_v38  ;;  %v1694_v46 = vmax.f32 %v1692_v32, %v1693_v39  ;;  %v1707_v47 = vrot.slane %v1706_v16, 4  ;;  %v1713_v48 = vsel %vm1467_vm3, %v947_v24, -inf  ;;  %v7432_v31 = vpop.f32.mrf.mxu0 }
 0x169   : > { %v1753_v49 = vrot.slane %v1752_v41, 1  ;;  %v1759_v50 = vmax.f32 %v1757_v36, %v1758_v42  ;;  %v1766_v52 = vmax.f32 %v1764_v37, %v1765_v2  ;;  %v1701_v55 = vmax.f32 %v1699_v40, %v1700_v44 }
 0x16a   : > { %v1772_v51 = vrot.slane %v1771_v45, 2  ;;  %v1695_v43 = vrot.slane %v1694_v46, 2  ;;  %v1708_v56 = vmax.f32 %v1706_v16, %v1707_v47  ;;  %v1714_v58 = vrot.slane %v1713_v48, 4 }
 0x16b   : > { %v1754_v59 = vmax.f32 %v1752_v41, %v1753_v49  ;;  %v1760_v60 = vrot.slane %v1759_v50, 1  ;;  %v1767_v62 = vrot.slane %v1766_v52, 1  ;;  %v1702_v63 = vrot.slane %v1701_v55, 2 }
 0x16c   : > { %v1773_v0 = vmax.f32 %v1771_v45, %v1772_v51  ;;  %v1696_v53 = vmax.f32 %v1694_v46, %v1695_v43  ;;  %v1709_v1 = vrot.slane %v1708_v56, 2  ;;  %v1715_v54 = vmax.f32 %v1713_v48, %v1714_v58  ;;  %v578_v46 = vpop.f32.mrf.mxu0 }
 0x16d   : > { %v1761_v3 = vmax.f32 %v1759_v50, %v1760_v60  ;;  %v1768_v4 = vmax.f32 %v1766_v52, %v1767_v62  ;;  %v1703_v5 = vmax.f32 %v1701_v55, %v1702_v63  ;;  %v982_v6 = vcombine.high %v8839_v61, %v8839_v61 }
 0x16e   : > { %v1774_v7 = vrot.slane %v1773_v0, 1  ;;  %v1697_v29 = vrot.slane %v1696_v53, 1  ;;  %v1710_v8 = vmax.f32 %v1708_v56, %v1709_v1  ;;  %v1716_v9 = vrot.slane %v1715_v54, 2  ;;  %v7433_v1 = vpop.f32.mrf.mxu0 }
 0x16f   : > { %v1704_v10 = vrot.slane %v1703_v5, 1  ;;  %v989_v11 = vrot.slane %v8839_v61, %v8728_v33  ;;  %v996_v12 = vrot.slane %v982_v6, %v8728_v33  ;;  %v740_v13 = vmax.f32 %v8837_v57, 0.0  ;;  %v8130_v61 = vld [vmem:[#allocation5 + $0x90] sm:$0xff]  }
 0x170   : > { %v1775_v14 = vmax.f32 %v1773_v0, %v1774_v7  ;;  %v1698_v15 = vmax.f32 %v1696_v53, %v1697_v29  ;;  %v1711_v17 = vrot.slane %v1710_v8, 1  ;;  %v1717_v18 = vmax.f32 %v1715_v54, %v1716_v9  ;;  %7508 = vmatprep.subr.bf16.mxu0 %v8130_v61 }
 0x171   : > { %v1705_v19 = vmax.f32 %v1703_v5, %v1704_v10  ;;  %v997_v20 = vcombine.high %v989_v11, %v989_v11  ;;  %v998_v21 = vcombine.high %v996_v12, %v996_v12  ;;  %v1776_v22 = vsel %vm1467_vm3, %v989_v11, -inf  ;;  %7509 = vmatpush3.bf16.msra.mxu0 %v8130_v61 }
 0x172   : > { %v1712_v26 = vmax.f32 %v1710_v8, %v1711_v17  ;;  %v1718_v27 = vrot.slane %v1717_v18, 1  ;;  %v2380_v28 = vmax.f32 %v1698_v15, %v1754_v59  ;;  %v1777_v30 = vrot.slane %v1776_v22, 4  ;;  %v581_v17 = vpop.f32.mrf.mxu0 }
 0x173   : > { %v2381_v24 = vmax.f32 %v1705_v19, %v1761_v3  ;;  %v1783_v32 = vsel %vm1467_vm3, %v997_v20, -inf  ;;  %v1790_v57 = vsel %vm1467_vm3, %v996_v12, -inf  ;;  %v1797_v34 = vsel %vm1467_vm3, %v998_v21, -inf  ;;  %v8886_v21 = vld [vmem:[%s9834_s6] ss:$0 sm:$0xff] }
 0x174   : > { %v1719_v35 = vmax.f32 %v1717_v18, %v1718_v27  ;;  %v2382_v36 = vmax.f32 %v1712_v26, %v1768_v4  ;;  %v1778_v37 = vmax.f32 %v1776_v22, %v1777_v30  ;;  %v1784_v38 = vrot.slane %v1783_v32, 4 }
 0x175   : > { %v2533_v39 = vsel %vm2512_vm4, %v2381_v24, %v2380_v28  ;;  %v1791_v40 = vrot.slane %v1790_v57, 4  ;;  %v1798_v16 = vrot.slane %v1797_v34, 4  ;;  %v948_v41 = vcombine.high %v740_v13, %v740_v13  ;;  %v8892_v28 = vld [vmem:[%s9833_s5] ss:$0 sm:$0xff] }
 0x176   : > { %v2383_v42 = vmax.f32 %v1719_v35, %v1775_v14  ;;  %v2534_v2 = vsel %vm2514_vm5, %v2382_v36, %v2533_v39  ;;  %v1779_v44 = vrot.slane %v1778_v37, 2  ;;  %v1785_v45 = vmax.f32 %v1783_v32, %v1784_v38 }
 0x177   : > { %v1792_v47 = vmax.f32 %v1790_v57, %v1791_v40  ;;  %v1799_v48 = vmax.f32 %v1797_v34, %v1798_v16  ;;  %v955_v49 = vrot.slane %v740_v13, %v8728_v33  ;;  %v962_v50 = vrot.slane %v948_v41, %v8728_v33  ;;  %v8131_v16 = vld [vmem:[#allocation5 + $0x48] sm:$0xff]  }
 0x178   : > { %v1780_v52 = vmax.f32 %v1778_v37, %v1779_v44  ;;  %v1786_v55 = vrot.slane %v1785_v45, 2  ;;  %v8874_v51 = vsel %vm2516_vm6, %v2383_v42, %v2534_v2  ;;  %v676_v43 = vmul.f32 %v7432_v31, %v8719_v25  ;;  %7462 = vmatprep.subr.bf16.mxu1 %v8131_v16 }
 0x179   : > { %v1793_v56 = vrot.slane %v1792_v47, 2  ;;  %v1800_v58 = vrot.slane %v1799_v48, 2  ;;  %v963_v59 = vcombine.high %v955_v49, %v955_v49  ;;  %v964_v60 = vcombine.high %v962_v50, %v962_v50  ;;  %7463 = vmatpush3.bf16.msra.mxu1 %v8131_v16 }
 0x17a   : > { %v1781_v62 = vrot.slane %v1780_v52, 1  ;;  %v1787_v63 = vmax.f32 %v1785_v45, %v1786_v55  ;;  %v1720_v0 = vsel %vm1467_vm3, %v955_v49, -inf  ;;  %v1734_v53 = vsel %vm1467_vm3, %v962_v50, -inf  ;;  %v8132_v45 = vld [vmem:[#allocation5 + $0x88] sm:$0xff]  }
 0x17b   : > { %v1794_v54 = vmax.f32 %v1792_v47, %v1793_v56  ;;  %v1801_v3 = vmax.f32 %v1799_v48, %v1800_v58  ;;  %v1721_v4 = vrot.slane %v1720_v0, 4  ;;  %v1727_v5 = vsel %vm1467_vm3, %v963_v59, -inf  ;;  %7510 = vmatprep.subr.bf16.mxu0 %v8132_v45 }
 0x17c   : > { %v8880_v6 = vmax.f32 %v1780_v52, %v1781_v62  ;;  %v1788_v7 = vrot.slane %v1787_v63, 1  ;;  %v1728_v25 = vrot.slane %v1727_v5, 4  ;;  %v1735_v29 = vrot.slane %v1734_v53, 4  ;;  %7511 = vmatpush3.bf16.msra.mxu0 %v8132_v45 }
 0x17d   : > { %v1795_v8 = vrot.slane %v1794_v54, 1  ;;  %v1802_v9 = vrot.slane %v1801_v3, 1  ;;  %v1722_v10 = vmax.f32 %v1720_v0, %v1721_v4  ;;  %v1741_v11 = vsel %vm1467_vm3, %v964_v60, -inf }
 0x17e   : > { %v1789_v12 = vmax.f32 %v1787_v63, %v1788_v7  ;;  %v1729_v13 = vmax.f32 %v1727_v5, %v1728_v25  ;;  %v1736_v14 = vmax.f32 %v1734_v53, %v1735_v29  ;;  %v1742_v15 = vrot.slane %v1741_v11, 4 }
 0x17f   : > { %v1796_v18 = vmax.f32 %v1794_v54, %v1795_v8  ;;  %v1803_v19 = vmax.f32 %v1801_v3, %v1802_v9  ;;  %v1723_v20 = vrot.slane %v1722_v10, 2  ;;  %v713_v22 = vadd.f32 %v8886_v21, %v676_v43 }
 0x180   : > { %v1730_v23 = vrot.slane %v1729_v13, 2  ;;  %v1737_v26 = vrot.slane %v1736_v14, 2  ;;  %v1743_v27 = vmax.f32 %v1741_v11, %v1742_v15  ;;  %v674_v30 = vmul.f32 %v8892_v28, %v578_v46 }
 0x181   : > { %v1724_v31 = vmax.f32 %v1722_v10, %v1723_v20  ;;  %v745_v61 = vmax.f32 %v713_v22, 0.0  ;;  %v677_v24 = vmul.f32 %v8892_v28, %v7433_v1  ;;  %v8897_v32 = vmul.f32 %v8892_v28, %v581_v17 }
 0x182   : > { %v1731_v57 = vmax.f32 %v1729_v13, %v1730_v23  ;;  %v1738_v34 = vmax.f32 %v1736_v14, %v1737_v26  ;;  %v1744_v35 = vrot.slane %v1743_v27, 2  ;;  %v711_v36 = vadd.f32 %v8886_v21, %v674_v30 }
 0x183   : > { %v1725_v37 = vrot.slane %v1724_v31, 1  ;;  %v1033_v38 = vcombine.high %v745_v61, %v745_v61  ;;  %v1040_v39 = vrot.slane %v745_v61, %v8728_v33  ;;  %v714_v40 = vadd.f32 %v8886_v21, %v677_v24 }
 0x184   : > { %v1732_v41 = vrot.slane %v1731_v57, 1  ;;  %v1739_v42 = vrot.slane %v1738_v34, 1  ;;  %v1745_v2 = vmax.f32 %v1743_v27, %v1744_v35  ;;  %v743_v44 = vmax.f32 %v711_v36, 0.0 }
 0x185   : > { %v1726_v46 = vmax.f32 %v1724_v31, %v1725_v37  ;;  %v1047_v47 = vrot.slane %v1033_v38, %v8728_v33  ;;  %v1048_v48 = vcombine.high %v1040_v39, %v1040_v39  ;;  %v1860_v49 = vsel %vm1467_vm3, %v1040_v39, -inf }
 0x186   : > { %v1733_v50 = vmax.f32 %v1731_v57, %v1732_v41  ;;  %v1740_v52 = vmax.f32 %v1738_v34, %v1739_v42  ;;  %v1746_v55 = vrot.slane %v1745_v2, 1  ;;  %v1861_v43 = vrot.slane %v1860_v49, 4 }
 0x187   : > { %v2384_v56 = vmax.f32 %v1726_v46, %v8880_v6  ;;  %v1049_v58 = vcombine.high %v1047_v47, %v1047_v47  ;;  %v1867_v59 = vsel %vm1467_vm3, %v1048_v48, -inf  ;;  %v1874_v60 = vsel %vm1467_vm3, %v1047_v47, -inf }
 0x188   : > { %v1747_v62 = vmax.f32 %v1745_v2, %v1746_v55  ;;  %v2385_v63 = vmax.f32 %v1733_v50, %v1789_v12  ;;  %v2386_v0 = vmax.f32 %v1740_v52, %v1796_v18  ;;  %v1862_v53 = vmax.f32 %v1860_v49, %v1861_v43  ;;  %v8133_v50 = vld [vmem:[#allocation5 + $0x40] sm:$0xff]  }
 0x189   : > { %v2536_v1 = vsel %vm2518_vm7, %v2384_v56, %v8874_v51  ;;  %v1868_v54 = vrot.slane %v1867_v59, 4  ;;  %v1875_v3 = vrot.slane %v1874_v60, 4  ;;  %v1881_v4 = vsel %vm1467_vm3, %v1049_v58, -inf  ;;  %v8134_v58 = vld [vmem:[#allocation5 + $0x80] sm:$0xff]   ;;  %7464 = vmatprep.subr.bf16.mxu1 %v8133_v50 }
 0x18a   : > { %v2387_v5 = vmax.f32 %v1747_v62, %v1803_v19  ;;  %v2537_v6 = vsel %vm2520_vm8, %v2385_v63, %v2536_v1  ;;  %v1863_v7 = vrot.slane %v1862_v53, 2  ;;  %v1882_v25 = vrot.slane %v1881_v4, 4  ;;  %7512 = vmatprep.subr.bf16.mxu0 %v8134_v58  ;;  %7465 = vmatpush3.bf16.msra.mxu1 %v8133_v50 }
 0x18b   : > { %v2538_v29 = vsel %vm2522_vm9, %v2386_v0, %v2537_v6  ;;  %v1869_v8 = vmax.f32 %v1867_v59, %v1868_v54  ;;  %v1876_v9 = vmax.f32 %v1874_v60, %v1875_v3  ;;  %v999_v10 = vcombine.high %v743_v44, %v743_v44  ;;  %7513 = vmatpush3.bf16.msra.mxu0 %v8134_v58 }
 0x18c   : > { %v2539_v11 = vsel %vm2524_vm10, %v2387_v5, %v2538_v29  ;;  %v1864_v12 = vmax.f32 %v1862_v53, %v1863_v7  ;;  %v1883_v13 = vmax.f32 %v1881_v4, %v1882_v25  ;;  %v1006_v51 = vrot.slane %v743_v44, %v8728_v33 }
 0x18d   : > { %2586 = vst [vmem:[#allocation2 + $0x31] sm:$0xff] %v2539_v11  ;;  %v1870_v14 = vrot.slane %v1869_v8, 2  ;;  %v1877_v15 = vrot.slane %v1876_v9, 2  ;;  %v1013_v17 = vrot.slane %v999_v10, %v8728_v33  ;;  %v746_v18 = vmax.f32 %v714_v40, 0.0 }
 0x18e   : > { %v1865_v19 = vrot.slane %v1864_v12, 1  ;;  %v1884_v20 = vrot.slane %v1883_v13, 2  ;;  %v1014_v22 = vcombine.high %v1006_v51, %v1006_v51  ;;  %v1804_v23 = vsel %vm1467_vm3, %v1006_v51, -inf }
 0x18f   : > { %v1871_v26 = vmax.f32 %v1869_v8, %v1870_v14  ;;  %v1878_v27 = vmax.f32 %v1876_v9, %v1877_v15  ;;  %v1015_v30 = vcombine.high %v1013_v17, %v1013_v17  ;;  %v1805_v31 = vrot.slane %v1804_v23, 4  ;;  %v7436_v8 = vpop.f32.mrf.mxu0 }
 0x190   : > { %v8916_v61 = vmax.f32 %v1864_v12, %v1865_v19  ;;  %v1885_v24 = vmax.f32 %v1883_v13, %v1884_v20  ;;  %v1811_v57 = vsel %vm1467_vm3, %v1014_v22, -inf  ;;  %v1818_v34 = vsel %vm1467_vm3, %v1013_v17, -inf }
 0x191   : > { %v1872_v35 = vrot.slane %v1871_v26, 1  ;;  %v1879_v36 = vrot.slane %v1878_v27, 1  ;;  %v1806_v37 = vmax.f32 %v1804_v23, %v1805_v31  ;;  %v1812_v38 = vrot.slane %v1811_v57, 4 }
 0x192   : > { %v1886_v39 = vrot.slane %v1885_v24, 1  ;;  %v1819_v40 = vrot.slane %v1818_v34, 4  ;;  %v1825_v16 = vsel %vm1467_vm3, %v1015_v30, -inf  ;;  %v1050_v41 = vcombine.high %v746_v18, %v746_v18  ;;  %v594_v30 = vpop.f32.mrf.mxu0 }
 0x193   : > { %v1873_v42 = vmax.f32 %v1871_v26, %v1872_v35  ;;  %v1880_v2 = vmax.f32 %v1878_v27, %v1879_v36  ;;  %v1807_v44 = vrot.slane %v1806_v37, 2  ;;  %v1813_v45 = vmax.f32 %v1811_v57, %v1812_v38 }
 0x194   : > { %v8921_v46 = vmax.f32 %v1885_v24, %v1886_v39  ;;  %v1820_v47 = vmax.f32 %v1818_v34, %v1819_v40  ;;  %v1826_v48 = vrot.slane %v1825_v16, 4  ;;  %v1057_v49 = vrot.slane %v746_v18, %v8728_v33 }
 0x195   : > { %v1808_v52 = vmax.f32 %v1806_v37, %v1807_v44  ;;  %v1814_v55 = vrot.slane %v1813_v45, 2  ;;  %v1064_v43 = vrot.slane %v1050_v41, %v8728_v33  ;;  %v712_v56 = vadd.f32 %v8886_v21, %v8897_v32 }
 0x196   : > { %v1821_v59 = vrot.slane %v1820_v47, 2  ;;  %v1827_v60 = vmax.f32 %v1825_v16, %v1826_v48  ;;  %v1065_v62 = vcombine.high %v1057_v49, %v1057_v49  ;;  %v1888_v63 = vsel %vm1467_vm3, %v1057_v49, -inf }
 0x197   : > { %v1809_v0 = vrot.slane %v1808_v52, 1  ;;  %v1815_v53 = vmax.f32 %v1813_v45, %v1814_v55  ;;  %v1066_v1 = vcombine.high %v1064_v43, %v1064_v43  ;;  %v1889_v54 = vrot.slane %v1888_v63, 4  ;;  %v7437_v45 = vpop.f32.mrf.mxu0 }
 0x198   : > { %v1822_v3 = vmax.f32 %v1820_v47, %v1821_v59  ;;  %v1828_v4 = vrot.slane %v1827_v60, 2  ;;  %v1895_v5 = vsel %vm1467_vm3, %v1065_v62, -inf  ;;  %v1902_v6 = vsel %vm1467_vm3, %v1064_v43, -inf }
 0x199   : > { %v1810_v32 = vmax.f32 %v1808_v52, %v1809_v0  ;;  %v1816_v7 = vrot.slane %v1815_v53, 1  ;;  %v1890_v25 = vmax.f32 %v1888_v63, %v1889_v54  ;;  %v1896_v29 = vrot.slane %v1895_v5, 4 }
 0x19a   : > { %v1823_v9 = vrot.slane %v1822_v3, 1  ;;  %v1829_v10 = vmax.f32 %v1827_v60, %v1828_v4  ;;  %v1903_v11 = vrot.slane %v1902_v6, 4  ;;  %v1909_v12 = vsel %vm1467_vm3, %v1066_v1, -inf  ;;  %v597_v1 = vpop.f32.mrf.mxu0 }
 0x19b   : > { %v1817_v13 = vmax.f32 %v1815_v53, %v1816_v7  ;;  %v2388_v51 = vmax.f32 %v1810_v32, %v8916_v61  ;;  %v1891_v14 = vrot.slane %v1890_v25, 2  ;;  %v1897_v15 = vmax.f32 %v1895_v5, %v1896_v29 }
 0x19c   : > { %v1824_v17 = vmax.f32 %v1822_v3, %v1823_v9  ;;  %v1830_v18 = vrot.slane %v1829_v10, 1  ;;  %v1904_v19 = vmax.f32 %v1902_v6, %v1903_v11  ;;  %v1910_v20 = vrot.slane %v1909_v12, 4 }
 0x19d   : > { %v2389_v22 = vmax.f32 %v1817_v13, %v1873_v42  ;;  %v1892_v23 = vmax.f32 %v1890_v25, %v1891_v14  ;;  %v1898_v26 = vrot.slane %v1897_v15, 2  ;;  %v744_v27 = vmax.f32 %v712_v56, 0.0 }
 0x19e   : > { %v1831_v31 = vmax.f32 %v1829_v10, %v1830_v18  ;;  %v2390_v24 = vmax.f32 %v1824_v17, %v1880_v2  ;;  %v1905_v57 = vrot.slane %v1904_v19, 2  ;;  %v1911_v34 = vmax.f32 %v1909_v12, %v1910_v20 }
 0x19f   : > { %v2540_v35 = vsel %vm2512_vm4, %v2389_v22, %v2388_v51  ;;  %v1893_v36 = vrot.slane %v1892_v23, 1  ;;  %v1899_v37 = vmax.f32 %v1897_v15, %v1898_v26  ;;  %v1016_v61 = vcombine.high %v744_v27, %v744_v27 }
 0x1a0   : > { %v2391_v38 = vmax.f32 %v1831_v31, %v8921_v46  ;;  %v2541_v39 = vsel %vm2514_vm5, %v2390_v24, %v2540_v35  ;;  %v1906_v40 = vmax.f32 %v1904_v19, %v1905_v57  ;;  %v1912_v16 = vrot.slane %v1911_v34, 2 }
 0x1a1   : > { %v8935_v41 = vmax.f32 %v1892_v23, %v1893_v36  ;;  %v1900_v42 = vrot.slane %v1899_v37, 1  ;;  %v1023_v44 = vrot.slane %v744_v27, %v8728_v33  ;;  %v1030_v2 = vrot.slane %v1016_v61, %v8728_v33 }
 0x1a2   : > { %v1907_v47 = vrot.slane %v1906_v40, 1  ;;  %v1913_v48 = vmax.f32 %v1911_v34, %v1912_v16  ;;  %v8940_v49 = vsel %vm2516_vm6, %v2391_v38, %v2541_v39  ;;  %v680_v50 = vmul.f32 %v8892_v28, %v7436_v8 }
 0x1a3   : > { %v8943_v46 = vmax.f32 %v1899_v37, %v1900_v42  ;;  %v1031_v52 = vcombine.high %v1023_v44, %v1023_v44  ;;  %v1032_v55 = vcombine.high %v1030_v2, %v1030_v2  ;;  %v1832_v43 = vsel %vm1467_vm3, %v1023_v44, -inf }
 0x1a4   : > { %v8946_v56 = vmax.f32 %v1906_v40, %v1907_v47  ;;  %v1914_v58 = vrot.slane %v1913_v48, 1  ;;  %v1833_v59 = vrot.slane %v1832_v43, 4  ;;  %v1846_v60 = vsel %vm1467_vm3, %v1030_v2, -inf }
 0x1a5   : > { %v1839_v62 = vsel %vm1467_vm3, %v1031_v52, -inf  ;;  %v1847_v63 = vrot.slane %v1846_v60, 4  ;;  %v1853_v0 = vsel %vm1467_vm3, %v1032_v55, -inf  ;;  %v717_v53 = vadd.f32 %v8886_v21, %v680_v50 }
 0x1a6   : > { %v8952_v54 = vmax.f32 %v1913_v48, %v1914_v58  ;;  %v1834_v3 = vmax.f32 %v1832_v43, %v1833_v59  ;;  %v1840_v4 = vrot.slane %v1839_v62, 4  ;;  %v1854_v5 = vrot.slane %v1853_v0, 4 }
 0x1a7   : > { %v1848_v6 = vmax.f32 %v1846_v60, %v1847_v63  ;;  %v749_v32 = vmax.f32 %v717_v53, 0.0  ;;  %v678_v7 = vmul.f32 %v8892_v28, %v594_v30  ;;  %v681_v25 = vmul.f32 %v8892_v28, %v7437_v45 }
 0x1a8   : > { %v1835_v29 = vrot.slane %v1834_v3, 2  ;;  %v1841_v8 = vmax.f32 %v1839_v62, %v1840_v4  ;;  %v1855_v9 = vmax.f32 %v1853_v0, %v1854_v5  ;;  %v679_v10 = vmul.f32 %v8892_v28, %v597_v1 }
 0x1a9   : > { %v1849_v11 = vrot.slane %v1848_v6, 2  ;;  %v1101_v12 = vcombine.high %v749_v32, %v749_v32  ;;  %v1108_v13 = vrot.slane %v749_v32, %v8728_v33  ;;  %v715_v51 = vadd.f32 %v8886_v21, %v678_v7 }
 0x1aa   : > { %v1836_v14 = vmax.f32 %v1834_v3, %v1835_v29  ;;  %v1842_v15 = vrot.slane %v1841_v8, 2  ;;  %v1856_v17 = vrot.slane %v1855_v9, 2  ;;  %v718_v18 = vadd.f32 %v8886_v21, %v681_v25 }
 0x1ab   : > { %v1850_v19 = vmax.f32 %v1848_v6, %v1849_v11  ;;  %v1115_v20 = vrot.slane %v1101_v12, %v8728_v33  ;;  %v1116_v22 = vcombine.high %v1108_v13, %v1108_v13  ;;  %v1972_v23 = vsel %vm1467_vm3, %v1108_v13, -inf  ;;  %v8135_v6 = vld [vmem:[#allocation5 + $0x38] sm:$0xff]  }
 0x1ac   : > { %v1837_v26 = vrot.slane %v1836_v14, 1  ;;  %v1843_v27 = vmax.f32 %v1841_v8, %v1842_v15  ;;  %v1857_v30 = vmax.f32 %v1855_v9, %v1856_v17  ;;  %v1973_v31 = vrot.slane %v1972_v23, 4  ;;  %7474 = vmatprep.subr.bf16.mxu1 %v8135_v6 }
 0x1ad   : > { %v1851_v24 = vrot.slane %v1850_v19, 1  ;;  %v1117_v57 = vcombine.high %v1115_v20, %v1115_v20  ;;  %v1979_v34 = vsel %vm1467_vm3, %v1116_v22, -inf  ;;  %v1986_v35 = vsel %vm1467_vm3, %v1115_v20, -inf }
 0x1ae   : > { %v1838_v36 = vmax.f32 %v1836_v14, %v1837_v26  ;;  %v1844_v37 = vrot.slane %v1843_v27, 1  ;;  %v1858_v61 = vrot.slane %v1857_v30, 1  ;;  %v1974_v38 = vmax.f32 %v1972_v23, %v1973_v31 }
 0x1af   : > { %v1852_v39 = vmax.f32 %v1850_v19, %v1851_v24  ;;  %v1980_v40 = vrot.slane %v1979_v34, 4  ;;  %v1987_v16 = vrot.slane %v1986_v35, 4  ;;  %v1993_v42 = vsel %vm1467_vm3, %v1117_v57, -inf }
 0x1b0   : > { %v1845_v44 = vmax.f32 %v1843_v27, %v1844_v37  ;;  %v1859_v2 = vmax.f32 %v1857_v30, %v1858_v61  ;;  %v2392_v45 = vmax.f32 %v1838_v36, %v8935_v41  ;;  %v1975_v47 = vrot.slane %v1974_v38, 2 }
 0x1b1   : > { %v2394_v48 = vmax.f32 %v1852_v39, %v8946_v56  ;;  %v1981_v50 = vmax.f32 %v1979_v34, %v1980_v40  ;;  %v1988_v52 = vmax.f32 %v1986_v35, %v1987_v16  ;;  %v1994_v55 = vrot.slane %v1993_v42, 4  ;;  %v8994_v39 = vld [vmem:[#allocation5 + $0x138] sm:$0xff]  }
 0x1b2   : > { %v2393_v43 = vmax.f32 %v1845_v44, %v8943_v46  ;;  %v2395_v58 = vmax.f32 %v1859_v2, %v8952_v54  ;;  %v2543_v59 = vsel %vm2518_vm7, %v2392_v45, %v8940_v49  ;;  %v1976_v60 = vmax.f32 %v1974_v38, %v1975_v47  ;;  %7546 = vmatprep.subr.bf16.mxu0 %v8994_v39 }
 0x1b3   : > { %v1982_v62 = vrot.slane %v1981_v50, 2  ;;  %v1989_v63 = vrot.slane %v1988_v52, 2  ;;  %v1995_v0 = vmax.f32 %v1993_v42, %v1994_v55  ;;  %v747_v53 = vmax.f32 %v715_v51, 0.0 }
 0x1b4   : > { %v2544_v41 = vsel %vm2520_vm8, %v2393_v43, %v2543_v59  ;;  %v1977_v1 = vrot.slane %v1976_v60, 1  ;;  %v750_v3 = vmax.f32 %v718_v18, 0.0  ;;  %v8973_v56 = vadd.f32 %v8886_v21, %v679_v10 }
 0x1b5   : > { %v2545_v4 = vsel %vm2522_vm9, %v2394_v48, %v2544_v41  ;;  %v1983_v46 = vmax.f32 %v1981_v50, %v1982_v62  ;;  %v1990_v5 = vmax.f32 %v1988_v52, %v1989_v63  ;;  %v1996_v54 = vrot.slane %v1995_v0, 2  ;;  %v7440_v63 = vpop.f32.mrf.mxu0 }
 0x1b6   : > { %v2546_v49 = vsel %vm2524_vm10, %v2395_v58, %v2545_v4  ;;  %v8977_v32 = vmax.f32 %v1976_v60, %v1977_v1  ;;  %v1067_v7 = vcombine.high %v747_v53, %v747_v53  ;;  %v1074_v25 = vrot.slane %v747_v53, %v8728_v33 }
 0x1b7   : > { %2587 = vst [vmem:[#allocation2 + $0x41] sm:$0xff] %v2546_v49  ;;  %v1984_v29 = vrot.slane %v1983_v46, 1  ;;  %v1991_v8 = vrot.slane %v1990_v5, 1  ;;  %v1997_v9 = vmax.f32 %v1995_v0, %v1996_v54  ;;  %v1118_v11 = vcombine.high %v750_v3, %v750_v3 }
 0x1b8   : > { %v1081_v10 = vrot.slane %v1067_v7, %v8728_v33  ;;  %v1082_v12 = vcombine.high %v1074_v25, %v1074_v25  ;;  %v1916_v13 = vsel %vm1467_vm3, %v1074_v25, -inf  ;;  %v1125_v51 = vrot.slane %v750_v3, %v8728_v33 }
 0x1b9   : > { %v8983_v14 = vmax.f32 %v1983_v46, %v1984_v29  ;;  %v8985_v15 = vmax.f32 %v1990_v5, %v1991_v8  ;;  %v1998_v17 = vrot.slane %v1997_v9, 1  ;;  %v1917_v18 = vrot.slane %v1916_v13, 4 }
 0x1ba   : > { %v1083_v19 = vcombine.high %v1081_v10, %v1081_v10  ;;  %v1923_v20 = vsel %vm1467_vm3, %v1082_v12, -inf  ;;  %v1930_v22 = vsel %vm1467_vm3, %v1081_v10, -inf  ;;  %v1132_v23 = vrot.slane %v1118_v11, %v8728_v33  ;;  %v610_v11 = vpop.f32.mrf.mxu0 }
 0x1bb   : > { %v8990_v26 = vmax.f32 %v1997_v9, %v1998_v17  ;;  %v1918_v27 = vmax.f32 %v1916_v13, %v1917_v18  ;;  %v1924_v30 = vrot.slane %v1923_v20, 4  ;;  %v1931_v31 = vrot.slane %v1930_v22, 4 }
 0x1bc   : > { %v1937_v24 = vsel %vm1467_vm3, %v1083_v19, -inf  ;;  %v1133_v57 = vcombine.high %v1125_v51, %v1125_v51  ;;  %v1134_v34 = vcombine.high %v1132_v23, %v1132_v23  ;;  %v2000_v35 = vsel %vm1467_vm3, %v1125_v51, -inf }
 0x1bd   : > { %v1919_v36 = vrot.slane %v1918_v27, 2  ;;  %v1925_v37 = vmax.f32 %v1923_v20, %v1924_v30  ;;  %v1932_v61 = vmax.f32 %v1930_v22, %v1931_v31  ;;  %v1938_v38 = vrot.slane %v1937_v24, 4 }
 0x1be   : > { %v2001_v40 = vrot.slane %v2000_v35, 4  ;;  %v2007_v16 = vsel %vm1467_vm3, %v1133_v57, -inf  ;;  %v2014_v42 = vsel %vm1467_vm3, %v1132_v23, -inf  ;;  %v2021_v44 = vsel %vm1467_vm3, %v1134_v34, -inf  ;;  %v7441_v34 = vpop.f32.mrf.mxu0 }
 0x1bf   : > { %v1920_v2 = vmax.f32 %v1918_v27, %v1919_v36  ;;  %v1926_v45 = vrot.slane %v1925_v37, 2  ;;  %v1933_v47 = vrot.slane %v1932_v61, 2  ;;  %v1939_v48 = vmax.f32 %v1937_v24, %v1938_v38  ;;  %v2620_v36 = vld [vmem:[#allocation2 + $0x1] sm:$0xff] }
 0x1c0   : > { %v2002_v50 = vmax.f32 %v2000_v35, %v2001_v40  ;;  %v2008_v52 = vrot.slane %v2007_v16, 4  ;;  %v2015_v55 = vrot.slane %v2014_v42, 4  ;;  %v2022_v43 = vrot.slane %v2021_v44, 4 }
 0x1c1   : > { %v1921_v58 = vrot.slane %v1920_v2, 1  ;;  %v1927_v59 = vmax.f32 %v1925_v37, %v1926_v45  ;;  %v1934_v60 = vmax.f32 %v1932_v61, %v1933_v47  ;;  %v1940_v62 = vrot.slane %v1939_v48, 2  ;;  %v2621_v37 = vld [vmem:[#allocation2 + $0x11] sm:$0xff]  ;;  %v2875_v45 = vld [vmem:[#allocation2 + $0x2] sm:$0xff] }
 0x1c2   : > { %v2003_v0 = vrot.slane %v2002_v50, 2  ;;  %v2009_v53 = vmax.f32 %v2007_v16, %v2008_v52  ;;  %v2016_v41 = vmax.f32 %v2014_v42, %v2015_v55  ;;  %v2023_v1 = vmax.f32 %v2021_v44, %v2022_v43  ;;  %v2876_v47 = vld [vmem:[#allocation2 + $0x12] sm:$0xff] }
 0x1c3   : > { %v1922_v3 = vmax.f32 %v1920_v2, %v1921_v58  ;;  %v1928_v4 = vrot.slane %v1927_v59, 1  ;;  %v1935_v46 = vrot.slane %v1934_v60, 1  ;;  %v1941_v5 = vmax.f32 %v1939_v48, %v1940_v62  ;;  %v613_v62 = vpop.f32.mrf.mxu0 }
 0x1c4   : > { %v2004_v54 = vmax.f32 %v2002_v50, %v2003_v0  ;;  %v2010_v6 = vrot.slane %v2009_v53, 2  ;;  %v2017_v49 = vrot.slane %v2016_v41, 2  ;;  %v2024_v7 = vrot.slane %v2023_v1, 2 }
 0x1c5   : > { %v1929_v25 = vmax.f32 %v1927_v59, %v1928_v4  ;;  %v1936_v29 = vmax.f32 %v1934_v60, %v1935_v46  ;;  %v1942_v8 = vrot.slane %v1941_v5, 1  ;;  %v2396_v9 = vmax.f32 %v1922_v3, %v8977_v32 }
 0x1c6   : > { %v2005_v10 = vrot.slane %v2004_v54, 1  ;;  %v2011_v12 = vmax.f32 %v2009_v53, %v2010_v6  ;;  %v2018_v13 = vmax.f32 %v2016_v41, %v2017_v49  ;;  %v2025_v51 = vmax.f32 %v2023_v1, %v2024_v7 }
 0x1c7   : > { %v1943_v17 = vmax.f32 %v1941_v5, %v1942_v8  ;;  %v2397_v18 = vmax.f32 %v1929_v25, %v8983_v14  ;;  %v2398_v19 = vmax.f32 %v1936_v29, %v8985_v15  ;;  %v748_v20 = vmax.f32 %v8973_v56, 0.0 }
 0x1c8   : > { %v9004_v22 = vmax.f32 %v2004_v54, %v2005_v10  ;;  %v2012_v23 = vrot.slane %v2011_v12, 1  ;;  %v2019_v27 = vrot.slane %v2018_v13, 1  ;;  %v2026_v30 = vrot.slane %v2025_v51, 1 }
 0x1c9   : > { %v2399_v31 = vmax.f32 %v1943_v17, %v8990_v26  ;;  %v2547_v32 = vsel %vm2512_vm4, %v2397_v18, %v2396_v9  ;;  %v1084_v24 = vcombine.high %v748_v20, %v748_v20  ;;  %v1091_v57 = vrot.slane %v748_v20, %v8728_v33 }
 0x1ca   : > { %v2548_v35 = vsel %vm2514_vm5, %v2398_v19, %v2547_v32  ;;  %v9010_v14 = vmax.f32 %v2011_v12, %v2012_v23  ;;  %v9012_v15 = vmax.f32 %v2018_v13, %v2019_v27  ;;  %v9014_v56 = vmax.f32 %v2025_v51, %v2026_v30 }
 0x1cb   : > { %v1098_v61 = vrot.slane %v1084_v24, %v8728_v33  ;;  %v1099_v38 = vcombine.high %v1091_v57, %v1091_v57  ;;  %v1944_v26 = vsel %vm1467_vm3, %v1091_v57, -inf  ;;  %v9019_v40 = vsel %vm2516_vm6, %v2399_v31, %v2548_v35 }
 0x1cc   : > { %v1945_v16 = vrot.slane %v1944_v26, 4  ;;  %v684_v42 = vmul.f32 %v8892_v28, %v7440_v63  ;;  %v682_v44 = vmul.f32 %v8892_v28, %v610_v11  ;;  %v685_v2 = vmul.f32 %v8892_v28, %v7441_v34 }
 0x1cd   : > { %v1100_v48 = vcombine.high %v1098_v61, %v1098_v61  ;;  %v1951_v50 = vsel %vm1467_vm3, %v1099_v38, -inf  ;;  %v1958_v52 = vsel %vm1467_vm3, %v1098_v61, -inf  ;;  %v2628_v55 = vpack.c.bf16 %v2621_v37, %v2620_v36 }
 0x1ce   : > { %v1946_v43 = vmax.f32 %v1944_v26, %v1945_v16  ;;  %v1952_v58 = vrot.slane %v1951_v50, 4  ;;  %v1959_v59 = vrot.slane %v1958_v52, 4  ;;  %v721_v60 = vadd.f32 %v8886_v21, %v684_v42 }
 0x1cf   : > { %v1965_v63 = vsel %vm1467_vm3, %v1100_v48, -inf  ;;  %v719_v0 = vadd.f32 %v8886_v21, %v682_v44  ;;  %v722_v53 = vadd.f32 %v8886_v21, %v685_v2  ;;  %7466 = vmatprep.mubr.bf16.mxu1 %v2628_v55  ;;  %v2883_v41 = vpack.c.bf16 %v2876_v47, %v2875_v45 }
 0x1d0   : > { %v1947_v1 = vrot.slane %v1946_v43, 2  ;;  %v1953_v3 = vmax.f32 %v1951_v50, %v1952_v58  ;;  %v1960_v4 = vmax.f32 %v1958_v52, %v1959_v59  ;;  %v1966_v46 = vrot.slane %v1965_v63, 4 }
 0x1d1   : > { %v753_v5 = vmax.f32 %v721_v60, 0.0  ;;  %v751_v54 = vmax.f32 %v719_v0, 0.0  ;;  %v9030_v6 = vmax.f32 %v722_v53, 0.0  ;;  %7514 = vmatprep.mubr.bf16.mxu0 %v2883_v41  ;;  %v9033_v49 = vmul.f32 %v8892_v28, %v613_v62 }
 0x1d2   : > { %v1948_v7 = vmax.f32 %v1946_v43, %v1947_v1  ;;  %v1954_v25 = vrot.slane %v1953_v3, 2  ;;  %v1961_v29 = vrot.slane %v1960_v4, 2  ;;  %v1967_v8 = vmax.f32 %v1965_v63, %v1966_v46 }
 0x1d3   : > { %v1169_v9 = vcombine.high %v753_v5, %v753_v5  ;;  %v1176_v11 = vrot.slane %v753_v5, %v8728_v33  ;;  %v1135_v10 = vcombine.high %v751_v54, %v751_v54  ;;  %v1142_v12 = vrot.slane %v751_v54, %v8728_v33 }
 0x1d4   : > { %v1949_v13 = vrot.slane %v1948_v7, 1  ;;  %v1955_v51 = vmax.f32 %v1953_v3, %v1954_v25  ;;  %v1962_v17 = vmax.f32 %v1960_v4, %v1961_v29  ;;  %v1968_v18 = vrot.slane %v1967_v8, 2 }
 0x1d5   : > { %v1183_v19 = vrot.slane %v1169_v9, %v8728_v33  ;;  %v1184_v20 = vcombine.high %v1176_v11, %v1176_v11  ;;  %v2084_v23 = vsel %vm1467_vm3, %v1176_v11, -inf  ;;  %v1149_v27 = vrot.slane %v1135_v10, %v8728_v33 }
 0x1d6   : > { %v1950_v30 = vmax.f32 %v1948_v7, %v1949_v13  ;;  %v1956_v31 = vrot.slane %v1955_v51, 1  ;;  %v1963_v32 = vrot.slane %v1962_v17, 1  ;;  %v1969_v24 = vmax.f32 %v1967_v8, %v1968_v18 }
 0x1d7   : > { %v1185_v57 = vcombine.high %v1183_v19, %v1183_v19  ;;  %v2085_v34 = vrot.slane %v2084_v23, 4  ;;  %v2091_v35 = vsel %vm1467_vm3, %v1184_v20, -inf  ;;  %v2098_v36 = vsel %vm1467_vm3, %v1183_v19, -inf }
 0x1d8   : > { %v1957_v37 = vmax.f32 %v1955_v51, %v1956_v31  ;;  %v1964_v61 = vmax.f32 %v1962_v17, %v1963_v32  ;;  %v1970_v38 = vrot.slane %v1969_v24, 1  ;;  %v2400_v26 = vmax.f32 %v1950_v30, %v9004_v22 }
 0x1d9   : > { %v2086_v16 = vmax.f32 %v2084_v23, %v2085_v34  ;;  %v2092_v42 = vrot.slane %v2091_v35, 4  ;;  %v2099_v44 = vrot.slane %v2098_v36, 4  ;;  %v2105_v2 = vsel %vm1467_vm3, %v1185_v57, -inf }
 0x1da   : > { %v1971_v45 = vmax.f32 %v1969_v24, %v1970_v38  ;;  %v2401_v47 = vmax.f32 %v1957_v37, %v9010_v14  ;;  %v2402_v48 = vmax.f32 %v1964_v61, %v9012_v15  ;;  %v2550_v50 = vsel %vm2518_vm7, %v2400_v26, %v9019_v40 }
 0x1db   : > { %v2087_v52 = vrot.slane %v2086_v16, 2  ;;  %v2093_v55 = vmax.f32 %v2091_v35, %v2092_v42  ;;  %v2100_v43 = vmax.f32 %v2098_v36, %v2099_v44  ;;  %v2106_v58 = vrot.slane %v2105_v2, 4 }
 0x1dc   : > { %v2403_v59 = vmax.f32 %v1971_v45, %v9014_v56  ;;  %v2551_v22 = vsel %vm2520_vm8, %v2401_v47, %v2550_v50  ;;  %v1150_v60 = vcombine.high %v1142_v12, %v1142_v12  ;;  %v1151_v62 = vcombine.high %v1149_v27, %v1149_v27 }
 0x1dd   : > { %v2552_v63 = vsel %vm2522_vm9, %v2402_v48, %v2551_v22  ;;  %v2088_v0 = vmax.f32 %v2086_v16, %v2087_v52  ;;  %v2094_v53 = vrot.slane %v2093_v55, 2  ;;  %v2101_v14 = vrot.slane %v2100_v43, 2 }
 0x1de   : > { %v2553_v15 = vsel %vm2524_vm10, %v2403_v59, %v2552_v63  ;;  %v2107_v41 = vmax.f32 %v2105_v2, %v2106_v58  ;;  %v2028_v40 = vsel %vm1467_vm3, %v1142_v12, -inf  ;;  %v2035_v1 = vsel %vm1467_vm3, %v1150_v60, -inf }
 0x1df   : > { %2588 = vst [vmem:[#allocation2 + $0x51] sm:$0xff] %v2553_v15  ;;  %v2089_v3 = vrot.slane %v2088_v0, 1  ;;  %v2095_v4 = vmax.f32 %v2093_v55, %v2094_v53  ;;  %v2102_v56 = vmax.f32 %v2100_v43, %v2101_v14  ;;  %v2029_v46 = vrot.slane %v2028_v40, 4  ;;  %v7444_v15 = vpop.f32.mrf.mxu0 }
 0x1e0   : > { %v2108_v5 = vrot.slane %v2107_v41, 2  ;;  %v2036_v54 = vrot.slane %v2035_v1, 4  ;;  %v2042_v7 = vsel %vm1467_vm3, %v1149_v27, -inf  ;;  %v2049_v25 = vsel %vm1467_vm3, %v1151_v62, -inf }
 0x1e1   : > { %v2090_v29 = vmax.f32 %v2088_v0, %v2089_v3  ;;  %v2096_v8 = vrot.slane %v2095_v4, 1  ;;  %v2103_v9 = vrot.slane %v2102_v56, 1  ;;  %v2030_v11 = vmax.f32 %v2028_v40, %v2029_v46 }
 0x1e2   : > { %v2109_v10 = vmax.f32 %v2107_v41, %v2108_v5  ;;  %v2037_v13 = vmax.f32 %v2035_v1, %v2036_v54  ;;  %v2043_v12 = vrot.slane %v2042_v7, 4  ;;  %v2050_v51 = vrot.slane %v2049_v25, 4 }
 0x1e3   : > { %v2097_v17 = vmax.f32 %v2095_v4, %v2096_v8  ;;  %v2104_v18 = vmax.f32 %v2102_v56, %v2103_v9  ;;  %v2031_v19 = vrot.slane %v2030_v11, 2  ;;  %v1186_v20 = vcombine.high %v9030_v6, %v9030_v6 }
 0x1e4   : > { %v2110_v23 = vrot.slane %v2109_v10, 1  ;;  %v2038_v30 = vrot.slane %v2037_v13, 2  ;;  %v2044_v31 = vmax.f32 %v2042_v7, %v2043_v12  ;;  %v2051_v27 = vmax.f32 %v2049_v25, %v2050_v51 }
 0x1e5   : > { %v2032_v32 = vmax.f32 %v2030_v11, %v2031_v19  ;;  %v1193_v24 = vrot.slane %v9030_v6, %v8728_v33  ;;  %v1200_v57 = vrot.slane %v1186_v20, %v8728_v33  ;;  %v720_v34 = vadd.f32 %v8886_v21, %v9033_v49 }
 0x1e6   : > { %v2111_v35 = vmax.f32 %v2109_v10, %v2110_v23  ;;  %v2039_v36 = vmax.f32 %v2037_v13, %v2038_v30  ;;  %v2045_v37 = vrot.slane %v2044_v31, 2  ;;  %v2052_v61 = vrot.slane %v2051_v27, 2  ;;  %v626_v13 = vpop.f32.mrf.mxu0 }
 0x1e7   : > { %v2033_v38 = vrot.slane %v2032_v32, 1  ;;  %v1201_v26 = vcombine.high %v1193_v24, %v1193_v24  ;;  %v1202_v16 = vcombine.high %v1200_v57, %v1200_v57  ;;  %v2112_v42 = vsel %vm1467_vm3, %v1193_v24, -inf }
 0x1e8   : > { %v2040_v44 = vrot.slane %v2039_v36, 1  ;;  %v2046_v2 = vmax.f32 %v2044_v31, %v2045_v37  ;;  %v2053_v45 = vmax.f32 %v2051_v27, %v2052_v61  ;;  %v2113_v47 = vrot.slane %v2112_v42, 4  ;;  %v7445_v37 = vpop.f32.mrf.mxu0 }
 0x1e9   : > { %v2034_v48 = vmax.f32 %v2032_v32, %v2033_v38  ;;  %v2119_v6 = vsel %vm1467_vm3, %v1201_v26, -inf  ;;  %v2126_v50 = vsel %vm1467_vm3, %v1200_v57, -inf  ;;  %v2133_v49 = vsel %vm1467_vm3, %v1202_v16, -inf }
 0x1ea   : > { %v2041_v52 = vmax.f32 %v2039_v36, %v2040_v44  ;;  %v2047_v55 = vrot.slane %v2046_v2, 1  ;;  %v2054_v43 = vrot.slane %v2053_v45, 1  ;;  %v2114_v58 = vmax.f32 %v2112_v42, %v2113_v47 }
 0x1eb   : > { %v2404_v59 = vmax.f32 %v2034_v48, %v2090_v29  ;;  %v2120_v22 = vrot.slane %v2119_v6, 4  ;;  %v2127_v60 = vrot.slane %v2126_v50, 4  ;;  %v2134_v62 = vrot.slane %v2133_v49, 4 }
 0x1ec   : > { %v2048_v63 = vmax.f32 %v2046_v2, %v2047_v55  ;;  %v2055_v0 = vmax.f32 %v2053_v45, %v2054_v43  ;;  %v2405_v53 = vmax.f32 %v2041_v52, %v2097_v17  ;;  %v2115_v14 = vrot.slane %v2114_v58, 2 }
 0x1ed   : > { %v2121_v41 = vmax.f32 %v2119_v6, %v2120_v22  ;;  %v2128_v40 = vmax.f32 %v2126_v50, %v2127_v60  ;;  %v2135_v1 = vmax.f32 %v2133_v49, %v2134_v62  ;;  %v752_v3 = vmax.f32 %v720_v34, 0.0  ;;  %v9097_v22 = vld [vmem:[%s9834_s6] ss:$0 sm:$0xff] }
 0x1ee   : > { %v2406_v4 = vmax.f32 %v2048_v63, %v2104_v18  ;;  %v2407_v56 = vmax.f32 %v2055_v0, %v2111_v35  ;;  %v2554_v46 = vsel %vm2512_vm4, %v2405_v53, %v2404_v59  ;;  %v2116_v5 = vmax.f32 %v2114_v58, %v2115_v14 }
 0x1ef   : > { %v2122_v54 = vrot.slane %v2121_v41, 2  ;;  %v2129_v7 = vrot.slane %v2128_v40, 2  ;;  %v2136_v25 = vrot.slane %v2135_v1, 2  ;;  %v1152_v29 = vcombine.high %v752_v3, %v752_v3 }
 0x1f0   : > { %v2555_v8 = vsel %vm2514_vm5, %v2406_v4, %v2554_v46  ;;  %v2117_v9 = vrot.slane %v2116_v5, 1  ;;  %v1159_v11 = vrot.slane %v752_v3, %v8728_v33  ;;  %v688_v10 = vmul.f32 %v8892_v28, %v7444_v15 }
 0x1f1   : > { %v2123_v12 = vmax.f32 %v2121_v41, %v2122_v54  ;;  %v2130_v51 = vmax.f32 %v2128_v40, %v2129_v7  ;;  %v2137_v17 = vmax.f32 %v2135_v1, %v2136_v25  ;;  %v1166_v18 = vrot.slane %v1152_v29, %v8728_v33 }
 0x1f2   : > { %v9072_v19 = vmax.f32 %v2116_v5, %v2117_v9  ;;  %v1167_v20 = vcombine.high %v1159_v11, %v1159_v11  ;;  %v2056_v23 = vsel %vm1467_vm3, %v1159_v11, -inf  ;;  %v9076_v30 = vsel %vm2516_vm6, %v2407_v56, %v2555_v8 }
 0x1f3   : > { %v2124_v31 = vrot.slane %v2123_v12, 1  ;;  %v2131_v27 = vrot.slane %v2130_v51, 1  ;;  %v2138_v32 = vrot.slane %v2137_v17, 1  ;;  %v1168_v24 = vcombine.high %v1166_v18, %v1166_v18 }
 0x1f4   : > { %v2057_v57 = vrot.slane %v2056_v23, 4  ;;  %v2063_v34 = vsel %vm1467_vm3, %v1167_v20, -inf  ;;  %v2070_v35 = vsel %vm1467_vm3, %v1166_v18, -inf  ;;  %v725_v36 = vadd.f32 %v8886_v21, %v688_v10  ;;  %v9090_v21 = vld [vmem:[%s9833_s5] ss:$0 sm:$0xff] }
 0x1f5   : > { %v2125_v61 = vmax.f32 %v2123_v12, %v2124_v31  ;;  %v9081_v38 = vmax.f32 %v2130_v51, %v2131_v27  ;;  %v9083_v26 = vmax.f32 %v2137_v17, %v2138_v32  ;;  %v2064_v16 = vrot.slane %v2063_v34, 4 }
 0x1f6   : > { %v2058_v42 = vmax.f32 %v2056_v23, %v2057_v57  ;;  %v2071_v44 = vrot.slane %v2070_v35, 4  ;;  %v2077_v2 = vsel %vm1467_vm3, %v1168_v24, -inf  ;;  %v757_v45 = vmax.f32 %v725_v36, 0.0 }
 0x1f7   : > { %v2065_v47 = vmax.f32 %v2063_v34, %v2064_v16  ;;  %v2078_v48 = vrot.slane %v2077_v2, 4  ;;  %v686_v6 = vmul.f32 %v8892_v28, %v626_v13  ;;  %v689_v50 = vmul.f32 %v9090_v21, %v7445_v37 }
 0x1f8   : > { %v2059_v49 = vrot.slane %v2058_v42, 2  ;;  %v2072_v52 = vmax.f32 %v2070_v35, %v2071_v44  ;;  %v1237_v55 = vcombine.high %v757_v45, %v757_v45  ;;  %v1244_v43 = vrot.slane %v757_v45, %v8728_v33 }
 0x1f9   : > { %v2066_v58 = vrot.slane %v2065_v47, 2  ;;  %v2079_v59 = vmax.f32 %v2077_v2, %v2078_v48  ;;  %v723_v28 = vadd.f32 %v9097_v22, %v686_v6  ;;  %v726_v60 = vadd.f32 %v9097_v22, %v689_v50 }
 0x1fa   : > { %v2060_v62 = vmax.f32 %v2058_v42, %v2059_v49  ;;  %v2073_v63 = vrot.slane %v2072_v52, 2  ;;  %v1251_v0 = vrot.slane %v1237_v55, %v8728_v33  ;;  %v1252_v53 = vcombine.high %v1244_v43, %v1244_v43 }
 0x1fb   : > { %v2067_v14 = vmax.f32 %v2065_v47, %v2066_v58  ;;  %v2080_v15 = vrot.slane %v2079_v59, 2  ;;  %v2196_v41 = vsel %vm1467_vm3, %v1244_v43, -inf  ;;  %v755_v40 = vmax.f32 %v723_v28, 0.0 }
 0x1fc   : > { %v2061_v1 = vrot.slane %v2060_v62, 1  ;;  %v2074_v3 = vmax.f32 %v2072_v52, %v2073_v63  ;;  %v1253_v4 = vcombine.high %v1251_v0, %v1251_v0  ;;  %v2197_v56 = vrot.slane %v2196_v41, 4 }
 0x1fd   : > { %v2068_v46 = vrot.slane %v2067_v14, 1  ;;  %v2081_v5 = vmax.f32 %v2079_v59, %v2080_v15  ;;  %v2203_v54 = vsel %vm1467_vm3, %v1252_v53, -inf  ;;  %v2210_v7 = vsel %vm1467_vm3, %v1251_v0, -inf  ;;  %v629_v53 = vpop.f32.mrf.mxu0 }
 0x1fe   : > { %v2062_v25 = vmax.f32 %v2060_v62, %v2061_v1  ;;  %v2075_v29 = vrot.slane %v2074_v3, 1  ;;  %v2198_v8 = vmax.f32 %v2196_v41, %v2197_v56  ;;  %v2204_v9 = vrot.slane %v2203_v54, 4 }
 0x1ff   : > { %v2069_v11 = vmax.f32 %v2067_v14, %v2068_v46  ;;  %v2082_v10 = vrot.slane %v2081_v5, 1  ;;  %v2211_v13 = vrot.slane %v2210_v7, 4  ;;  %v2217_v12 = vsel %vm1467_vm3, %v1253_v4, -inf }
 0x200   : > { %v2076_v51 = vmax.f32 %v2074_v3, %v2075_v29  ;;  %v2408_v17 = vmax.f32 %v2062_v25, %v9072_v19  ;;  %v2199_v18 = vrot.slane %v2198_v8, 2  ;;  %v2205_v20 = vmax.f32 %v2203_v54, %v2204_v9 }
 0x201   : > { %v2083_v23 = vmax.f32 %v2081_v5, %v2082_v10  ;;  %v2409_v31 = vmax.f32 %v2069_v11, %v2125_v61  ;;  %v2212_v27 = vmax.f32 %v2210_v7, %v2211_v13  ;;  %v2218_v32 = vrot.slane %v2217_v12, 4 }
 0x202   : > { %v2410_v24 = vmax.f32 %v2076_v51, %v9081_v38  ;;  %v2557_v57 = vsel %vm2518_vm7, %v2408_v17, %v9076_v30  ;;  %v2200_v34 = vmax.f32 %v2198_v8, %v2199_v18  ;;  %v2206_v35 = vrot.slane %v2205_v20, 2 }
 0x203   : > { %v2411_v36 = vmax.f32 %v2083_v23, %v9083_v26  ;;  %v2558_v37 = vsel %vm2520_vm8, %v2409_v31, %v2557_v57  ;;  %v2213_v16 = vrot.slane %v2212_v27, 2  ;;  %v2219_v42 = vmax.f32 %v2217_v12, %v2218_v32 }
 0x204   : > { %v2559_v19 = vsel %vm2522_vm9, %v2410_v24, %v2558_v37  ;;  %v2201_v44 = vrot.slane %v2200_v34, 1  ;;  %v2207_v2 = vmax.f32 %v2205_v20, %v2206_v35  ;;  %v1203_v61 = vcombine.high %v755_v40, %v755_v40 }
 0x205   : > { %v9114_v45 = vsel %vm2524_vm10, %v2411_v36, %v2559_v19  ;;  %v2214_v38 = vmax.f32 %v2212_v27, %v2213_v16  ;;  %v2220_v47 = vrot.slane %v2219_v42, 2  ;;  %v1210_v30 = vrot.slane %v755_v40, %v8728_v33 }
 0x206   : > { %2589 = vst [vmem:[#allocation2 + $0x61] sm:$0xff] %v9114_v45  ;;  %v2208_v48 = vrot.slane %v2207_v2, 1  ;;  %v1217_v26 = vrot.slane %v1203_v61, %v8728_v33  ;;  %v758_v6 = vmax.f32 %v726_v60, 0.0  ;;  %v9120_v55 = vmax.f32 %v2200_v34, %v2201_v44 }
 0x207   : > { %v2215_v50 = vrot.slane %v2214_v38, 1  ;;  %v1218_v49 = vcombine.high %v1210_v30, %v1210_v30  ;;  %v2140_v52 = vsel %vm1467_vm3, %v1210_v30, -inf  ;;  %v2221_v62 = vmax.f32 %v2219_v42, %v2220_v47 }
 0x208   : > { %v1219_v43 = vcombine.high %v1217_v26, %v1217_v26  ;;  %v2141_v58 = vrot.slane %v2140_v52, 4  ;;  %v2154_v59 = vsel %vm1467_vm3, %v1217_v26, -inf  ;;  %v9123_v28 = vmax.f32 %v2207_v2, %v2208_v48 }
 0x209   : > { %v2147_v63 = vsel %vm1467_vm3, %v1218_v49, -inf  ;;  %v2155_v0 = vrot.slane %v2154_v59, 4  ;;  %v1254_v41 = vcombine.high %v758_v6, %v758_v6  ;;  %v9127_v40 = vmax.f32 %v2214_v38, %v2215_v50  ;;  %v7448_v49 = vpop.f32.mrf.mxu0 }
 0x20a   : > { %v2142_v14 = vmax.f32 %v2140_v52, %v2141_v58  ;;  %v2148_v15 = vrot.slane %v2147_v63, 4  ;;  %v2161_v60 = vsel %vm1467_vm3, %v1219_v43, -inf  ;;  %v1261_v4 = vrot.slane %v758_v6, %v8728_v33 }
 0x20b   : > { %v2156_v1 = vmax.f32 %v2154_v59, %v2155_v0  ;;  %v2162_v3 = vrot.slane %v2161_v60, 4  ;;  %v1268_v5 = vrot.slane %v1254_v41, %v8728_v33  ;;  %v687_v54 = vmul.f32 %v9090_v21, %v629_v53 }
 0x20c   : > { %v2143_v56 = vrot.slane %v2142_v14, 2  ;;  %v2149_v46 = vmax.f32 %v2147_v63, %v2148_v15  ;;  %v1269_v29 = vcombine.high %v1261_v4, %v1261_v4  ;;  %v2224_v8 = vsel %vm1467_vm3, %v1261_v4, -inf }
 0x20d   : > { %v2157_v7 = vrot.slane %v2156_v1, 2  ;;  %v2163_v25 = vmax.f32 %v2161_v60, %v2162_v3  ;;  %v1270_v10 = vcombine.high %v1268_v5, %v1268_v5  ;;  %v2225_v13 = vrot.slane %v2224_v8, 4 }
 0x20e   : > { %v2144_v9 = vmax.f32 %v2142_v14, %v2143_v56  ;;  %v2150_v11 = vrot.slane %v2149_v46, 2  ;;  %v2231_v17 = vsel %vm1467_vm3, %v1269_v29, -inf  ;;  %v2238_v18 = vsel %vm1467_vm3, %v1268_v5, -inf }
 0x20f   : > { %v2158_v12 = vmax.f32 %v2156_v1, %v2157_v7  ;;  %v2164_v51 = vrot.slane %v2163_v25, 2  ;;  %v2226_v31 = vmax.f32 %v2224_v8, %v2225_v13  ;;  %v2232_v27 = vrot.slane %v2231_v17, 4 }
 0x210   : > { %v2145_v20 = vrot.slane %v2144_v9, 1  ;;  %v2151_v23 = vmax.f32 %v2149_v46, %v2150_v11  ;;  %v2239_v57 = vrot.slane %v2238_v18, 4  ;;  %v2245_v34 = vsel %vm1467_vm3, %v1270_v10, -inf }
 0x211   : > { %v2159_v32 = vrot.slane %v2158_v12, 1  ;;  %v2165_v24 = vmax.f32 %v2163_v25, %v2164_v51  ;;  %v2227_v37 = vrot.slane %v2226_v31, 2  ;;  %v2233_v16 = vmax.f32 %v2231_v17, %v2232_v27 }
 0x212   : > { %v2146_v35 = vmax.f32 %v2144_v9, %v2145_v20  ;;  %v2152_v36 = vrot.slane %v2151_v23, 1  ;;  %v2240_v44 = vmax.f32 %v2238_v18, %v2239_v57  ;;  %v2246_v2 = vrot.slane %v2245_v34, 4 }
 0x213   : > { %v2160_v42 = vmax.f32 %v2158_v12, %v2159_v32  ;;  %v2166_v19 = vrot.slane %v2165_v24, 1  ;;  %v2222_v61 = vrot.slane %v2221_v62, 1  ;;  %v2228_v47 = vmax.f32 %v2226_v31, %v2227_v37 }
 0x214   : > { %v2153_v38 = vmax.f32 %v2151_v23, %v2152_v36  ;;  %v2234_v30 = vrot.slane %v2233_v16, 2  ;;  %v2412_v26 = vmax.f32 %v2146_v35, %v9120_v55  ;;  %v2241_v6 = vrot.slane %v2240_v44, 2 }
 0x215   : > { %v9136_v48 = vmax.f32 %v2165_v24, %v2166_v19  ;;  %v2247_v50 = vmax.f32 %v2245_v34, %v2246_v2  ;;  %v2414_v43 = vmax.f32 %v2160_v42, %v9127_v40  ;;  %v724_v59 = vadd.f32 %v9097_v22, %v687_v54 }
 0x216   : > { %v2413_v52 = vmax.f32 %v2153_v38, %v9123_v28  ;;  %v2235_v58 = vmax.f32 %v2233_v16, %v2234_v30  ;;  %v2229_v63 = vrot.slane %v2228_v47, 1  ;;  %v9142_v0 = vmax.f32 %v2240_v44, %v2241_v6  ;;  %v642_v28 = vpop.f32.mrf.mxu0 }
 0x217   : > { %v2248_v53 = vrot.slane %v2247_v50, 2  ;;  %v692_v14 = vmul.f32 %v9090_v21, %v7448_v49  ;;  %v9145_v15 = vmax.f32 %v2221_v62, %v2222_v61  ;;  %v756_v60 = vmax.f32 %v724_v59, 0.0 }
 0x218   : > { %v2561_v55 = vsel %vm2512_vm4, %v2413_v52, %v2412_v26  ;;  %v2236_v41 = vrot.slane %v2235_v58, 1  ;;  %v9155_v5 = vmax.f32 %v2228_v47, %v2229_v63  ;;  %v2243_v62 = vrot.slane %v9142_v0, 1 }
 0x219   : > { %v729_v1 = vadd.f32 %v9097_v22, %v692_v14  ;;  %v2415_v40 = vmax.f32 %v9136_v48, %v9145_v15  ;;  %v9151_v3 = vmax.f32 %v2247_v50, %v2248_v53  ;;  %v1220_v4 = vcombine.high %v756_v60, %v756_v60 }
 0x21a   : > { %v1227_v56 = vrot.slane %v756_v60, %v8728_v33  ;;  %v2562_v46 = vsel %vm2514_vm5, %v2414_v43, %v2561_v55  ;;  %v690_v8 = vmul.f32 %v9090_v21, %v642_v28  ;;  %v9161_v9 = vmax.f32 %v2235_v58, %v2236_v41 }
 0x21b   : > { %v761_v54 = vmax.f32 %v729_v1, 0.0  ;;  %v1234_v7 = vrot.slane %v1220_v4, %v8728_v33  ;;  %v2250_v12 = vrot.slane %v9151_v3, 1  ;;  %v2244_v1 = vmax.f32 %v9142_v0, %v2243_v62 }
 0x21c   : > { %v1235_v25 = vcombine.high %v1227_v56, %v1227_v56  ;;  %v2168_v29 = vsel %vm1467_vm3, %v1227_v56, -inf  ;;  %v727_v34 = vadd.f32 %v9097_v22, %v690_v8  ;;  %v2563_v28 = vsel %vm2516_vm6, %v2415_v40, %v2562_v46  ;;  %v7449_v46 = vpop.f32.mrf.mxu0 }
 0x21d   : > { %v2169_v11 = vrot.slane %v2168_v29, 4  ;;  %v1305_v10 = vcombine.high %v761_v54, %v761_v54  ;;  %v1312_v13 = vrot.slane %v761_v54, %v8728_v33  ;;  %v1236_v51 = vcombine.high %v1234_v7, %v1234_v7 }
 0x21e   : > { %v2175_v17 = vsel %vm1467_vm3, %v1235_v25, -inf  ;;  %v2182_v18 = vsel %vm1467_vm3, %v1234_v7, -inf  ;;  %v759_v56 = vmax.f32 %v727_v34, 0.0  ;;  %v2251_v8 = vmax.f32 %v9151_v3, %v2250_v12 }
 0x21f   : > { %v2170_v20 = vmax.f32 %v2168_v29, %v2169_v11  ;;  %v2176_v23 = vrot.slane %v2175_v17, 4  ;;  %v2183_v31 = vrot.slane %v2182_v18, 4  ;;  %v1319_v27 = vrot.slane %v1305_v10, %v8728_v33 }
 0x220   : > { %v2189_v32 = vsel %vm1467_vm3, %v1236_v51, -inf  ;;  %v1320_v24 = vcombine.high %v1312_v13, %v1312_v13  ;;  %v2308_v57 = vsel %vm1467_vm3, %v1312_v13, -inf  ;;  %v1271_v3 = vcombine.high %v759_v56, %v759_v56 }
 0x221   : > { %v2171_v35 = vrot.slane %v2170_v20, 2  ;;  %v2177_v36 = vmax.f32 %v2175_v17, %v2176_v23  ;;  %v2184_v37 = vmax.f32 %v2182_v18, %v2183_v31  ;;  %v2190_v16 = vrot.slane %v2189_v32, 4  ;;  %v9189_v23 = vld [vmem:[#allocation2 + $0x31] sm:$0xff] }
 0x222   : > { %v1321_v42 = vcombine.high %v1319_v27, %v1319_v27  ;;  %v2309_v19 = vrot.slane %v2308_v57, 4  ;;  %v2315_v44 = vsel %vm1467_vm3, %v1320_v24, -inf  ;;  %v2322_v2 = vsel %vm1467_vm3, %v1319_v27, -inf  ;;  %v9196_v24 = vld [vmem:[#allocation2 + $0x32] sm:$0xff] }
 0x223   : > { %v2172_v61 = vmax.f32 %v2170_v20, %v2171_v35  ;;  %v2178_v38 = vrot.slane %v2177_v36, 2  ;;  %v2185_v47 = vrot.slane %v2184_v37, 2  ;;  %v2191_v30 = vmax.f32 %v2189_v32, %v2190_v16  ;;  %v9205_v16 = vld [vmem:[#allocation2 + $0x22] sm:$0xff] }
 0x224   : > { %v2310_v48 = vmax.f32 %v2308_v57, %v2309_v19  ;;  %v2316_v26 = vrot.slane %v2315_v44, 4  ;;  %v2323_v6 = vrot.slane %v2322_v2, 4  ;;  %v2329_v50 = vsel %vm1467_vm3, %v1321_v42, -inf }
 0x225   : > { %v2173_v49 = vrot.slane %v2172_v61, 1  ;;  %v2179_v52 = vmax.f32 %v2177_v36, %v2178_v38  ;;  %v2186_v43 = vmax.f32 %v2184_v37, %v2185_v47  ;;  %v2192_v58 = vrot.slane %v2191_v30, 2  ;;  %v9203_v37 = vld [vmem:[#allocation2 + $0x21] sm:$0xff]  ;;  %v8137_v38 = vld [vmem:[#allocation5 + $0x30] sm:$0xff]  }
 0x226   : > { %v2311_v59 = vrot.slane %v2310_v48, 2  ;;  %v2317_v63 = vmax.f32 %v2315_v44, %v2316_v26  ;;  %v2324_v53 = vmax.f32 %v2322_v2, %v2323_v6  ;;  %v2330_v14 = vrot.slane %v2329_v50, 4  ;;  %v9214_v47 = vld [vmem:[#allocation2 + $0x51] sm:$0xff] }
 0x227   : > { %v2174_v15 = vmax.f32 %v2172_v61, %v2173_v49  ;;  %v2180_v55 = vrot.slane %v2179_v52, 1  ;;  %v2187_v60 = vrot.slane %v2186_v43, 1  ;;  %v2193_v41 = vmax.f32 %v2191_v30, %v2192_v58  ;;  %v645_v61 = vpop.f32.mrf.mxu0  ;;  %v9216_v30 = vld [vmem:[#allocation2 + $0x52] sm:$0xff] }
 0x228   : > { %v2318_v4 = vrot.slane %v2317_v63, 2  ;;  %v9178_v11 = vmax.f32 %v2310_v48, %v2311_v59  ;;  %v2325_v10 = vrot.slane %v2324_v53, 2  ;;  %v9180_v13 = vmax.f32 %v2329_v50, %v2330_v14  ;;  %v8138_v49 = vld [vmem:[#allocation5 + $0x130] sm:$0xff]  }
 0x229   : > { %v2181_v54 = vmax.f32 %v2179_v52, %v2180_v55  ;;  %v2188_v7 = vmax.f32 %v2186_v43, %v2187_v60  ;;  %v2194_v25 = vrot.slane %v2193_v41, 1  ;;  %v2416_v29 = vmax.f32 %v2174_v15, %v9155_v5  ;;  %v8366_v55 = vld [vmem:[#allocation5 + $0x38] sm:$0xff]  }
 0x22a   : > { %v9184_v62 = vmax.f32 %v2317_v63, %v2318_v4  ;;  %v693_v18 = vmul.f32 %v9090_v21, %v7449_v46  ;;  %v1278_v12 = vrot.slane %v759_v56, %v8728_v33  ;;  %v9193_v27 = vmax.f32 %v2324_v53, %v2325_v10  ;;  %v9225_v63 = vld [vmem:[#allocation2 + $0x41] sm:$0xff] }
 0x22b   : > { %v2195_v51 = vmax.f32 %v2193_v41, %v2194_v25  ;;  %v2417_v17 = vmax.f32 %v2181_v54, %v9161_v9  ;;  %v2418_v0 = vmax.f32 %v2188_v7, %v2244_v1  ;;  %v2564_v40 = vsel %vm2518_vm7, %v2416_v29, %v2563_v28  ;;  %v9227_v53 = vld [vmem:[#allocation2 + $0x42] sm:$0xff] }
 0x22c   : > { %v2313_v9 = vrot.slane %v9178_v11, 1  ;;  %v2332_v32 = vrot.slane %v9180_v13, 2  ;;  %v1285_v34 = vrot.slane %v1271_v3, %v8728_v33  ;;  %v1286_v35 = vcombine.high %v1278_v12, %v1278_v12  ;;  %v8139_v54 = vld [vmem:[#allocation5 + $0x28] sm:$0xff]  }
 0x22d   : > { %v2419_v20 = vmax.f32 %v2195_v51, %v2251_v8  ;;  %v2565_v5 = vsel %vm2520_vm8, %v2417_v17, %v2564_v40  ;;  %v2252_v36 = vsel %vm1467_vm3, %v1278_v12, -inf  ;;  %v2320_v42 = vrot.slane %v9184_v62, 1  ;;  %v8140_v8 = vld [vmem:[#allocation5 + $0x128] sm:$0xff]   ;;  %v8141_v12 = vld [vmem:[#allocation5 + $0x20] sm:$0xff]  }
 0x22e   : > { %v2566_v31 = vsel %vm2522_vm9, %v2418_v0, %v2565_v5  ;;  %v2253_v19 = vrot.slane %v2252_v36, 4  ;;  %v730_v44 = vadd.f32 %v9097_v22, %v693_v18  ;;  %v9212_v2 = vpack.c.bf16 %v9189_v23, %v9203_v37 }
 0x22f   : > { %v9199_v57 = vsel %vm2524_vm10, %v2419_v20, %v2566_v31  ;;  %v1287_v48 = vcombine.high %v1285_v34, %v1285_v34  ;;  %v2259_v26 = vsel %vm1467_vm3, %v1286_v35, -inf  ;;  %v2266_v6 = vsel %vm1467_vm3, %v1285_v34, -inf }
 0x230   : > { %2590 = vst [vmem:[#allocation2 + $0x71] sm:$0xff] %v9199_v57  ;;  %v9222_v50 = vpack.c.bf16 %v9196_v24, %v9205_v16  ;;  %v2254_v52 = vmax.f32 %v2252_v36, %v2253_v19  ;;  %v2260_v43 = vrot.slane %v2259_v26, 4  ;;  %v2267_v58 = vrot.slane %v2266_v6, 4  ;;  %7467 = vmatmul.mubr.bf16.vlgmr.msra.gmra.mxu1 %v9212_v2 }
 0x231   : > { %v762_v59 = vmax.f32 %v730_v44, 0.0  ;;  %v2273_v14 = vsel %vm1467_vm3, %v1287_v48, -inf  ;;  %v691_v15 = vmul.f32 %v9090_v21, %v645_v61  ;;  %7475 = vmatpush3.bf16.msra.mxu1 %v8366_v55  ;;  %v9234_v60 = vpack.c.bf16 %v9214_v47, %v9225_v63  ;;  %v8144_v55 = vld [vmem:[#allocation5 + $0x118] sm:$0xff]  }
 0x232   : > { %7515 = vmatmul.mubr.bf16.vlgmr.msra.gmra.mxu0 %v9222_v50  ;;  %v9238_v41 = vpack.c.bf16 %v9216_v30, %v9227_v53  ;;  %v2255_v1 = vrot.slane %v2254_v52, 2  ;;  %v2261_v28 = vmax.f32 %v2259_v26, %v2260_v43  ;;  %v2268_v4 = vmax.f32 %v2266_v6, %v2267_v58  ;;  %7476 = vmatprep.subr.bf16.mxu1 %v8137_v38 }
 0x233   : > { %v2274_v56 = vrot.slane %v2273_v14, 4  ;;  %7547 = vmatpush3.bf16.msra.mxu0 %v8994_v39  ;;  %v2327_v21 = vrot.slane %v9193_v27, 1  ;;  %v1322_v7 = vcombine.high %v762_v59, %v762_v59  ;;  %v1329_v25 = vrot.slane %v762_v59, %v8728_v33  ;;  %7470 = vmatprep.mubr.bf16.mxu1 %v9234_v60 }
 0x234   : > { %v728_v29 = vadd.f32 %v9097_v22, %v691_v15  ;;  %7548 = vmatprep.subr.bf16.mxu0 %v8138_v49  ;;  %v2256_v10 = vmax.f32 %v2254_v52, %v2255_v1  ;;  %v2262_v51 = vrot.slane %v2261_v28, 2  ;;  %v2269_v17 = vrot.slane %v2268_v4, 2  ;;  %7518 = vmatprep.mubr.bf16.mxu0 %v9238_v41  ;;  %v8143_v15 = vld [vmem:[#allocation5 + $0x18] sm:$0xff]  }
 0x235   : > { %v2275_v0 = vmax.f32 %v2273_v14, %v2274_v56  ;;  %v2333_v39 = vmax.f32 %v9180_v13, %v2332_v32  ;;  %v1336_v40 = vrot.slane %v1322_v7, %v8728_v33  ;;  %v1337_v46 = vcombine.high %v1329_v25, %v1329_v25  ;;  %7477 = vmatpush3.bf16.msra.mxu1 %v8137_v38  ;;  %v8142_v13 = vld [vmem:[#allocation5 + $0x120] sm:$0xff]  }
 0x236   : > { %v2336_v18 = vsel %vm1467_vm3, %v1329_v25, -inf  ;;  %v2263_v20 = vmax.f32 %v2261_v28, %v2262_v51  ;;  %v2270_v22 = vmax.f32 %v2268_v4, %v2269_v17  ;;  %v760_v3 = vmax.f32 %v728_v29, 0.0  ;;  %7478 = vmatprep.subr.bf16.mxu1 %v8139_v54 }
 0x237   : > { %v2276_v5 = vrot.slane %v2275_v0, 2  ;;  %7549 = vmatpush3.bf16.msra.mxu0 %v8138_v49  ;;  %v1338_v31 = vcombine.high %v1336_v40, %v1336_v40  ;;  %v2337_v34 = vrot.slane %v2336_v18, 4  ;;  %v2343_v35 = vsel %vm1467_vm3, %v1337_v46, -inf }
 0x238   : > { %v2350_v36 = vsel %vm1467_vm3, %v1336_v40, -inf  ;;  %7550 = vmatprep.subr.bf16.mxu0 %v8140_v8  ;;  %v2257_v32 = vrot.slane %v2256_v10, 1  ;;  %v2264_v19 = vrot.slane %v2263_v20, 1  ;;  %v2271_v44 = vrot.slane %v2270_v22, 1 }
 0x239   : > { %v2277_v61 = vmax.f32 %v2275_v0, %v2276_v5  ;;  %v2338_v38 = vmax.f32 %v2336_v18, %v2337_v34  ;;  %v2344_v48 = vrot.slane %v2343_v35, 4  ;;  %v2351_v26 = vrot.slane %v2350_v36, 4  ;;  %7479 = vmatpush3.bf16.msra.mxu1 %v8139_v54  ;;  %v8147_v34 = vld [vmem:[#allocation5 + $0x8] sm:$0xff]  }
 0x23a   : > { %v2357_v6 = vsel %vm1467_vm3, %v1338_v31, -inf  ;;  %v2334_v49 = vrot.slane %v2333_v39, 1  ;;  %7480 = vmatprep.subr.bf16.mxu1 %v8141_v12  ;;  %v2314_v1 = vmax.f32 %v9178_v11, %v2313_v9  ;;  %v2321_v28 = vmax.f32 %v9184_v62, %v2320_v42  ;;  %v8145_v11 = vld [vmem:[#allocation5 + $0x10] sm:$0xff]  }
 0x23b   : > { %v2278_v52 = vrot.slane %v2277_v61, 1  ;;  %7551 = vmatpush3.bf16.msra.mxu0 %v8140_v8  ;;  %v2339_v43 = vrot.slane %v2338_v38, 2  ;;  %v2345_v58 = vmax.f32 %v2343_v35, %v2344_v48  ;;  %v2352_v59 = vmax.f32 %v2350_v36, %v2351_v26  ;;  %v9275_v35 = vld [vmem:[#allocation2 + $0x72] sm:$0xff] }
 0x23c   : > { %v2358_v14 = vrot.slane %v2357_v6, 4  ;;  %7552 = vmatprep.subr.bf16.mxu0 %v8142_v13  ;;  %v9259_v4 = vmax.f32 %v9193_v27, %v2327_v21  ;;  %v1288_v56 = vcombine.high %v760_v3, %v760_v3  ;;  %v2258_v54 = vmax.f32 %v2256_v10, %v2257_v32  ;;  %v8146_v21 = vld [vmem:[#allocation5 + $0x110] sm:$0xff]  }
 0x23d   : > { %v2265_v7 = vmax.f32 %v2263_v20, %v2264_v19  ;;  %v9261_v25 = vmax.f32 %v2270_v22, %v2271_v44  ;;  %7481 = vmatpush3.bf16.msra.mxu1 %v8141_v12  ;;  %v2346_v8 = vrot.slane %v2345_v58, 2  ;;  %v1295_v51 = vrot.slane %v760_v3, %v8728_v33  ;;  %v8148_v44 = vld [vmem:[#allocation5 + $0x108] sm:$0xff]  }
 0x23e   : > { %v2359_v29 = vmax.f32 %v2357_v6, %v2358_v14  ;;  %v1302_v17 = vrot.slane %v1288_v56, %v8728_v33  ;;  %v9265_v9 = vmax.f32 %v2333_v39, %v2334_v49  ;;  %v9267_v62 = vmax.f32 %v2277_v61, %v2278_v52  ;;  %7482 = vmatprep.subr.bf16.mxu1 %v8143_v15  ;;  %v9279_v6 = vld [vmem:[#allocation2 + $0x62] sm:$0xff]  ;;  %v9281_v49 = vld [vmem:[#allocation2 + $0x10] sm:$0xff] }
 0x23f   : > { %7553 = vmatpush3.bf16.msra.mxu0 %v8142_v13  ;;  %v2340_v27 = vmax.f32 %v2338_v38, %v2339_v43  ;;  %v2353_v42 = vrot.slane %v2352_v59, 2  ;;  %v1303_v0 = vcombine.high %v1295_v51, %v1295_v51  ;;  %v2280_v46 = vsel %vm1467_vm3, %v1295_v51, -inf }
 0x240   : > { %7554 = vmatprep.subr.bf16.mxu0 %v8144_v55  ;;  %v2360_v10 = vrot.slane %v2359_v29, 2  ;;  %v1304_v40 = vcombine.high %v1302_v17, %v1302_v17  ;;  %v2420_v18 = vmax.f32 %v2258_v54, %v2314_v1  ;;  %v2421_v20 = vmax.f32 %v2265_v7, %v2321_v28  ;;  %v9290_v54 = vld [vmem:[#allocation2] sm:$0xff] }
 0x241   : > { %v2422_v22 = vmax.f32 %v9261_v25, %v9259_v4  ;;  %v2281_v5 = vrot.slane %v2280_v46, 4  ;;  %7483 = vmatpush3.bf16.msra.mxu1 %v8143_v15  ;;  %v2347_v39 = vmax.f32 %v2345_v58, %v2346_v8  ;;  %v2287_v3 = vsel %vm1467_vm3, %v1303_v0, -inf  ;;  %v3175_v25 = vld [vmem:[#allocation2 + $0x11] sm:$0xff]  ;;  %v8150_v8 = vld [vmem:[#allocation5 + $0x100] sm:$0xff]  }
 0x242   : > { %v2294_v12 = vsel %vm1467_vm3, %v1302_v17, -inf  ;;  %v2301_v31 = vsel %vm1467_vm3, %v1304_v40, -inf  ;;  %7484 = vmatprep.subr.bf16.mxu1 %v8145_v11  ;;  %v2423_v36 = vmax.f32 %v9267_v62, %v9265_v9  ;;  %v2354_v13 = vmax.f32 %v2352_v59, %v2353_v42 }
 0x243   : > { %7555 = vmatpush3.bf16.msra.mxu0 %v8144_v55  ;;  %v2282_v32 = vmax.f32 %v2280_v46, %v2281_v5  ;;  %v2288_v19 = vrot.slane %v2287_v3, 4  ;;  %v2341_v61 = vrot.slane %v2340_v27, 1  ;;  %v2361_v38 = vmax.f32 %v2359_v29, %v2360_v10  ;;  %v8149_v29 = vld [vmem:[#allocation5] sm:$0xff]   ;;  %v8151_v46 = vld [vmem:[#allocation5 + $0xf8] sm:$0xff]  }
 0x244   : > { %7556 = vmatprep.subr.bf16.mxu0 %v8146_v21  ;;  %v2295_v48 = vrot.slane %v2294_v12, 4  ;;  %v2302_v26 = vrot.slane %v2301_v31, 4  ;;  %v2631_v58 = vpack.c.bf16 %v9199_v57, %v9114_v45  ;;  %v9287_v59 = vpack.c.bf16 %v9275_v35, %v9279_v6 }
 0x245   : > { %v2283_v52 = vrot.slane %v2282_v32, 2  ;;  %v2289_v43 = vmax.f32 %v2287_v3, %v2288_v19  ;;  %7485 = vmatpush3.bf16.msra.mxu1 %v8145_v11  ;;  %v2568_v14 = vsel %vm2512_vm4, %v2421_v20, %v2420_v18  ;;  %v2348_v15 = vrot.slane %v2347_v39, 1 }
 0x246   : > { %v2296_v55 = vmax.f32 %v2294_v12, %v2295_v48  ;;  %v2303_v1 = vmax.f32 %v2301_v31, %v2302_v26  ;;  %7486 = vmatprep.subr.bf16.mxu1 %v8147_v34  ;;  %v2355_v28 = vrot.slane %v2354_v13, 1  ;;  %7471 = vmatmul.mubr.bf16.gmra.mxu1 %v2631_v58  ;;  %v2600_v7 = vpack.c.bf16 %v9281_v49, %v9290_v54  ;;  %v8152_v12 = vld [vmem:[#allocation5 + $0x1b8] sm:$0xff]   ;;  %v9310_v58 = vld [vmem:[#allocation2 + $0x40] sm:$0xff] }
 0x247   : > { %7557 = vmatpush3.bf16.msra.mxu0 %v8146_v21  ;;  %v2284_v4 = vmax.f32 %v2282_v32, %v2283_v52  ;;  %v2290_v56 = vrot.slane %v2289_v43, 2  ;;  %v2362_v51 = vrot.slane %v2361_v38, 1  ;;  %v3183_v9 = vpack.c.bf16 %v9203_v37, %v3175_v25  ;;  %v9297_v37 = vld [vmem:[#allocation2 + $0x30] sm:$0xff]  ;;  %v8156_v25 = vld [vmem:[#allocation5 + $0x1a8] sm:$0xff]  }
 0x248   : > { %7558 = vmatprep.subr.bf16.mxu0 %v8148_v44  ;;  %v2297_v17 = vrot.slane %v2296_v55, 2  ;;  %v2304_v11 = vrot.slane %v2303_v1, 2  ;;  %7519 = vmatmul.mubr.bf16.gmra.mxu0 %v9287_v59  ;;  %v2569_v62 = vsel %vm2514_vm5, %v2422_v22, %v2568_v14  ;;  %v2342_v42 = vmax.f32 %v2340_v27, %v2341_v61  ;;  %v9300_v61 = vld [vmem:[#allocation2 + $0x50] sm:$0xff] }
 0x249   : > { %v2285_v21 = vrot.slane %v2284_v4, 1  ;;  %v2291_v10 = vmax.f32 %v2289_v43, %v2290_v56  ;;  %7487 = vmatpush3.bf16.msra.mxu1 %v8147_v34  ;;  %7490 = vmatprep.mubr.bf16.mxu1 %v2600_v7  ;;  %v2349_v18 = vmax.f32 %v2347_v39, %v2348_v15  ;;  %v2356_v20 = vmax.f32 %v2354_v13, %v2355_v28  ;;  %v8153_v14 = vld [vmem:[#allocation5 + $0xf0] sm:$0xff]  }
 0x24a   : > { %v2298_v0 = vmax.f32 %v2296_v55, %v2297_v17  ;;  %v2305_v40 = vmax.f32 %v2303_v1, %v2304_v11  ;;  %7562 = vmatprep.mubr.bf16.mxu0 %v3183_v9  ;;  %7488 = vmatprep.subr.bf16.mxu1 %v8149_v29  ;;  %v2363_v22 = vmax.f32 %v2361_v38, %v2362_v51  ;;  %v8154_v28 = vld [vmem:[#allocation5 + $0x1b0] sm:$0xff]   ;;  %v8157_v51 = vld [vmem:[#allocation5 + $0xe0] sm:$0xff]   ;;  %v8159_v9 = vld [vmem:[#allocation5 + $0xd8] sm:$0xff]  }
 0x24b   : > { %7559 = vmatpush3.bf16.msra.mxu0 %v8148_v44  ;;  %v2286_v5 = vmax.f32 %v2284_v4, %v2285_v21  ;;  %v2292_v3 = vrot.slane %v2291_v10, 1  ;;  %v2570_v34 = vsel %vm2516_vm6, %v2423_v36, %v2569_v62  ;;  %v2594_v44 = vld [vmem:[#allocation2 + $0x20] sm:$0xff]  ;;  %v3334_v39 = vpack.c.bf16 %v9227_v53, %v9196_v24  ;;  %v8160_v62 = vld [vmem:[#allocation5 + $0x198] sm:$0xff]   ;;  %v8164_v21 = vld [vmem:[#allocation5 + $0x188] sm:$0xff]  }
 0x24c   : > { %7560 = vmatprep.subr.bf16.mxu0 %v8150_v8  ;;  %v2299_v27 = vrot.slane %v2298_v0, 1  ;;  %v2306_v31 = vrot.slane %v2305_v40, 1  ;;  %v3335_v13 = vpack.c.bf16 %v9279_v6, %v9216_v30  ;;  %v2601_v38 = vpack.c.bf16 %v9297_v37, %v2594_v44  ;;  %v8158_v11 = vld [vmem:[#allocation5 + $0x1a0] sm:$0xff]   ;;  %v8187_v30 = vld [vmem:[#allocation5 + $0x1d8] sm:$0xff]   ;;  %v8188_v53 = vld [vmem:[#allocation5 + $0x1d0] sm:$0xff]  }
 0x24d   : > { %v2293_v32 = vmax.f32 %v2291_v10, %v2292_v3  ;;  %v2424_v19 = vmax.f32 %v2286_v5, %v2342_v42  ;;  %7489 = vmatpush3.bf16.msra.mxu1 %v8149_v29  ;;  %v3184_v43 = vpack.c.bf16 %v9225_v63, %v9189_v23  ;;  %v9314_v1 = vpack.c.bf16 %v9300_v61, %v9310_v58  ;;  %v8155_v63 = vld [vmem:[#allocation5 + $0xe8] sm:$0xff]   ;;  %v9324_v29 = vld [vmem:[#allocation2 + $0x70] sm:$0xff]  ;;  %v8165_v10 = vld [vmem:[#allocation5 + $0xc0] sm:$0xff]  }
 0x24e   : > { %v2300_v48 = vmax.f32 %v2298_v0, %v2299_v27  ;;  %v2307_v26 = vmax.f32 %v2305_v40, %v2306_v31  ;;  %7522 = vmatprep.subr.bf16.mxu1 %v8151_v46  ;;  %v3185_v56 = vpack.c.bf16 %v9114_v45, %v9214_v47  ;;  %v3033_v17 = vpack.c.bf16 %v2594_v44, %v9281_v49  ;;  %v8161_v42 = vld [vmem:[#allocation5 + $0xd0] sm:$0xff]   ;;  %v8163_v49 = vld [vmem:[#allocation5 + $0xc8] sm:$0xff]   ;;  %v8166_v0 = vld [vmem:[#allocation5 + $0x180] sm:$0xff]  }
 0x24f   : > { %7561 = vmatpush3.bf16.msra.mxu0 %v8150_v8  ;;  %v2425_v52 = vmax.f32 %v2293_v32, %v2349_v18  ;;  %v2571_v36 = vsel %vm2518_vm7, %v2424_v19, %v2570_v34  ;;  %v2598_v8 = vld [vmem:[#allocation2 + $0x60] sm:$0xff]  ;;  %v8167_v40 = vld [vmem:[#allocation5 + $0x178] sm:$0xff]   ;;  %v3034_v18 = vpack.c.bf16 %v9310_v58, %v9297_v37  ;;  %v8169_v5 = vld [vmem:[#allocation5 + $0x170] sm:$0xff]  }
 0x250   : > { %7594 = vmatprep.subr.bf16.mxu0 %v8152_v12  ;;  %v2426_v15 = vmax.f32 %v2300_v48, %v2356_v20  ;;  %v2427_v55 = vmax.f32 %v2307_v26, %v2363_v22  ;;  %7491 = vmatmul.mubr.bf16.vlgmr.msra.gmra.mxu1 %v2601_v38  ;;  %v2603_v45 = vpack.c.bf16 %v9324_v29, %v2598_v8  ;;  %v8170_v3 = vld [vmem:[#allocation5 + $0x230] sm:$0xff]   ;;  %v8171_v22 = vld [vmem:[#allocation5 + $0x168] sm:$0xff]   ;;  %v8173_v19 = vld [vmem:[#allocation5 + $0x160] sm:$0xff]  }
 0x251   : > { %v2572_v4 = vsel %vm2520_vm8, %v2425_v52, %v2571_v36  ;;  %7523 = vmatpush3.bf16.msra.mxu1 %v8151_v46  ;;  %7494 = vmatprep.mubr.bf16.mxu1 %v9314_v1  ;;  %v8168_v46 = vld [vmem:[#allocation5 + $0x238] sm:$0xff]   ;;  %v3035_v20 = vpack.c.bf16 %v2598_v8, %v9300_v61  ;;  %v8172_v27 = vld [vmem:[#allocation5 + $0x228] sm:$0xff]   ;;  %v8174_v44 = vld [vmem:[#allocation5 + $0x220] sm:$0xff]  }
 0x252   : > { %7563 = vmatmul.mubr.bf16.vlgmr.msra.gmra.mxu0 %v3184_v43  ;;  %v2573_v23 = vsel %vm2522_vm9, %v2426_v15, %v2572_v4  ;;  %7524 = vmatprep.subr.bf16.mxu1 %v8153_v14  ;;  %v3325_v31 = vld [vmem:[#allocation2 + $0x12] sm:$0xff]  ;;  %v8180_v52 = vld [vmem:[#allocation5 + $0x208] sm:$0xff]   ;;  %v8182_v36 = vld [vmem:[#allocation5 + $0x200] sm:$0xff]  }
 0x253   : > { %7595 = vmatpush3.bf16.msra.mxu0 %v8152_v12  ;;  %v9322_v7 = vsel %vm2524_vm10, %v2427_v55, %v2573_v23  ;;  %7566 = vmatprep.mubr.bf16.mxu0 %v3185_v56  ;;  %v3333_v32 = vpack.c.bf16 %v9205_v16, %v3325_v31  ;;  %v8175_v61 = vld [vmem:[#allocation5 + $0x158] sm:$0xff]   ;;  %v8177_v26 = vld [vmem:[#allocation5 + $0x150] sm:$0xff]   ;;  %v8185_v15 = vld [vmem:[#allocation5 + $0x1e8] sm:$0xff]  }
 0x254   : > { %2591 = vst [vmem:[#allocation2 + $0x81] sm:$0xff] %v9322_v7  ;;  %7596 = vmatprep.subr.bf16.mxu0 %v8154_v28  ;;  %v3186_v47 = vpack.c.bf16 %v9322_v7, %v9199_v57  ;;  %v8162_v57 = vld [vmem:[#allocation5 + $0x190] sm:$0xff]   ;;  %v8176_v48 = vld [vmem:[#allocation5 + $0x218] sm:$0xff]   ;;  %v8186_v24 = vld [vmem:[#allocation5 + $0x1e0] sm:$0xff]  }
 0x255   : > { %7525 = vmatpush3.bf16.msra.mxu1 %v8153_v14  ;;  %v8178_v16 = vld [vmem:[#allocation5 + $0x210] sm:$0xff]   ;;  %v8183_v43 = vld [vmem:[#allocation5 + $0x1f8] sm:$0xff]   ;;  %v8190_v6 = vld [vmem:[#allocation5 + $0x1c0] sm:$0xff]  }
 0x256   : > { %7526 = vmatprep.subr.bf16.mxu1 %v8155_v63  ;;  %v8184_v58 = vld [vmem:[#allocation5 + $0x1f0] sm:$0xff]  }
 0x257   : > { %7597 = vmatpush3.bf16.msra.mxu0 %v8154_v28  ;;  %v3783_v55 = vld [vmem:[#allocation2 + $0x92] sm:$0xff] }
 0x258   : > { %7598 = vmatprep.subr.bf16.mxu0 %v8156_v25  ;;  %7495 = vmatmul.mubr.bf16.gmra.mxu1 %v2603_v45 }
 0x259   : > { %7527 = vmatpush3.bf16.msra.mxu1 %v8155_v63  ;;  %7538 = vmatprep.mubr.bf16.mxu1 %v3033_v17 }
 0x25a   : > { %7567 = vmatmul.mubr.bf16.gmra.mxu0 %v3186_v47  ;;  %7528 = vmatprep.subr.bf16.mxu1 %v8157_v51 }
 0x25b   : > { %7599 = vmatpush3.bf16.msra.mxu0 %v8156_v25  ;;  %7610 = vmatprep.mubr.bf16.mxu0 %v2601_v38  ;;  %v3032_v12 = vld [vmem:[#allocation2 + $0x80] sm:$0xff]  ;;  %v8179_v38 = vld [vmem:[#allocation5 + $0x148] sm:$0xff]  }
 0x25c   : > { %7600 = vmatprep.subr.bf16.mxu0 %v8158_v11  ;;  %v3036_v37 = vpack.c.bf16 %v3032_v12, %v9324_v29  ;;  %v3487_v34 = vpack.c.bf16 %v9290_v54, %v3032_v12  ;;  %v3332_v14 = vld [vmem:[#allocation2 + $0x82] sm:$0xff] }
 0x25d   : > { %7529 = vmatpush3.bf16.msra.mxu1 %v8157_v51  ;;  %v3787_v28 = vpack.c.bf16 %v3783_v55, %v3332_v14 }
 0x25e   : > { %7530 = vmatprep.subr.bf16.mxu1 %v8159_v9 }
 0x25f   : > { %7601 = vmatpush3.bf16.msra.mxu0 %v8158_v11 }
 0x260   : > { %7602 = vmatprep.subr.bf16.mxu0 %v8160_v62 }
 0x261   : > { %7531 = vmatpush3.bf16.msra.mxu1 %v8159_v9 }
 0x262   : > { %7532 = vmatprep.subr.bf16.mxu1 %v8161_v42 }
 0x263   : > { %7603 = vmatpush3.bf16.msra.mxu0 %v8160_v62 }
 0x264   : > { %7604 = vmatprep.subr.bf16.mxu0 %v8162_v57 }
 0x265   : > { %7533 = vmatpush3.bf16.msra.mxu1 %v8161_v42 }
 0x266   : > { %7534 = vmatprep.subr.bf16.mxu1 %v8163_v49 }
 0x267   : > { %7605 = vmatpush3.bf16.msra.mxu0 %v8162_v57 }
 0x268   : > { %7606 = vmatprep.subr.bf16.mxu0 %v8164_v21 }
 0x269   : > { %7535 = vmatpush3.bf16.msra.mxu1 %v8163_v49 }
 0x26a   : > { %7536 = vmatprep.subr.bf16.mxu1 %v8165_v10 }
 0x26b   : > { %7607 = vmatpush3.bf16.msra.mxu0 %v8164_v21 }
 0x26c   : > { %7608 = vmatprep.subr.bf16.mxu0 %v8166_v0 }
 0x26d   : > { %7537 = vmatpush3.bf16.msra.mxu1 %v8165_v10 }
 0x26e   : > { %7570 = vmatprep.subr.bf16.mxu1 %v8167_v40 }
 0x26f   : > { %7609 = vmatpush3.bf16.msra.mxu0 %v8166_v0 }
 0x270   : > { %7642 = vmatprep.subr.bf16.mxu0 %v8168_v46  ;;  %7539 = vmatmul.mubr.bf16.vlgmr.msra.gmra.mxu1 %v3034_v18 }
 0x271   : > { %7542 = vmatprep.mubr.bf16.mxu1 %v3035_v20  ;;  %7571 = vmatpush3.bf16.msra.mxu1 %v8167_v40 }
 0x272   : > { %7611 = vmatmul.mubr.bf16.vlgmr.msra.gmra.mxu0 %v9314_v1  ;;  %7572 = vmatprep.subr.bf16.mxu1 %v8169_v5  ;;  %v3336_v1 = vpack.c.bf16 %v3332_v14, %v9275_v35  ;;  %v3631_v35 = vld [vmem:[#allocation2 + $0x71] sm:$0xff] }
 0x273   : > { %7614 = vmatprep.mubr.bf16.mxu0 %v2603_v45  ;;  %7643 = vmatpush3.bf16.msra.mxu0 %v8168_v46 }
 0x274   : > { %7644 = vmatprep.subr.bf16.mxu0 %v8170_v3 }
 0x275   : > { %7573 = vmatpush3.bf16.msra.mxu1 %v8169_v5 }
 0x276   : > { %7574 = vmatprep.subr.bf16.mxu1 %v8171_v22 }
 0x277   : > { %7645 = vmatpush3.bf16.msra.mxu0 %v8170_v3 }
 0x278   : > { %7543 = vmatmul.mubr.bf16.gmra.mxu1 %v3036_v37  ;;  %7646 = vmatprep.subr.bf16.mxu0 %v8172_v27 }
 0x279   : > { %7586 = vmatprep.mubr.bf16.mxu1 %v3333_v32  ;;  %7575 = vmatpush3.bf16.msra.mxu1 %v8171_v22 }
 0x27a   : > { %7615 = vmatmul.mubr.bf16.gmra.mxu0 %v3487_v34  ;;  %7576 = vmatprep.subr.bf16.mxu1 %v8173_v19 }
 0x27b   : > { %7658 = vmatprep.mubr.bf16.mxu0 %v9222_v50  ;;  %7647 = vmatpush3.bf16.msra.mxu0 %v8172_v27  ;;  %v8181_v50 = vld [vmem:[#allocation5 + $0x140] sm:$0xff]  }
 0x27c   : > { %7648 = vmatprep.subr.bf16.mxu0 %v8174_v44 }
 0x27d   : > { %7577 = vmatpush3.bf16.msra.mxu1 %v8173_v19 }
 0x27e   : > { %7578 = vmatprep.subr.bf16.mxu1 %v8175_v61 }
 0x27f   : > { %7649 = vmatpush3.bf16.msra.mxu0 %v8174_v44 }
 0x280   : > { %7650 = vmatprep.subr.bf16.mxu0 %v8176_v48 }
 0x281   : > { %7579 = vmatpush3.bf16.msra.mxu1 %v8175_v61 }
 0x282   : > { %7580 = vmatprep.subr.bf16.mxu1 %v8177_v26 }
 0x283   : > { %7651 = vmatpush3.bf16.msra.mxu0 %v8176_v48 }
 0x284   : > { %7652 = vmatprep.subr.bf16.mxu0 %v8178_v16 }
 0x285   : > { %7581 = vmatpush3.bf16.msra.mxu1 %v8177_v26 }
 0x286   : > { %7582 = vmatprep.subr.bf16.mxu1 %v8179_v38 }
 0x287   : > { %7653 = vmatpush3.bf16.msra.mxu0 %v8178_v16 }
 0x288   : > { %7654 = vmatprep.subr.bf16.mxu0 %v8180_v52 }
 0x289   : > { %7583 = vmatpush3.bf16.msra.mxu1 %v8179_v38 }
 0x28a   : > { %7584 = vmatprep.subr.bf16.mxu1 %v8181_v50 }
 0x28b   : > { %7655 = vmatpush3.bf16.msra.mxu0 %v8180_v52 }
 0x28c   : > { %7656 = vmatprep.subr.bf16.mxu0 %v8182_v36 }
 0x28d   : > { %7585 = vmatpush3.bf16.msra.mxu1 %v8181_v50 }
 0x28e   : > { %7618 = vmatprep.subr.bf16.mxu1 %v8183_v43 }
 0x28f   : > { %7657 = vmatpush3.bf16.msra.mxu0 %v8182_v36 }
 0x290   : > { %7686 = vmatprep.subr.bf16.mxu0 %v9290_v54  ;;  %7587 = vmatmul.mubr.bf16.vlgmr.msra.gmra.mxu1 %v3334_v39  ;;  %v3633_v39 = vld [vmem:[#allocation2 + $0x91] sm:$0xff] }
 0x291   : > { %7590 = vmatprep.mubr.bf16.mxu1 %v3335_v13  ;;  %7619 = vmatpush3.bf16.msra.mxu1 %v8183_v43  ;;  %v3637_v13 = vpack.c.bf16 %v3633_v39, %v9322_v7 }
 0x292   : > { %7659 = vmatmul.mubr.bf16.vlgmr.msra.gmra.mxu0 %v9238_v41  ;;  %7620 = vmatprep.subr.bf16.mxu1 %v8184_v58  ;;  %v8189_v41 = vld [vmem:[#allocation5 + $0x1c8] sm:$0xff]  }
 0x293   : > { %7662 = vmatprep.mubr.bf16.mxu0 %v9287_v59  ;;  %v3630_v59 = vld [vmem:[#allocation2 + $0x61] sm:$0xff] }
 0x295   : > { %7621 = vmatpush3.bf16.msra.mxu1 %v8184_v58 }
 0x296   : > { %7622 = vmatprep.subr.bf16.mxu1 %v8185_v15 }
 0x298   : > { %7591 = vmatmul.mubr.bf16.gmra.mxu1 %v3336_v1 }
 0x299   : > { %7634 = vmatprep.mubr.bf16.mxu1 %v9212_v2  ;;  %7623 = vmatpush3.bf16.msra.mxu1 %v8185_v15  ;;  %v3636_v2 = vpack.c.bf16 %v3631_v35, %v3630_v59  ;;  %v8196_v35 = vld [vmem:[#allocation8 + $0x28] sm:$0xff]   ;;  %v8197_v59 = vld [vmem:[#allocation8 + $0x60] sm:$0xff]  }
 0x29a   : > { %7663 = vmatmul.mubr.bf16.gmra.mxu0 %v3787_v28  ;;  %7624 = vmatprep.subr.bf16.mxu1 %v8186_v24 }
 0x29b   : > { %7702 = vmatprep.mubr.msk.bf16.mxu0 %vm8535_vm11, %v9290_v54 }
 0x29d   : > { %7625 = vmatpush3.bf16.msra.mxu1 %v8186_v24  ;;  %v8191_v24 = vld [vmem:[#allocation8 + $0x78] sm:$0xff]  }
 0x29e   : > { %7626 = vmatprep.subr.bf16.mxu1 %v8187_v30 }
 0x2a1   : > { %7627 = vmatpush3.bf16.msra.mxu1 %v8187_v30  ;;  %v8192_v30 = vld [vmem:[#allocation8 + $0x38] sm:$0xff]  }
 0x2a2   : > { %7628 = vmatprep.subr.bf16.mxu1 %v8188_v53  ;;  %7687 = vmatpush3.bf16.msra.mxu0 %v8192_v30 }
 0x2a3   : > { %7688 = vmatprep.subr.bf16.mxu0 %v9290_v54 }
 0x2a5   : > { %7629 = vmatpush3.bf16.msra.mxu1 %v8188_v53  ;;  %v8193_v53 = vld [vmem:[#allocation8 + $0x70] sm:$0xff]  }
 0x2a6   : > { %7630 = vmatprep.subr.bf16.mxu1 %v8189_v41 }
 0x2a9   : > { %7631 = vmatpush3.bf16.msra.mxu1 %v8189_v41  ;;  %v8194_v41 = vld [vmem:[#allocation8 + $0x30] sm:$0xff]  }
 0x2aa   : > { %7632 = vmatprep.subr.bf16.mxu1 %v8190_v6  ;;  %7689 = vmatpush3.bf16.msra.mxu0 %v8194_v41 }
 0x2ab   : > { %7690 = vmatprep.subr.bf16.mxu0 %v9290_v54 }
 0x2ad   : > { %7633 = vmatpush3.bf16.msra.mxu1 %v8190_v6  ;;  %v8195_v6 = vld [vmem:[#allocation8 + $0x68] sm:$0xff]  }
 0x2ae   : > { %7666 = vmatprep.subr.bf16.mxu1 %v9290_v54  ;;  %7691 = vmatpush3.bf16.msra.mxu0 %v8196_v35 }
 0x2af   : > { %7692 = vmatprep.subr.bf16.mxu0 %v9290_v54 }
 0x2b0   : > { %7635 = vmatmul.mubr.bf16.vlgmr.msra.gmra.mxu1 %v9234_v60 }
 0x2b1   : > { %7638 = vmatprep.mubr.bf16.mxu1 %v3636_v2  ;;  %7667 = vmatpush3.bf16.msra.mxu1 %v8191_v24  ;;  %v8198_v2 = vld [vmem:[#allocation8 + $0x20] sm:$0xff]  }
 0x2b2   : > { %7668 = vmatprep.subr.bf16.mxu1 %v9290_v54  ;;  %7693 = vmatpush3.bf16.msra.mxu0 %v8198_v2 }
 0x2b3   : > { %7694 = vmatprep.subr.bf16.mxu0 %v9290_v54 }
 0x2b5   : > { %7669 = vmatpush3.bf16.msra.mxu1 %v8193_v53 }
 0x2b6   : > { %7670 = vmatprep.subr.bf16.mxu1 %v9290_v54 }
 0x2b8   : > { %7639 = vmatmul.mubr.bf16.gmra.mxu1 %v3637_v13  ;;  %v8199_v13 = vld [vmem:[#allocation8 + $0x58] sm:$0xff]  }
 0x2b9   : > { %7671 = vmatpush3.bf16.msra.mxu1 %v8195_v6  ;;  %7682 = vmatprep.mubr.msk.bf16.mxu1 %vm8535_vm11, %v9290_v54 }
 0x2ba   : > { %7672 = vmatprep.subr.bf16.mxu1 %v9290_v54 }
 0x2bd   : > { %7673 = vmatpush3.bf16.msra.mxu1 %v8197_v59 }
 0x2be   : > { %7674 = vmatprep.subr.bf16.mxu1 %v9290_v54 }
 0x2c1   : > { %7675 = vmatpush3.bf16.msra.mxu1 %v8199_v13 }
 0x2c2   : > { %7676 = vmatprep.subr.bf16.mxu1 %v9290_v54 }
 0x2f0   : > { %v9353_v4 = vpop.f32.mrf.mxu1 }
 0x2f2   : > { %v9355_v56 = vpop.f32.mrf.mxu1  ;;  %v9361_v25 = vpop.f32.mrf.mxu0 }
 0x2f4   : > { %v9357_v23 = vpop.f32.mrf.mxu1  ;;  %v9363_v45 = vpop.f32.mrf.mxu0 }
 0x2f6   : > { %v9359_v63 = vpop.f32.mrf.mxu1  ;;  %v9365_v51 = vpop.f32.mrf.mxu0 }
 0x2f8   : > { %v9369_v17 = vpop.f32.mrf.mxu0 }
 0x306   : > { %v7472_v29 = vpop.f32.mrf.mxu1 }
 0x308   : > { %v2747_v8 = vpop.f32.mrf.mxu1  ;;  %v7520_v9 = vpop.f32.mrf.mxu0 }
 0x30a   : > { %v7473_v60 = vpop.f32.mrf.mxu1  ;;  %v3002_v57 = vpop.f32.mrf.mxu0 }
 0x30c   : > { %v2750_v47 = vpop.f32.mrf.mxu1  ;;  %v7521_v46 = vpop.f32.mrf.mxu0 }
 0x30e   : > { %v3005_v27 = vpop.f32.mrf.mxu0 }
 0x310   : > { %v9367_v7 = vpop.f32.mrf.mxu1 }
 0x312   : > { %v9371_v11 = vpop.f32.mrf.mxu1  ;;  %v9381_v31 = vpop.f32.mrf.mxu0 }
 0x314   : > { %v9373_v62 = vpop.f32.mrf.mxu1  ;;  %v9383_v34 = vpop.f32.mrf.mxu0 }
 0x316   : > { %v9375_v42 = vpop.f32.mrf.mxu1  ;;  %v9385_v32 = vpop.f32.mrf.mxu0 }
 0x318   : > { %v7496_v49 = vpop.f32.mrf.mxu1  ;;  %v9387_v19 = vpop.f32.mrf.mxu0 }
 0x319   : > { %v2869_v21 = vadd.f32 %v7496_v49, %v7472_v29  ;;  %v8200_v29 = vld [vmem:[#allocation8 + $0x18] sm:$0xff]  }
 0x31a   : > { %v2860_v10 = vpop.f32.mrf.mxu1  ;;  %v9393_v48 = vpop.f32.mrf.mxu0  ;;  %7695 = vmatpush3.bf16.msra.mxu0 %v8200_v29 }
 0x31b   : > { %v2861_v0 = vadd.f32 %v2860_v10, %v2747_v8  ;;  %v9377_v40 = vadd.f32 %v7520_v9, %v2869_v21  ;;  %7696 = vmatprep.subr.bf16.mxu0 %v9290_v54  ;;  %v8202_v9 = vld [vmem:[#allocation8 + $0x10] sm:$0xff]   ;;  %v8203_v21 = vld [vmem:[#allocation8 + $0x48] sm:$0xff]  }
 0x31c   : > { %v7497_v18 = vpop.f32.mrf.mxu1  ;;  %v3302_v38 = vpop.f32.mrf.mxu0  ;;  %v8204_v10 = vld [vmem:[#allocation8 + $0x8] sm:$0xff]  }
 0x31d   : > { %v2872_v20 = vadd.f32 %v7497_v18, %v7473_v60  ;;  %v3021_v5 = vadd.f32 %v3002_v57, %v2861_v0  ;;  %v8206_v18 = vld [vmem:[#allocation8] sm:$0xff]  }
 0x31e   : > { %v2863_v3 = vpop.f32.mrf.mxu1  ;;  %v9401_v43 = vpop.f32.mrf.mxu0  ;;  %7697 = vmatpush3.bf16.msra.mxu0 %v8202_v9 }
 0x31f   : > { %v2864_v12 = vadd.f32 %v2863_v3, %v2750_v47  ;;  %v9379_v22 = vadd.f32 %v7521_v46, %v2872_v20  ;;  %v8201_v47 = vld [vmem:[#allocation8 + $0x50] sm:$0xff]   ;;  %7698 = vmatprep.subr.bf16.mxu0 %v9290_v54  ;;  %v8205_v46 = vld [vmem:[#allocation8 + $0x40] sm:$0xff]  }
 0x320   : > { %v3305_v1 = vpop.f32.mrf.mxu0  ;;  %7677 = vmatpush3.bf16.msra.mxu1 %v8201_v47 }
 0x321   : > { %v3022_v37 = vadd.f32 %v3005_v27, %v2864_v12  ;;  %7678 = vmatprep.subr.bf16.mxu1 %v9290_v54  ;;  %v2853_v12 = vadd.f32 %v9367_v7, %v9353_v4  ;;  %v2845_v27 = vadd.f32 %v9371_v11, %v9355_v56 }
 0x322   : > { %7699 = vmatpush3.bf16.msra.mxu0 %v8204_v10 }
 0x323   : > { %7700 = vmatprep.subr.bf16.mxu0 %v9290_v54 }
 0x324   : > { %7679 = vmatpush3.bf16.msra.mxu1 %v8203_v21 }
 0x325   : > { %7680 = vmatprep.subr.bf16.mxu1 %v9290_v54 }
 0x326   : > { %7701 = vmatpush3.bf16.msra.mxu0 %v8206_v18 }
 0x327   : > { %7726 = vmatprep.subr.bf16.mxu0 %v9290_v54 }
 0x328   : > { %7681 = vmatpush3.bf16.msra.mxu1 %v8205_v46 }
 0x329   : > { %7706 = vmatprep.subr.bf16.mxu1 %v9290_v54  ;;  %v3017_v54 = vadd.f32 %v9363_v45, %v2845_v27 }
 0x330   : > { %v9389_v44 = vpop.f32.mrf.mxu1 }
 0x332   : > { %v9391_v61 = vpop.f32.mrf.mxu1  ;;  %v9415_v39 = vpop.f32.mrf.mxu0 }
 0x333   : > { %v3167_v56 = vadd.f32 %v9391_v61, %v3017_v54 }
 0x334   : > { %v9395_v26 = vpop.f32.mrf.mxu1  ;;  %v9419_v8 = vpop.f32.mrf.mxu0 }
 0x335   : > { %v3317_v24 = vadd.f32 %v9383_v34, %v3167_v56 }
 0x336   : > { %v9397_v16 = vpop.f32.mrf.mxu1  ;;  %v9423_v57 = vpop.f32.mrf.mxu0 }
 0x338   : > { %v9399_v52 = vpop.f32.mrf.mxu1  ;;  %v3590_v0 = vpop.f32.mrf.mxu0 }
 0x33a   : > { %v3152_v50 = vpop.f32.mrf.mxu1 }
 0x33b   : > { %v3171_v36 = vadd.f32 %v3152_v50, %v3021_v5  ;;  %v9433_v5 = vpop.f32.mrf.mxu0  ;;  %v2856_v50 = vadd.f32 %v9373_v62, %v9357_v23 }
 0x33c   : > { %v9403_v58 = vpop.f32.mrf.mxu1 }
 0x33d   : > { %v9405_v14 = vadd.f32 %v3302_v38, %v3171_v36  ;;  %v3019_v36 = vadd.f32 %v9361_v25, %v2853_v12  ;;  %v3020_v7 = vadd.f32 %v9365_v51, %v2856_v50  ;;  %v3173_v51 = vadd.f32 %v9399_v52, %v9377_v40  ;;  %v9475_v40 = vld [vmem:[%s9833_s5 + $0x1] ss:$0 sm:$0xff] }
 0x33e   : > { %v3155_v15 = vpop.f32.mrf.mxu1  ;;  %v3174_v34 = vadd.f32 %v9403_v58, %v9379_v22 }
 0x33f   : > { %v3172_v55 = vadd.f32 %v3155_v15, %v3022_v37  ;;  %v9441_v37 = vpop.f32.mrf.mxu0  ;;  %v2848_v15 = vadd.f32 %v9375_v42, %v9359_v63  ;;  %v3170_v11 = vadd.f32 %v9395_v26, %v3020_v7 }
 0x341   : > { %v9407_v28 = vadd.f32 %v3305_v1, %v3172_v55  ;;  %v3169_v55 = vadd.f32 %v9389_v44, %v3019_v36  ;;  %v9450_v1 = vpop.f32.mrf.mxu0  ;;  %v3018_v23 = vadd.f32 %v9369_v17, %v2848_v15  ;;  %v3320_v61 = vadd.f32 %v9385_v32, %v3170_v11 }
 0x342   : > { %v3323_v32 = vadd.f32 %v9393_v48, %v3173_v51 }
 0x343   : > { %v9456_v62 = vpop.f32.mrf.mxu0  ;;  %v3319_v25 = vadd.f32 %v9381_v31, %v3169_v55  ;;  %v3168_v42 = vadd.f32 %v9397_v16, %v3018_v23 }
 0x345   : > { %v3318_v41 = vadd.f32 %v9387_v19, %v3168_v42 }
 0x350   : > { %v7588_v60 = vpop.f32.mrf.mxu1 }
 0x351   : > { %v3469_v44 = vadd.f32 %v7588_v60, %v3319_v25 }
 0x352   : > { %v3436_v49 = vpop.f32.mrf.mxu1  ;;  %v7660_v45 = vpop.f32.mrf.mxu0 }
 0x353   : > { %v3467_v30 = vadd.f32 %v3436_v49, %v3317_v24  ;;  %v3620_v31 = vadd.f32 %v9415_v39, %v3469_v44  ;;  %v3324_v49 = vadd.f32 %v9401_v43, %v3174_v34 }
 0x354   : > { %v7589_v20 = vpop.f32.mrf.mxu1  ;;  %v3887_v17 = vpop.f32.mrf.mxu0 }
 0x355   : > { %v3470_v53 = vadd.f32 %v7589_v20, %v3320_v61  ;;  %v3618_v59 = vadd.f32 %v9419_v8, %v3467_v30  ;;  %v9481_v8 = vld [vmem:[%s9834_s6 + $0x1] ss:$0 sm:$0xff] }
 0x356   : > { %v3439_v3 = vpop.f32.mrf.mxu1  ;;  %v7661_v2 = vpop.f32.mrf.mxu0 }
 0x357   : > { %v3468_v16 = vadd.f32 %v3439_v3, %v3318_v41  ;;  %v3621_v39 = vadd.f32 %v9423_v57, %v3470_v53 }
 0x358   : > { %v7592_v38 = vpop.f32.mrf.mxu1  ;;  %v3890_v10 = vpop.f32.mrf.mxu0 }
 0x359   : > { %v3473_v29 = vadd.f32 %v7592_v38, %v3323_v32  ;;  %v3619_v47 = vadd.f32 %v3590_v0, %v3468_v16 }
 0x35a   : > { %v3452_v4 = vpop.f32.mrf.mxu1  ;;  %v7664_v55 = vpop.f32.mrf.mxu0 }
 0x35b   : > { %v3471_v9 = vadd.f32 %v3452_v4, %v9405_v14  ;;  %v3624_v12 = vadd.f32 %v9433_v5, %v3473_v29 }
 0x35c   : > { %v7593_v63 = vpop.f32.mrf.mxu1 }
 0x35d   : > { %v3474_v3 = vadd.f32 %v7593_v63, %v3324_v49  ;;  %v3622_v43 = vadd.f32 %v9441_v37, %v3471_v9 }
 0x35e   : > { %v9464_v26 = vpop.f32.mrf.mxu1 }
 0x35f   : > { %v9500_v25 = vadd.f32 %v9450_v1, %v3474_v3 }
 0x370   : > { %v7636_v6 = vpop.f32.mrf.mxu1 }
 0x371   : > { %v3770_v35 = vadd.f32 %v7636_v6, %v3620_v31 }
 0x372   : > { %v3737_v52 = vpop.f32.mrf.mxu1 }
 0x373   : > { %v3920_v19 = vadd.f32 %v7660_v45, %v3770_v35  ;;  %v3768_v13 = vadd.f32 %v3737_v52, %v3618_v59 }
 0x374   : > { %v7637_v22 = vpop.f32.mrf.mxu1 }
 0x375   : > { %v3933_v48 = vmul.f32 %v9475_v40, %v3920_v19  ;;  %v3918_v58 = vadd.f32 %v3887_v17, %v3768_v13  ;;  %v3771_v60 = vadd.f32 %v7637_v22, %v3621_v39 }
 0x376   : > { %v3740_v21 = vpop.f32.mrf.mxu1 }
 0x377   : > { %v3946_v57 = vadd.f32 %v9481_v8, %v3933_v48  ;;  %v3931_v46 = vmul.f32 %v9475_v40, %v3918_v58  ;;  %v3921_v18 = vadd.f32 %v7661_v2, %v3771_v60  ;;  %v3769_v20 = vadd.f32 %v3740_v21, %v3619_v47 }
 0x378   : > { %v7640_v27 = vpop.f32.mrf.mxu1 }
 0x379   : > { %v3954_v38 = vmax.f32 %v3946_v57, 0.0  ;;  %v3944_v50 = vadd.f32 %v9481_v8, %v3931_v46  ;;  %v3934_v0 = vmul.f32 %v9475_v40, %v3921_v18  ;;  %v3919_v14 = vadd.f32 %v3890_v10, %v3769_v20 }
 0x37a   : > { %v3774_v36 = vadd.f32 %v7640_v27, %v3624_v12  ;;  %v3753_v15 = vpop.f32.mrf.mxu1 }
 0x37b   : > { %v4002_v54 = vcombine.high %v3954_v38, %v3954_v38  ;;  %v4009_v4 = vrot.slane %v3954_v38, %v8728_v33  ;;  %v3952_v56 = vmax.f32 %v3944_v50, 0.0  ;;  %v3947_v7 = vadd.f32 %v9481_v8, %v3934_v0 }
 0x37c   : > { %v3932_v5 = vmul.f32 %v9475_v40, %v3919_v14  ;;  %v9495_v11 = vadd.f32 %v7664_v55, %v3774_v36  ;;  %v9497_v23 = vadd.f32 %v3753_v15, %v3622_v43 }
 0x37d   : > { %v4016_v63 = vrot.slane %v4002_v54, %v8728_v33  ;;  %v4017_v37 = vcombine.high %v4009_v4, %v4009_v4  ;;  %v4192_v42 = vsel %vm1467_vm3, %v4009_v4, -inf  ;;  %v3968_v44 = vcombine.high %v3952_v56, %v3952_v56 }
 0x37e   : > { %v4193_v45 = vrot.slane %v4192_v42, 4  ;;  %v3975_v24 = vrot.slane %v3952_v56, %v8728_v33  ;;  %v3955_v30 = vmax.f32 %v3947_v7, 0.0  ;;  %v3945_v61 = vadd.f32 %v9481_v8, %v3932_v5 }
 0x37f   : > { %v4018_v51 = vcombine.high %v4016_v63, %v4016_v63  ;;  %v4199_v17 = vsel %vm1467_vm3, %v4017_v37, -inf  ;;  %v4206_v53 = vsel %vm1467_vm3, %v4016_v63, -inf  ;;  %v3982_v1 = vrot.slane %v3968_v44, %v8728_v33 }
 0x380   : > { %v4194_v41 = vmax.f32 %v4192_v42, %v4193_v45  ;;  %v4200_v31 = vrot.slane %v4199_v17, 4  ;;  %v4207_v6 = vrot.slane %v4206_v53, 4  ;;  %v3983_v16 = vcombine.high %v3975_v24, %v3975_v24 }
 0x381   : > { %v4213_v35 = vsel %vm1467_vm3, %v4018_v51, -inf  ;;  %v3984_v59 = vcombine.high %v3982_v1, %v3982_v1  ;;  %v4136_v34 = vsel %vm1467_vm3, %v3975_v24, -inf  ;;  %v4150_v32 = vsel %vm1467_vm3, %v3982_v1, -inf }
 0x382   : > { %v4195_v52 = vrot.slane %v4194_v41, 2  ;;  %v4201_v2 = vmax.f32 %v4199_v17, %v4200_v31  ;;  %v4208_v19 = vmax.f32 %v4206_v53, %v4207_v6  ;;  %v4214_v13 = vrot.slane %v4213_v35, 4 }
 0x383   : > { %v4137_v39 = vrot.slane %v4136_v34, 4  ;;  %v4143_v29 = vsel %vm1467_vm3, %v3983_v16, -inf  ;;  %v4151_v22 = vrot.slane %v4150_v32, 4  ;;  %v4157_v48 = vsel %vm1467_vm3, %v3984_v59, -inf }
 0x384   : > { %v4196_v58 = vmax.f32 %v4194_v41, %v4195_v52  ;;  %v4202_v60 = vrot.slane %v4201_v2, 2  ;;  %v4209_v47 = vrot.slane %v4208_v19, 2  ;;  %v4215_v9 = vmax.f32 %v4213_v35, %v4214_v13 }
 0x385   : > { %v4138_v49 = vmax.f32 %v4136_v34, %v4137_v39  ;;  %v4144_v21 = vrot.slane %v4143_v29, 4  ;;  %v4152_v10 = vmax.f32 %v4150_v32, %v4151_v22  ;;  %v4158_v57 = vrot.slane %v4157_v48, 4 }
 0x386   : > { %v4197_v46 = vrot.slane %v4196_v58, 1  ;;  %v4203_v18 = vmax.f32 %v4201_v2, %v4202_v60  ;;  %v4210_v20 = vmax.f32 %v4208_v19, %v4209_v47  ;;  %v4216_v3 = vrot.slane %v4215_v9, 2 }
 0x387   : > { %v4139_v12 = vrot.slane %v4138_v49, 2  ;;  %v4145_v27 = vmax.f32 %v4143_v29, %v4144_v21  ;;  %v4153_v38 = vrot.slane %v4152_v10, 2  ;;  %v4159_v50 = vmax.f32 %v4157_v48, %v4158_v57 }
 0x388   : > { %v9514_v0 = vmax.f32 %v4196_v58, %v4197_v46  ;;  %v4204_v14 = vrot.slane %v4203_v18, 1  ;;  %v4211_v36 = vrot.slane %v4210_v20, 1  ;;  %v4217_v43 = vmax.f32 %v4215_v9, %v4216_v3 }
 0x389   : > { %v4140_v15 = vmax.f32 %v4138_v49, %v4139_v12  ;;  %v4146_v55 = vrot.slane %v4145_v27, 2  ;;  %v4154_v54 = vmax.f32 %v4152_v10, %v4153_v38  ;;  %v4160_v4 = vrot.slane %v4159_v50, 2 }
 0x38a   : > { %v9516_v56 = vmax.f32 %v4203_v18, %v4204_v14  ;;  %v9518_v7 = vmax.f32 %v4210_v20, %v4211_v36  ;;  %v4218_v5 = vrot.slane %v4217_v43, 1  ;;  %v4019_v63 = vcombine.high %v3955_v30, %v3955_v30 }
 0x38b   : > { %v4141_v37 = vrot.slane %v4140_v15, 1  ;;  %v4147_v42 = vmax.f32 %v4145_v27, %v4146_v55  ;;  %v4155_v44 = vrot.slane %v4154_v54, 1  ;;  %v4161_v45 = vmax.f32 %v4159_v50, %v4160_v4 }
 0x38c   : > { %v9520_v24 = vmax.f32 %v4217_v43, %v4218_v5  ;;  %v4026_v51 = vrot.slane %v3955_v30, %v8728_v33  ;;  %v4033_v17 = vrot.slane %v4019_v63, %v8728_v33  ;;  %v3953_v53 = vmax.f32 %v3945_v61, 0.0 }
 0x38d   : > { %v9524_v1 = vmax.f32 %v4140_v15, %v4141_v37  ;;  %v4148_v41 = vrot.slane %v4147_v42, 1  ;;  %v9526_v31 = vmax.f32 %v4154_v54, %v4155_v44  ;;  %v4162_v6 = vrot.slane %v4161_v45, 1 }
 0x38e   : > { %v4034_v16 = vcombine.high %v4026_v51, %v4026_v51  ;;  %v4035_v35 = vcombine.high %v4033_v17, %v4033_v17  ;;  %v4220_v59 = vsel %vm1467_vm3, %v4026_v51, -inf  ;;  %v4234_v34 = vsel %vm1467_vm3, %v4033_v17, -inf }
 0x38f   : > { %v9530_v32 = vmax.f32 %v4147_v42, %v4148_v41  ;;  %v9532_v52 = vmax.f32 %v4161_v45, %v4162_v6  ;;  %v4221_v30 = vrot.slane %v4220_v59, 4  ;;  %v4235_v2 = vrot.slane %v4234_v34, 4 }
 0x390   : > { %v4227_v61 = vsel %vm1467_vm3, %v4034_v16, -inf  ;;  %v4241_v19 = vsel %vm1467_vm3, %v4035_v35, -inf  ;;  %v3985_v13 = vcombine.high %v3953_v53, %v3953_v53  ;;  %v3992_v39 = vrot.slane %v3953_v53, %v8728_v33 }
 0x391   : > { %v4222_v29 = vmax.f32 %v4220_v59, %v4221_v30  ;;  %v4228_v22 = vrot.slane %v4227_v61, 4  ;;  %v4236_v48 = vmax.f32 %v4234_v34, %v4235_v2  ;;  %v4242_v58 = vrot.slane %v4241_v19, 4 }
 0x392   : > { %v3999_v60 = vrot.slane %v3985_v13, %v8728_v33  ;;  %v4000_v47 = vcombine.high %v3992_v39, %v3992_v39  ;;  %v4164_v9 = vsel %vm1467_vm3, %v3992_v39, -inf  ;;  %v3937_v49 = vmul.f32 %v9475_v40, %v9495_v11 }
 0x393   : > { %v4223_v21 = vrot.slane %v4222_v29, 2  ;;  %v4229_v10 = vmax.f32 %v4227_v61, %v4228_v22  ;;  %v4237_v57 = vrot.slane %v4236_v48, 2  ;;  %v4243_v46 = vmax.f32 %v4241_v19, %v4242_v58  ;;  %v3903_v61 = vpop.f32.mrf.mxu0  ;;  %v7641_v22 = vpop.f32.mrf.mxu1 }
 0x394   : > { %v4001_v18 = vcombine.high %v3999_v60, %v3999_v60  ;;  %v4165_v20 = vrot.slane %v4164_v9, 4  ;;  %v4171_v3 = vsel %vm1467_vm3, %v4000_v47, -inf  ;;  %v4178_v12 = vsel %vm1467_vm3, %v3999_v60, -inf }
 0x395   : > { %v4224_v27 = vmax.f32 %v4222_v29, %v4223_v21  ;;  %v4230_v38 = vrot.slane %v4229_v10, 2  ;;  %v4238_v50 = vmax.f32 %v4236_v48, %v4237_v57  ;;  %v4244_v14 = vrot.slane %v4243_v46, 2 }
 0x396   : > { %v4166_v36 = vmax.f32 %v4164_v9, %v4165_v20  ;;  %v4172_v43 = vrot.slane %v4171_v3, 4  ;;  %v4179_v15 = vrot.slane %v4178_v12, 4  ;;  %v4185_v55 = vsel %vm1467_vm3, %v4001_v18, -inf }
 0x397   : > { %v4225_v11 = vrot.slane %v4224_v27, 1  ;;  %v4231_v54 = vmax.f32 %v4229_v10, %v4230_v38  ;;  %v4239_v4 = vrot.slane %v4238_v50, 1  ;;  %v4245_v5 = vmax.f32 %v4243_v46, %v4244_v14  ;;  %v7665_v38 = vpop.f32.mrf.mxu0 }
 0x398   : > { %v4167_v63 = vrot.slane %v4166_v36, 2  ;;  %v4173_v37 = vmax.f32 %v4171_v3, %v4172_v43  ;;  %v4180_v42 = vmax.f32 %v4178_v12, %v4179_v15  ;;  %v4186_v44 = vrot.slane %v4185_v55, 4 }
 0x399   : > { %v4226_v45 = vmax.f32 %v4224_v27, %v4225_v11  ;;  %v4232_v51 = vrot.slane %v4231_v54, 1  ;;  %v4240_v17 = vmax.f32 %v4238_v50, %v4239_v4  ;;  %v4246_v53 = vrot.slane %v4245_v5, 1 }
 0x39a   : > { %v4168_v41 = vmax.f32 %v4166_v36, %v4167_v63  ;;  %v4174_v6 = vrot.slane %v4173_v37, 2  ;;  %v4181_v16 = vrot.slane %v4180_v42, 2  ;;  %v4187_v35 = vmax.f32 %v4185_v55, %v4186_v44 }
 0x39b   : > { %v4233_v59 = vmax.f32 %v4231_v54, %v4232_v51  ;;  %v4247_v34 = vmax.f32 %v4245_v5, %v4246_v53  ;;  %v4364_v30 = vmax.f32 %v9514_v0, %v4226_v45  ;;  %v4366_v2 = vmax.f32 %v9518_v7, %v4240_v17 }
 0x39c   : > { %v4169_v19 = vrot.slane %v4168_v41, 1  ;;  %v4175_v13 = vmax.f32 %v4173_v37, %v4174_v6  ;;  %v4182_v39 = vmax.f32 %v4180_v42, %v4181_v16  ;;  %v4188_v29 = vrot.slane %v4187_v35, 2 }
 0x39d   : > { %v4365_v48 = vmax.f32 %v9516_v56, %v4233_v59  ;;  %v4367_v58 = vmax.f32 %v9520_v24, %v4247_v34  ;;  %v3950_v60 = vadd.f32 %v9481_v8, %v3937_v49  ;;  %v3922_v47 = vadd.f32 %v3903_v61, %v9497_v23 }
 0x39e   : > { %v4170_v9 = vmax.f32 %v4168_v41, %v4169_v19  ;;  %v4176_v21 = vrot.slane %v4175_v13, 1  ;;  %v4183_v10 = vrot.slane %v4182_v39, 1  ;;  %v4189_v0 = vmax.f32 %v4187_v35, %v4188_v29 }
 0x39f   : > { %v4401_v7 = vsel %vm2512_vm4, %v4365_v48, %v4364_v30  ;;  %v3958_v57 = vmax.f32 %v3950_v60, 0.0  ;;  %v3935_v46 = vmul.f32 %v9475_v40, %v3922_v47  ;;  %v3775_v18 = vadd.f32 %v7641_v22, %v9500_v25  ;;  %v3756_v60 = vpop.f32.mrf.mxu1 }
 0x3a0   : > { %v4402_v20 = vsel %vm2514_vm5, %v4366_v2, %v4401_v7  ;;  %v4177_v56 = vmax.f32 %v4175_v13, %v4176_v21  ;;  %v4184_v3 = vmax.f32 %v4182_v39, %v4183_v10  ;;  %v4190_v24 = vrot.slane %v4189_v0, 1 }
 0x3a1   : > { %v4403_v49 = vsel %vm2516_vm6, %v4367_v58, %v4402_v20  ;;  %v4360_v23 = vmax.f32 %v9524_v1, %v4170_v9  ;;  %v4070_v12 = vcombine.high %v3958_v57, %v3958_v57  ;;  %v4077_v27 = vrot.slane %v3958_v57, %v8728_v33  ;;  %v3906_v20 = vpop.f32.mrf.mxu0 }
 0x3a2   : > { %4416 = vst [vmem:[#allocation3 + $0x11] sm:$0xf] %v4403_v49  ;;  %v4191_v50 = vmax.f32 %v4189_v0, %v4190_v24  ;;  %v4361_v14 = vmax.f32 %v9530_v32, %v4177_v56  ;;  %v4362_v36 = vmax.f32 %v9526_v31, %v4184_v3  ;;  %v3948_v25 = vadd.f32 %v9481_v8, %v3935_v46 }
 0x3a3   : > { %v4084_v43 = vrot.slane %v4070_v12, %v8728_v33  ;;  %v4085_v15 = vcombine.high %v4077_v27, %v4077_v27  ;;  %v4304_v55 = vsel %vm1467_vm3, %v4077_v27, -inf  ;;  %v3925_v11 = vadd.f32 %v7665_v38, %v3775_v18 }
 0x3a4   : > { %v4363_v1 = vmax.f32 %v9532_v52, %v4191_v50  ;;  %v4398_v54 = vsel %vm2512_vm4, %v4361_v14, %v4360_v23  ;;  %v4305_v4 = vrot.slane %v4304_v55, 4  ;;  %v3956_v5 = vmax.f32 %v3948_v25, 0.0 }
 0x3a5   : > { %v4399_v63 = vsel %vm2514_vm5, %v4362_v36, %v4398_v54  ;;  %v4086_v37 = vcombine.high %v4084_v43, %v4084_v43  ;;  %v4311_v32 = vsel %vm1467_vm3, %v4085_v15, -inf  ;;  %v4318_v31 = vsel %vm1467_vm3, %v4084_v43, -inf }
 0x3a6   : > { %v4400_v42 = vsel %vm2516_vm6, %v4363_v1, %v4399_v63  ;;  %v4306_v44 = vmax.f32 %v4304_v55, %v4305_v4  ;;  %v4312_v45 = vrot.slane %v4311_v32, 4  ;;  %v4319_v51 = vrot.slane %v4318_v31, 4 }
 0x3a7   : > { %4415 = vst [vmem:[#allocation3 + $0x9] sm:$0xf] %v4400_v42  ;;  %v4325_v17 = vsel %vm1467_vm3, %v4086_v37, -inf  ;;  %v4036_v52 = vcombine.high %v3956_v5, %v3956_v5  ;;  %v4043_v53 = vrot.slane %v3956_v5, %v8728_v33  ;;  %v3938_v41 = vmul.f32 %v9475_v40, %v3925_v11 }
 0x3a8   : > { %v4307_v6 = vrot.slane %v4306_v44, 2  ;;  %v4313_v16 = vmax.f32 %v4311_v32, %v4312_v45  ;;  %v4320_v35 = vmax.f32 %v4318_v31, %v4319_v51  ;;  %v4326_v59 = vrot.slane %v4325_v17, 4 }
 0x3a9   : > { %v4050_v34 = vrot.slane %v4036_v52, %v8728_v33  ;;  %v3472_v30 = vadd.f32 %v9464_v26, %v9407_v28  ;;  %v4051_v2 = vcombine.high %v4043_v53, %v4043_v53  ;;  %v4248_v61 = vsel %vm1467_vm3, %v4043_v53, -inf }
 0x3aa   : > { %v3951_v19 = vadd.f32 %v9481_v8, %v3938_v41  ;;  %v4308_v13 = vmax.f32 %v4306_v44, %v4307_v6  ;;  %v4314_v39 = vrot.slane %v4313_v16, 2  ;;  %v4321_v29 = vrot.slane %v4320_v35, 2 }
 0x3ab   : > { %v4327_v22 = vmax.f32 %v4325_v17, %v4326_v59  ;;  %v4052_v48 = vcombine.high %v4050_v34, %v4050_v34  ;;  %v4249_v58 = vrot.slane %v4248_v61, 4  ;;  %v4255_v47 = vsel %vm1467_vm3, %v4051_v2, -inf }
 0x3ac   : > { %v4262_v9 = vsel %vm1467_vm3, %v4050_v34, -inf  ;;  %v3959_v21 = vmax.f32 %v3951_v19, 0.0  ;;  %v3623_v10 = vadd.f32 %v9456_v62, %v3472_v30  ;;  %v4309_v28 = vrot.slane %v4308_v13, 1 }
 0x3ad   : > { %v4315_v26 = vmax.f32 %v4313_v16, %v4314_v39  ;;  %v4322_v0 = vmax.f32 %v4320_v35, %v4321_v29  ;;  %v4328_v7 = vrot.slane %v4327_v22, 2  ;;  %v4250_v56 = vmax.f32 %v4248_v61, %v4249_v58 }
 0x3ae   : > { %v4087_v57 = vcombine.high %v3959_v21, %v3959_v21  ;;  %v4094_v46 = vrot.slane %v3959_v21, %v8728_v33  ;;  %v3773_v18 = vadd.f32 %v3756_v60, %v3623_v10  ;;  %v4256_v3 = vrot.slane %v4255_v47, 4 }
 0x3af   : > { %v4263_v24 = vrot.slane %v4262_v9, 4  ;;  %v4269_v49 = vsel %vm1467_vm3, %v4052_v48, -inf  ;;  %v9583_v38 = vmax.f32 %v4308_v13, %v4309_v28  ;;  %v4316_v50 = vrot.slane %v4315_v26, 1 }
 0x3b0   : > { %v4101_v23 = vrot.slane %v4087_v57, %v8728_v33  ;;  %v4102_v12 = vcombine.high %v4094_v46, %v4094_v46  ;;  %v4332_v27 = vsel %vm1467_vm3, %v4094_v46, -inf  ;;  %v3923_v62 = vadd.f32 %v3906_v20, %v3773_v18 }
 0x3b1   : > { %v4323_v14 = vrot.slane %v4322_v0, 1  ;;  %v4329_v36 = vmax.f32 %v4327_v22, %v4328_v7  ;;  %v4333_v43 = vrot.slane %v4332_v27, 4  ;;  %v4251_v11 = vrot.slane %v4250_v56, 2 }
 0x3b2   : > { %v4103_v25 = vcombine.high %v4101_v23, %v4101_v23  ;;  %v4339_v15 = vsel %vm1467_vm3, %v4102_v12, -inf  ;;  %v4346_v55 = vsel %vm1467_vm3, %v4101_v23, -inf  ;;  %v4257_v1 = vmax.f32 %v4255_v47, %v4256_v3 }
 0x3b3   : > { %v4264_v54 = vmax.f32 %v4262_v9, %v4263_v24  ;;  %v4340_v4 = vrot.slane %v4339_v15, 4  ;;  %v4334_v5 = vmax.f32 %v4332_v27, %v4333_v43  ;;  %v4347_v63 = vrot.slane %v4346_v55, 4 }
 0x3b4   : > { %v4353_v37 = vsel %vm1467_vm3, %v4103_v25, -inf  ;;  %v3936_v32 = vmul.f32 %v9475_v40, %v3923_v62  ;;  %v4317_v31 = vmax.f32 %v4315_v26, %v4316_v50  ;;  %v4270_v42 = vrot.slane %v4269_v49, 4 }
 0x3b5   : > { %v4341_v44 = vmax.f32 %v4339_v15, %v4340_v4  ;;  %v4354_v45 = vrot.slane %v4353_v37, 4  ;;  %v4324_v51 = vmax.f32 %v4322_v0, %v4323_v14  ;;  %v4335_v17 = vrot.slane %v4334_v5, 2 }
 0x3b6   : > { %v4348_v52 = vmax.f32 %v4346_v55, %v4347_v63  ;;  %v3949_v53 = vadd.f32 %v9481_v8, %v3936_v32  ;;  %v4330_v41 = vrot.slane %v4329_v36, 1  ;;  %v4258_v6 = vrot.slane %v4257_v1, 2 }
 0x3b7   : > { %v4342_v16 = vrot.slane %v4341_v44, 2  ;;  %v4355_v35 = vmax.f32 %v4353_v37, %v4354_v45  ;;  %v4252_v59 = vmax.f32 %v4250_v56, %v4251_v11  ;;  %v4336_v34 = vmax.f32 %v4334_v5, %v4335_v17 }
 0x3b8   : > { %v4349_v30 = vrot.slane %v4348_v52, 2  ;;  %v3957_v2 = vmax.f32 %v3949_v53, 0.0  ;;  %v4265_v61 = vrot.slane %v4264_v54, 2  ;;  %v4271_v19 = vmax.f32 %v4269_v49, %v4270_v42 }
 0x3b9   : > { %v4343_v40 = vmax.f32 %v4341_v44, %v4342_v16  ;;  %v4356_v13 = vrot.slane %v4355_v35, 2  ;;  %v4337_v39 = vrot.slane %v4336_v34, 1  ;;  %v4331_v58 = vmax.f32 %v4329_v36, %v4330_v41 }
 0x3ba   : > { %v4350_v29 = vmax.f32 %v4348_v52, %v4349_v30  ;;  %v4053_v22 = vcombine.high %v3957_v2, %v3957_v2  ;;  %v4060_v48 = vrot.slane %v3957_v2, %v8728_v33  ;;  %v4259_v60 = vmax.f32 %v4257_v1, %v4258_v6 }
 0x3bb   : > { %v4344_v8 = vrot.slane %v4343_v40, 1  ;;  %v4357_v47 = vmax.f32 %v4355_v35, %v4356_v13  ;;  %v4338_v9 = vmax.f32 %v4336_v34, %v4337_v39  ;;  %v4266_v26 = vmax.f32 %v4264_v54, %v4265_v61 }
 0x3bc   : > { %v4351_v21 = vrot.slane %v4350_v29, 1  ;;  %v4067_v10 = vrot.slane %v4053_v22, %v8728_v33  ;;  %v4068_v28 = vcombine.high %v4060_v48, %v4060_v48  ;;  %v4276_v57 = vsel %vm1467_vm3, %v4060_v48, -inf }
 0x3bd   : > { %v4345_v0 = vmax.f32 %v4343_v40, %v4344_v8  ;;  %v4358_v7 = vrot.slane %v4357_v47, 1  ;;  %v4372_v18 = vmax.f32 %v9583_v38, %v4338_v9  ;;  %v4277_v56 = vrot.slane %v4276_v57, 4  ;;  %v8211_v9 = vld [vmem:[#allocation8 + $0xb8] sm:$0xff]  }
 0x3be   : > { %v4352_v46 = vmax.f32 %v4350_v29, %v4351_v21  ;;  %v4069_v20 = vcombine.high %v4067_v10, %v4067_v10  ;;  %v4283_v49 = vsel %vm1467_vm3, %v4068_v28, -inf  ;;  %v4290_v23 = vsel %vm1467_vm3, %v4067_v10, -inf  ;;  %v8209_v10 = vld [vmem:[#allocation3] ss:$8 sps:$4 sm:$0xff]  }
 0x3bf   : > { %v4359_v3 = vmax.f32 %v4357_v47, %v4358_v7  ;;  %v4373_v24 = vmax.f32 %v4317_v31, %v4345_v0  ;;  %v4278_v27 = vmax.f32 %v4276_v57, %v4277_v56  ;;  %v4284_v62 = vrot.slane %v4283_v49, 4  ;;  %v8212_v0 = vld [vmem:[#allocation8 + $0xf8] sm:$0xff]   ;;  %v8213_v57 = vld [vmem:[#allocation8 + $0xb0] sm:$0xff]   ;;  %v8216_v56 = vld [vmem:[#allocation8 + $0xe8] sm:$0xff]  }
 0x3c0   : > { %v4374_v12 = vmax.f32 %v4324_v51, %v4352_v46  ;;  %v4291_v50 = vrot.slane %v4290_v23, 4  ;;  %v4272_v14 = vrot.slane %v4271_v19, 2  ;;  %v4297_v43 = vsel %vm1467_vm3, %v4069_v20, -inf  ;;  %v9603_v46 = vld [vmem:[#allocation2] sm:$0xff]  ;;  %v8215_v20 = vld [vmem:[#allocation8 + $0xa8] sm:$0xff]  }
 0x3c1   : > { %v4375_v36 = vmax.f32 %v4331_v58, %v4359_v3  ;;  %v4407_v25 = vsel %vm2512_vm4, %v4373_v24, %v4372_v18  ;;  %v4279_v15 = vrot.slane %v4278_v27, 2  ;;  %v4285_v55 = vmax.f32 %v4283_v49, %v4284_v62  ;;  %v8214_v18 = vld [vmem:[#allocation8 + $0xf0] sm:$0xff]   ;;  %v8217_v3 = vld [vmem:[#allocation8 + $0xa0] sm:$0xff]   ;;  %v8219_v49 = vld [vmem:[#allocation8 + $0x98] sm:$0xff]  }
 0x3c2   : > { %v4408_v38 = vsel %vm2514_vm5, %v4374_v12, %v4407_v25  ;;  %v4292_v11 = vmax.f32 %v4290_v23, %v4291_v50  ;;  %v4298_v54 = vrot.slane %v4297_v43, 4  ;;  %v4253_v4 = vrot.slane %v4252_v59, 1  ;;  %v8218_v24 = vld [vmem:[#allocation8 + $0xe0] sm:$0xff]   ;;  %v8220_v23 = vld [vmem:[#allocation8 + $0xd8] sm:$0xff]   ;;  %v8221_v12 = vld [vmem:[#allocation8 + $0x90] sm:$0xff]  }
 0x3c3   : > { %v4409_v1 = vsel %vm2516_vm6, %v4375_v36, %v4408_v38  ;;  %v4280_v5 = vmax.f32 %v4278_v27, %v4279_v15  ;;  %v4286_v63 = vrot.slane %v4285_v55, 2  ;;  %v4260_v32 = vrot.slane %v4259_v60, 1  ;;  %v8222_v27 = vld [vmem:[#allocation8 + $0xd0] sm:$0xff]   ;;  %v8223_v62 = vld [vmem:[#allocation8 + $0x88] sm:$0xff]   ;;  %v8226_v36 = vld [vmem:[#allocation8 + $0xc0] sm:$0xff]  }
 0x3c4   : > { %4418 = vst [vmem:[#allocation3 + $0x21] sm:$0xf] %v4409_v1  ;;  %v4293_v37 = vrot.slane %v4292_v11, 2  ;;  %v4273_v31 = vmax.f32 %v4271_v19, %v4272_v14  ;;  %v4299_v42 = vmax.f32 %v4297_v43, %v4298_v54  ;;  %v4267_v44 = vrot.slane %v4266_v26, 1  ;;  %v8224_v50 = vld [vmem:[#allocation8 + $0xc8] sm:$0xff]   ;;  %v8225_v14 = vld [vmem:[#allocation8 + $0x80] sm:$0xff]  }
 0x3c5   : > { %v4281_v45 = vrot.slane %v4280_v5, 1  ;;  %v4287_v51 = vmax.f32 %v4285_v55, %v4286_v63  ;;  %v4254_v53 = vmax.f32 %v4252_v59, %v4253_v4  ;;  %v4261_v35 = vmax.f32 %v4259_v60, %v4260_v32  ;;  %v8207_v60 = vld [vmem:[#allocation3 + $0x1] ss:$8 sps:$4 sm:$0xff]   ;;  %v8231_v55 = vld [vmem:[#allocation8 + $0x138] sm:$0xff]   ;;  %v8233_v4 = vld [vmem:[#allocation8 + $0x130] sm:$0xff]  }
 0x3c6   : > { %v4294_v17 = vmax.f32 %v4292_v11, %v4293_v37  ;;  %v4300_v52 = vrot.slane %v4299_v42, 2  ;;  %v4274_v34 = vrot.slane %v4273_v31, 1  ;;  %v4268_v2 = vmax.f32 %v4266_v26, %v4267_v44  ;;  %v8227_v38 = vld [vmem:[#allocation3 + $0x2] ss:$8 sps:$4 sm:$0xff]   ;;  %v8232_v1 = vld [vmem:[#allocation8 + $0x178] sm:$0xff]  }
 0x3c7   : > { %v4282_v41 = vmax.f32 %v4280_v5, %v4281_v45  ;;  %v4288_v6 = vrot.slane %v4287_v51, 1  ;;  %v8229_v15 = vld [vmem:[#allocation3 + $0x8] ss:$8 sps:$4 sm:$0xff]   ;;  %v8237_v32 = vld [vmem:[#allocation8 + $0x120] sm:$0xff]   ;;  %v8240_v44 = vld [vmem:[#allocation8 + $0x158] sm:$0xff]  }
 0x3c8   : > { %v4295_v16 = vrot.slane %v4294_v17, 1  ;;  %v4301_v30 = vmax.f32 %v4299_v42, %v4300_v52  ;;  %v4275_v22 = vmax.f32 %v4273_v31, %v4274_v34  ;;  %v8234_v5 = vld [vmem:[#allocation8 + $0x170] sm:$0xff]   ;;  %v8235_v63 = vld [vmem:[#allocation8 + $0x128] sm:$0xff]   ;;  %v8238_v31 = vld [vmem:[#allocation8 + $0x160] sm:$0xff]  }
 0x3c9   : > { %v4289_v61 = vmax.f32 %v4287_v51, %v4288_v6  ;;  %v4368_v13 = vmax.f32 %v4254_v53, %v4282_v41  ;;  %v8236_v37 = vld [vmem:[#allocation8 + $0x168] sm:$0xff]   ;;  %v8239_v42 = vld [vmem:[#allocation8 + $0x118] sm:$0xff]   ;;  %v8241_v45 = vld [vmem:[#allocation8 + $0x110] sm:$0xff]  }
 0x3ca   : > { %v4296_v40 = vmax.f32 %v4294_v17, %v4295_v16  ;;  %v4302_v39 = vrot.slane %v4301_v30, 1  ;;  %v8242_v51 = vld [vmem:[#allocation8 + $0x150] sm:$0xff]   ;;  %v8243_v17 = vld [vmem:[#allocation8 + $0x108] sm:$0xff]   ;;  %v8245_v53 = vld [vmem:[#allocation8 + $0x100] sm:$0xff]  }
 0x3cb   : > { %v4369_v29 = vmax.f32 %v4261_v35, %v4289_v61  ;;  %v8244_v52 = vld [vmem:[#allocation8 + $0x148] sm:$0xff]   ;;  %v8246_v41 = vld [vmem:[#allocation8 + $0x140] sm:$0xff]   ;;  %v8252_v61 = vld [vmem:[#allocation8 + $0x1f8] sm:$0xff]  }
 0x3cc   : > { %v4370_v19 = vmax.f32 %v4268_v2, %v4296_v40  ;;  %v4303_v48 = vmax.f32 %v4301_v30, %v4302_v39  ;;  %v8247_v35 = vld [vmem:[#allocation3 + $0x9] ss:$8 sps:$4 sm:$0xff]   ;;  %v8251_v30 = vld [vmem:[#allocation8 + $0x1b8] sm:$0xff]  }
 0x3cd   : > { %v4404_v58 = vsel %vm2512_vm4, %v4369_v29, %v4368_v13  ;;  %v8249_v34 = vld [vmem:[#allocation3 + $0xa] ss:$8 sps:$4 sm:$0xff]  }
 0x3ce   : > { %v4371_v8 = vmax.f32 %v4275_v22, %v4303_v48  ;;  %v4405_v59 = vsel %vm2514_vm5, %v4370_v19, %v4404_v58  ;;  %v8253_v13 = vld [vmem:[#allocation8 + $0x1b0] sm:$0xff]   ;;  %v8255_v29 = vld [vmem:[#allocation8 + $0x1a8] sm:$0xff]   ;;  %v8257_v22 = vld [vmem:[#allocation8 + $0x1a0] sm:$0xff]  }
 0x3cf   : > { %v8254_v39 = vld [vmem:[#allocation8 + $0x1f0] sm:$0xff]   ;;  %v8256_v19 = vld [vmem:[#allocation8 + $0x1e8] sm:$0xff]   ;;  %v8258_v48 = vld [vmem:[#allocation8 + $0x1e0] sm:$0xff]  }
 0x3d0   : > { %v4406_v47 = vsel %vm2516_vm6, %v4371_v8, %v4405_v59  ;;  %v8259_v58 = vld [vmem:[#allocation8 + $0x198] sm:$0xff]   ;;  %v8261_v59 = vld [vmem:[#allocation8 + $0x190] sm:$0xff]  }
 0x3d1   : > { %4417 = vst [vmem:[#allocation3 + $0x19] sm:$0xf] %v4406_v47  ;;  %v8260_v8 = vld [vmem:[#allocation8 + $0x1d8] sm:$0xff]   ;;  %v8262_v47 = vld [vmem:[#allocation8 + $0x1d0] sm:$0xff]  }
 0x3d8   : > { %v8208_v21 = vld [vmem:[#allocation3 + $0x11] ss:$8 sps:$4 sm:$0xff]  }
 0x3d9   : > { %v8210_v28 = vld [vmem:[#allocation3 + $0x10] ss:$8 sps:$4 sm:$0xff]   ;;  %v4460_v26 = vpack.c.bf16 %v8208_v21, %v8207_v60  ;;  %v8263_v60 = vld [vmem:[#allocation8 + $0x188] sm:$0xff]   ;;  %v8265_v21 = vld [vmem:[#allocation8 + $0x180] sm:$0xff]  }
 0x3da   : > { %v4431_v7 = vpack.c.bf16 %v8210_v28, %v8209_v10  ;;  %v8228_v25 = vld [vmem:[#allocation3 + $0x12] ss:$8 sps:$4 sm:$0xff]   ;;  %v8266_v10 = vld [vmem:[#allocation8 + $0x1c0] sm:$0xff]  }
 0x3db   : > { %7683 = vmatmul.mubr.bf16.vlgmr.msra.gmra.mxu1 %v4460_v26  ;;  %v8230_v43 = vld [vmem:[#allocation3 + $0x18] ss:$8 sps:$4 sm:$0xff]   ;;  %v4668_v11 = vpack.c.bf16 %v8228_v25, %v8227_v38 }
 0x3dc   : > { %7703 = vmatmul.mubr.bf16.vlgmr.msra.gmra.mxu0 %v4431_v7  ;;  %7707 = vmatpush3.bf16.msra.mxu1 %v8211_v9  ;;  %v4789_v54 = vpack.c.bf16 %v8230_v43, %v8229_v15  ;;  %v8248_v6 = vld [vmem:[#allocation3 + $0x19] ss:$8 sps:$4 sm:$0xff]   ;;  %v8264_v9 = vld [vmem:[#allocation8 + $0x1c8] sm:$0xff]  }
 0x3dd   : > { %7727 = vmatpush3.bf16.msra.mxu0 %v8212_v0  ;;  %7708 = vmatprep.subr.bf16.mxu1 %v9603_v46  ;;  %v8250_v16 = vld [vmem:[#allocation3 + $0x1a] ss:$8 sps:$4 sm:$0xff]   ;;  %v4910_v2 = vpack.c.bf16 %v8248_v6, %v8247_v35  ;;  %v8292_v35 = vld [vmem:[#allocation10 + $0x10] sm:$0xff]  }
 0x3de   : > { %7728 = vmatprep.subr.bf16.mxu0 %v9603_v46  ;;  %7722 = vmatprep.mubr.msk.bf16.mxu1 %vm8535_vm11, %v9603_v46  ;;  %v5031_v40 = vpack.c.bf16 %v8250_v16, %v8249_v34  ;;  %v8267_v28 = vld [vmem:[#allocation3 + $0x10] ss:$8 sps:$4 sm:$0xff]   ;;  %v8268_v0 = vld [vmem:[#allocation3 + $0x20] ss:$8 sps:$4 sm:$0xff]  }
 0x3df   : > { %7742 = vmatprep.mubr.msk.bf16.mxu0 %vm8535_vm11, %v9603_v46  ;;  %v8269_v26 = vld [vmem:[#allocation3 + $0x11] ss:$8 sps:$4 sm:$0xff]   ;;  %v8270_v7 = vld [vmem:[#allocation3 + $0x21] ss:$8 sps:$4 sm:$0xff]  }
 0x3e0   : > { %7709 = vmatpush3.bf16.msra.mxu1 %v8213_v57  ;;  %v8271_v57 = vld [vmem:[#allocation8 + $0x238] sm:$0xff]   ;;  %v8291_v16 = vld [vmem:[#allocation10 + $0x50] sm:$0xff]  }
 0x3e1   : > { %7729 = vmatpush3.bf16.msra.mxu0 %v8214_v18  ;;  %7710 = vmatprep.subr.bf16.mxu1 %v9603_v46  ;;  %v5153_v18 = vpack.c.bf16 %v8268_v0, %v8267_v28 }
 0x3e2   : > { %7730 = vmatprep.subr.bf16.mxu0 %v9603_v46 }
 0x3e4   : > { %7711 = vmatpush3.bf16.msra.mxu1 %v8215_v20  ;;  %v5274_v20 = vpack.c.bf16 %v8270_v7, %v8269_v26 }
 0x3e5   : > { %7731 = vmatpush3.bf16.msra.mxu0 %v8216_v56  ;;  %7712 = vmatprep.subr.bf16.mxu1 %v9603_v46  ;;  %v8272_v56 = vld [vmem:[#allocation8 + $0x230] sm:$0xff]  }
 0x3e6   : > { %7732 = vmatprep.subr.bf16.mxu0 %v9603_v46 }
 0x3e8   : > { %7713 = vmatpush3.bf16.msra.mxu1 %v8217_v3  ;;  %v8273_v3 = vld [vmem:[#allocation8 + $0x228] sm:$0xff]  }
 0x3e9   : > { %7733 = vmatpush3.bf16.msra.mxu0 %v8218_v24  ;;  %7714 = vmatprep.subr.bf16.mxu1 %v9603_v46  ;;  %v8274_v24 = vld [vmem:[#allocation8 + $0x220] sm:$0xff]  }
 0x3ea   : > { %7734 = vmatprep.subr.bf16.mxu0 %v9603_v46 }
 0x3ec   : > { %7715 = vmatpush3.bf16.msra.mxu1 %v8219_v49  ;;  %v8275_v49 = vld [vmem:[#allocation8 + $0x218] sm:$0xff]  }
 0x3ed   : > { %7735 = vmatpush3.bf16.msra.mxu0 %v8220_v23  ;;  %7716 = vmatprep.subr.bf16.mxu1 %v9603_v46  ;;  %v8276_v23 = vld [vmem:[#allocation8 + $0x210] sm:$0xff]  }
 0x3ee   : > { %7736 = vmatprep.subr.bf16.mxu0 %v9603_v46 }
 0x3f0   : > { %7717 = vmatpush3.bf16.msra.mxu1 %v8221_v12  ;;  %v8277_v12 = vld [vmem:[#allocation8 + $0x208] sm:$0xff]  }
 0x3f1   : > { %7737 = vmatpush3.bf16.msra.mxu0 %v8222_v27  ;;  %7718 = vmatprep.subr.bf16.mxu1 %v9603_v46  ;;  %v8278_v27 = vld [vmem:[#allocation8 + $0x200] sm:$0xff]  }
 0x3f2   : > { %7738 = vmatprep.subr.bf16.mxu0 %v9603_v46 }
 0x3f4   : > { %7719 = vmatpush3.bf16.msra.mxu1 %v8223_v62  ;;  %v8279_v62 = vld [vmem:[#allocation3 + $0x12] ss:$8 sps:$4 sm:$0xff]  }
 0x3f5   : > { %7739 = vmatpush3.bf16.msra.mxu0 %v8224_v50  ;;  %7720 = vmatprep.subr.bf16.mxu1 %v9603_v46  ;;  %v8280_v50 = vld [vmem:[#allocation3 + $0x22] ss:$8 sps:$4 sm:$0xff]  }
 0x3f6   : > { %7740 = vmatprep.subr.bf16.mxu0 %v9603_v46 }
 0x3f8   : > { %7721 = vmatpush3.bf16.msra.mxu1 %v8225_v14  ;;  %v5395_v14 = vpack.c.bf16 %v8280_v50, %v8279_v62 }
 0x3f9   : > { %7741 = vmatpush3.bf16.msra.mxu0 %v8226_v36  ;;  %7746 = vmatprep.subr.bf16.mxu1 %v9603_v46 }
 0x3fa   : > { %7766 = vmatprep.subr.bf16.mxu0 %v9603_v46 }
 0x3fb   : > { %7723 = vmatmul.mubr.bf16.vlgmr.msra.gmra.mxu1 %v4668_v11 }
 0x3fc   : > { %7743 = vmatmul.mubr.bf16.vlgmr.msra.gmra.mxu0 %v4789_v54  ;;  %7747 = vmatpush3.bf16.msra.mxu1 %v8231_v55 }
 0x3fd   : > { %7767 = vmatpush3.bf16.msra.mxu0 %v8232_v1  ;;  %7748 = vmatprep.subr.bf16.mxu1 %v9603_v46 }
 0x3fe   : > { %7768 = vmatprep.subr.bf16.mxu0 %v9603_v46  ;;  %7762 = vmatprep.mubr.msk.bf16.mxu1 %vm8535_vm11, %v9603_v46 }
 0x3ff   : > { %7782 = vmatprep.mubr.msk.bf16.mxu0 %vm8535_vm11, %v9603_v46 }
 0x400   : > { %7749 = vmatpush3.bf16.msra.mxu1 %v8233_v4 }
 0x401   : > { %7769 = vmatpush3.bf16.msra.mxu0 %v8234_v5  ;;  %7750 = vmatprep.subr.bf16.mxu1 %v9603_v46  ;;  %v8281_v5 = vld [vmem:[#allocation10 + $0x78] sm:$0xff]  }
 0x402   : > { %7770 = vmatprep.subr.bf16.mxu0 %v9603_v46 }
 0x404   : > { %7751 = vmatpush3.bf16.msra.mxu1 %v8235_v63  ;;  %v8282_v63 = vld [vmem:[#allocation10 + $0x38] sm:$0xff]  }
 0x405   : > { %7771 = vmatpush3.bf16.msra.mxu0 %v8236_v37  ;;  %7752 = vmatprep.subr.bf16.mxu1 %v9603_v46  ;;  %v8283_v37 = vld [vmem:[#allocation10 + $0x70] sm:$0xff]  }
 0x406   : > { %7772 = vmatprep.subr.bf16.mxu0 %v9603_v46 }
 0x408   : > { %7753 = vmatpush3.bf16.msra.mxu1 %v8237_v32  ;;  %v8284_v32 = vld [vmem:[#allocation10 + $0x30] sm:$0xff]  }
 0x409   : > { %7773 = vmatpush3.bf16.msra.mxu0 %v8238_v31  ;;  %7754 = vmatprep.subr.bf16.mxu1 %v9603_v46  ;;  %v8285_v31 = vld [vmem:[#allocation10 + $0x68] sm:$0xff]  }
 0x40a   : > { %7774 = vmatprep.subr.bf16.mxu0 %v9603_v46 }
 0x40c   : > { %7755 = vmatpush3.bf16.msra.mxu1 %v8239_v42  ;;  %v8286_v42 = vld [vmem:[#allocation10 + $0x28] sm:$0xff]  }
 0x40d   : > { %7775 = vmatpush3.bf16.msra.mxu0 %v8240_v44  ;;  %7756 = vmatprep.subr.bf16.mxu1 %v9603_v46  ;;  %v8287_v44 = vld [vmem:[#allocation10 + $0x60] sm:$0xff]  }
 0x40e   : > { %7776 = vmatprep.subr.bf16.mxu0 %v9603_v46 }
 0x410   : > { %7757 = vmatpush3.bf16.msra.mxu1 %v8241_v45  ;;  %v8288_v45 = vld [vmem:[#allocation10 + $0x20] sm:$0xff]  }
 0x411   : > { %7777 = vmatpush3.bf16.msra.mxu0 %v8242_v51  ;;  %7758 = vmatprep.subr.bf16.mxu1 %v9603_v46  ;;  %v8289_v51 = vld [vmem:[#allocation10 + $0x58] sm:$0xff]  }
 0x412   : > { %7778 = vmatprep.subr.bf16.mxu0 %v9603_v46 }
 0x414   : > { %7759 = vmatpush3.bf16.msra.mxu1 %v8243_v17  ;;  %v8290_v17 = vld [vmem:[#allocation10 + $0x18] sm:$0xff]  }
 0x415   : > { %7779 = vmatpush3.bf16.msra.mxu0 %v8244_v52  ;;  %7760 = vmatprep.subr.bf16.mxu1 %v9603_v46 }
 0x416   : > { %7780 = vmatprep.subr.bf16.mxu0 %v9603_v46 }
 0x418   : > { %7761 = vmatpush3.bf16.msra.mxu1 %v8245_v53 }
 0x419   : > { %7781 = vmatpush3.bf16.msra.mxu0 %v8246_v41  ;;  %7786 = vmatprep.subr.bf16.mxu1 %v9603_v46 }
 0x41a   : > { %7806 = vmatprep.subr.bf16.mxu0 %v9603_v46 }
 0x41b   : > { %7763 = vmatmul.mubr.bf16.vlgmr.msra.gmra.mxu1 %v4910_v2 }
 0x41c   : > { %7783 = vmatmul.mubr.bf16.vlgmr.msra.gmra.mxu0 %v5031_v40  ;;  %7787 = vmatpush3.bf16.msra.mxu1 %v8251_v30  ;;  %v8294_v40 = vld [vmem:[#allocation10 + $0x8] sm:$0xff]  }
 0x41d   : > { %7807 = vmatpush3.bf16.msra.mxu0 %v8252_v61  ;;  %7788 = vmatprep.subr.bf16.mxu1 %v9603_v46  ;;  %v8293_v61 = vld [vmem:[#allocation10 + $0x48] sm:$0xff]  }
 0x41e   : > { %7808 = vmatprep.subr.bf16.mxu0 %v9603_v46  ;;  %7802 = vmatprep.mubr.msk.bf16.mxu1 %vm8535_vm11, %v9603_v46 }
 0x41f   : > { %7822 = vmatprep.mubr.msk.bf16.mxu0 %vm8535_vm11, %v9603_v46 }
 0x420   : > { %7789 = vmatpush3.bf16.msra.mxu1 %v8253_v13 }
 0x421   : > { %7809 = vmatpush3.bf16.msra.mxu0 %v8254_v39  ;;  %7790 = vmatprep.subr.bf16.mxu1 %v9603_v46 }
 0x422   : > { %7810 = vmatprep.subr.bf16.mxu0 %v9603_v46 }
 0x424   : > { %7791 = vmatpush3.bf16.msra.mxu1 %v8255_v29 }
 0x425   : > { %7811 = vmatpush3.bf16.msra.mxu0 %v8256_v19  ;;  %7792 = vmatprep.subr.bf16.mxu1 %v9603_v46 }
 0x426   : > { %7812 = vmatprep.subr.bf16.mxu0 %v9603_v46 }
 0x428   : > { %7793 = vmatpush3.bf16.msra.mxu1 %v8257_v22 }
 0x429   : > { %7813 = vmatpush3.bf16.msra.mxu0 %v8258_v48  ;;  %7794 = vmatprep.subr.bf16.mxu1 %v9603_v46  ;;  %v8295_v48 = vld [vmem:[#allocation10 + $0x40] sm:$0xff]  }
 0x42a   : > { %7814 = vmatprep.subr.bf16.mxu0 %v9603_v46 }
 0x42c   : > { %7795 = vmatpush3.bf16.msra.mxu1 %v8259_v58  ;;  %v8296_v58 = vld [vmem:[#allocation10] sm:$0xff]  }
 0x42d   : > { %7815 = vmatpush3.bf16.msra.mxu0 %v8260_v8  ;;  %7796 = vmatprep.subr.bf16.mxu1 %v9603_v46 }
 0x42e   : > { %7816 = vmatprep.subr.bf16.mxu0 %v9603_v46 }
 0x430   : > { %7797 = vmatpush3.bf16.msra.mxu1 %v8261_v59 }
 0x431   : > { %7817 = vmatpush3.bf16.msra.mxu0 %v8262_v47  ;;  %7798 = vmatprep.subr.bf16.mxu1 %v9603_v46 }
 0x432   : > { %7818 = vmatprep.subr.bf16.mxu0 %v9603_v46 }
 0x434   : > { %7799 = vmatpush3.bf16.msra.mxu1 %v8263_v60 }
 0x435   : > { %7819 = vmatpush3.bf16.msra.mxu0 %v8264_v9  ;;  %7800 = vmatprep.subr.bf16.mxu1 %v9603_v46 }
 0x436   : > { %7820 = vmatprep.subr.bf16.mxu0 %v9603_v46 }
 0x438   : > { %7801 = vmatpush3.bf16.msra.mxu1 %v8265_v21 }
 0x439   : > { %7821 = vmatpush3.bf16.msra.mxu0 %v8266_v10  ;;  %7826 = vmatprep.subr.bf16.mxu1 %v9603_v46 }
 0x43a   : > { %7846 = vmatprep.subr.bf16.mxu0 %v9603_v46 }
 0x43b   : > { %7803 = vmatmul.mubr.bf16.vlgmr.msra.gmra.mxu1 %v5153_v18 }
 0x43c   : > { %7823 = vmatmul.mubr.bf16.vlgmr.msra.gmra.mxu0 %v5274_v20  ;;  %7827 = vmatpush3.bf16.msra.mxu1 %v8271_v57 }
 0x43d   : > { %7828 = vmatprep.subr.bf16.mxu1 %v9603_v46  ;;  %7842 = vmatprep.mubr.msk.bf16.mxu1 %vm8535_vm11, %v9603_v46 }
 0x43e   : > { %7862 = vmatprep.mubr.msk.bf16.mxu0 %vm8535_vm11, %v9603_v46  ;;  %7847 = vmatpush3.bf16.msra.mxu0 %v8281_v5 }
 0x43f   : > { %7848 = vmatprep.subr.bf16.mxu0 %v9603_v46 }
 0x440   : > { %7829 = vmatpush3.bf16.msra.mxu1 %v8272_v56 }
 0x441   : > { %7830 = vmatprep.subr.bf16.mxu1 %v9603_v46 }
 0x442   : > { %7849 = vmatpush3.bf16.msra.mxu0 %v8283_v37 }
 0x443   : > { %7850 = vmatprep.subr.bf16.mxu0 %v9603_v46 }
 0x444   : > { %7831 = vmatpush3.bf16.msra.mxu1 %v8273_v3 }
 0x445   : > { %7832 = vmatprep.subr.bf16.mxu1 %v9603_v46 }
 0x446   : > { %7851 = vmatpush3.bf16.msra.mxu0 %v8285_v31 }
 0x447   : > { %7852 = vmatprep.subr.bf16.mxu0 %v9603_v46 }
 0x448   : > { %7833 = vmatpush3.bf16.msra.mxu1 %v8274_v24 }
 0x449   : > { %7834 = vmatprep.subr.bf16.mxu1 %v9603_v46 }
 0x44a   : > { %7853 = vmatpush3.bf16.msra.mxu0 %v8287_v44 }
 0x44b   : > { %7854 = vmatprep.subr.bf16.mxu0 %v9603_v46 }
 0x44c   : > { %7835 = vmatpush3.bf16.msra.mxu1 %v8275_v49 }
 0x44d   : > { %7836 = vmatprep.subr.bf16.mxu1 %v9603_v46 }
 0x44e   : > { %7855 = vmatpush3.bf16.msra.mxu0 %v8289_v51 }
 0x44f   : > { %7856 = vmatprep.subr.bf16.mxu0 %v9603_v46 }
 0x450   : > { %7837 = vmatpush3.bf16.msra.mxu1 %v8276_v23 }
 0x451   : > { %7838 = vmatprep.subr.bf16.mxu1 %v9603_v46 }
 0x452   : > { %7857 = vmatpush3.bf16.msra.mxu0 %v8291_v16 }
 0x453   : > { %7858 = vmatprep.subr.bf16.mxu0 %v9603_v46 }
 0x454   : > { %7839 = vmatpush3.bf16.msra.mxu1 %v8277_v12 }
 0x455   : > { %7840 = vmatprep.subr.bf16.mxu1 %v9603_v46 }
 0x456   : > { %7859 = vmatpush3.bf16.msra.mxu0 %v8293_v61 }
 0x457   : > { %7860 = vmatprep.subr.bf16.mxu0 %v9603_v46 }
 0x458   : > { %7841 = vmatpush3.bf16.msra.mxu1 %v8278_v27 }
 0x459   : > { %7866 = vmatprep.subr.bf16.mxu1 %v9603_v46 }
 0x45a   : > { %7861 = vmatpush3.bf16.msra.mxu0 %v8295_v48 }
 0x45b   : > { %7843 = vmatmul.mubr.bf16.vlgmr.msra.gmra.mxu1 %v5395_v14  ;;  %7886 = vmatprep.subr.bf16.mxu0 %v9603_v46 }
 0x45c   : > { %7882 = vmatprep.mubr.msk.bf16.mxu1 %vm8535_vm11, %v9603_v46  ;;  %7867 = vmatpush3.bf16.msra.mxu1 %v8282_v63 }
 0x45d   : > { %7868 = vmatprep.subr.bf16.mxu1 %v9603_v46 }
 0x460   : > { %7869 = vmatpush3.bf16.msra.mxu1 %v8284_v32 }
 0x461   : > { %7870 = vmatprep.subr.bf16.mxu1 %v9603_v46 }
 0x464   : > { %7871 = vmatpush3.bf16.msra.mxu1 %v8286_v42 }
 0x465   : > { %7872 = vmatprep.subr.bf16.mxu1 %v9603_v46 }
 0x468   : > { %7873 = vmatpush3.bf16.msra.mxu1 %v8288_v45 }
 0x469   : > { %7874 = vmatprep.subr.bf16.mxu1 %v9603_v46 }
 0x46c   : > { %7875 = vmatpush3.bf16.msra.mxu1 %v8290_v17 }
 0x46d   : > { %7876 = vmatprep.subr.bf16.mxu1 %v9603_v46 }
 0x470   : > { %7877 = vmatpush3.bf16.msra.mxu1 %v8292_v35 }
 0x471   : > { %7878 = vmatprep.subr.bf16.mxu1 %v9603_v46 }
 0x474   : > { %7879 = vmatpush3.bf16.msra.mxu1 %v8294_v40 }
 0x475   : > { %7880 = vmatprep.subr.bf16.mxu1 %v9603_v46 }
 0x478   : > { %7881 = vmatpush3.bf16.msra.mxu1 %v8296_v58 }
 0x479   : > { %7906 = vmatprep.subr.bf16.mxu1 %v9603_v46 }
 0x49b   : > { %v4560_v36 = vpop.f32.mrf.mxu1 }
 0x49c   : > { %v4649_v25 = vpop.f32.mrf.mxu0 }
 0x49d   : > { %v4650_v43 = vadd.f32 %v4649_v25, %v4560_v36  ;;  %v7684_v38 = vpop.f32.mrf.mxu1  ;;  %v7049_v36 = vld [vmem:[%s9833_s5 + $0x2] ss:$0 sm:$0xff] }
 0x49e   : > { %v7704_v15 = vpop.f32.mrf.mxu0 }
 0x49f   : > { %v4563_v55 = vpop.f32.mrf.mxu1 }
 0x4a0   : > { %v4652_v11 = vpop.f32.mrf.mxu0 }
 0x4a1   : > { %v4653_v1 = vadd.f32 %v4652_v11, %v4563_v55  ;;  %v7685_v54 = vpop.f32.mrf.mxu1 }
 0x4a2   : > { %v7705_v4 = vpop.f32.mrf.mxu0 }
 0x4bb   : > { %v4768_v52 = vpop.f32.mrf.mxu1 }
 0x4bc   : > { %v4775_v53 = vadd.f32 %v4768_v52, %v4650_v43  ;;  %v4889_v41 = vpop.f32.mrf.mxu0  ;;  %v7050_v43 = vld [vmem:[%s9834_s6 + $0x2] ss:$0 sm:$0xff] }
 0x4bd   : > { %v7724_v6 = vpop.f32.mrf.mxu1 }
 0x4be   : > { %v4896_v34 = vadd.f32 %v4889_v41, %v4775_v53  ;;  %v7744_v30 = vpop.f32.mrf.mxu0 }
 0x4bf   : > { %v4771_v2 = vpop.f32.mrf.mxu1 }
 0x4c0   : > { %v4776_v13 = vadd.f32 %v4771_v2, %v4653_v1  ;;  %v4892_v39 = vpop.f32.mrf.mxu0 }
 0x4c1   : > { %v7725_v29 = vpop.f32.mrf.mxu1 }
 0x4c2   : > { %v4897_v19 = vadd.f32 %v4892_v39, %v4776_v13  ;;  %v7745_v22 = vpop.f32.mrf.mxu0 }
 0x4db   : > { %v5010_v8 = vpop.f32.mrf.mxu1 }
 0x4dc   : > { %v5131_v59 = vpop.f32.mrf.mxu0  ;;  %v5017_v24 = vadd.f32 %v5010_v8, %v4896_v34 }
 0x4dd   : > { %v7764_v47 = vpop.f32.mrf.mxu1 }
 0x4de   : > { %v7784_v60 = vpop.f32.mrf.mxu0  ;;  %v5138_v49 = vadd.f32 %v5131_v59, %v5017_v24 }
 0x4df   : > { %v5013_v9 = vpop.f32.mrf.mxu1 }
 0x4e0   : > { %v5134_v21 = vpop.f32.mrf.mxu0  ;;  %v5018_v23 = vadd.f32 %v5013_v9, %v4897_v19 }
 0x4e1   : > { %v7765_v10 = vpop.f32.mrf.mxu1 }
 0x4e2   : > { %v7785_v28 = vpop.f32.mrf.mxu0  ;;  %v5139_v27 = vadd.f32 %v5134_v21, %v5018_v23 }
 0x4fb   : > { %v5253_v26 = vpop.f32.mrf.mxu1 }
 0x4fc   : > { %v5374_v0 = vpop.f32.mrf.mxu0  ;;  %v5260_v12 = vadd.f32 %v5253_v26, %v5138_v49 }
 0x4fd   : > { %v7804_v7 = vpop.f32.mrf.mxu1 }
 0x4fe   : > { %v7824_v57 = vpop.f32.mrf.mxu0  ;;  %v5381_v62 = vadd.f32 %v5374_v0, %v5260_v12 }
 0x4ff   : > { %v5256_v18 = vpop.f32.mrf.mxu1 }
 0x500   : > { %v5377_v20 = vpop.f32.mrf.mxu0  ;;  %v5261_v50 = vadd.f32 %v5256_v18, %v5139_v27 }
 0x501   : > { %v7805_v56 = vpop.f32.mrf.mxu1 }
 0x502   : > { %v7825_v3 = vpop.f32.mrf.mxu0  ;;  %v5382_v15 = vadd.f32 %v5377_v20, %v5261_v50 }
 0x51b   : > { %v5495_v14 = vpop.f32.mrf.mxu1 }
 0x51c   : > { %v5502_v25 = vadd.f32 %v5495_v14, %v5381_v62 }
 0x51d   : > { %v7844_v38 = vpop.f32.mrf.mxu1 }
 0x51e   : > { %v5509_v55 = vmul.f32 %v7049_v36, %v5502_v25 }
 0x51f   : > { %v5498_v11 = vpop.f32.mrf.mxu1 }
 0x520   : > { %v5516_v1 = vadd.f32 %v7050_v43, %v5509_v55  ;;  %v5503_v54 = vadd.f32 %v5498_v11, %v5382_v15 }
 0x521   : > { %v7845_v4 = vpop.f32.mrf.mxu1 }
 0x522   : > { %v5518_v5 = vmax.f32 %v5516_v1, 0.0  ;;  %v5510_v63 = vmul.f32 %v7049_v36, %v5503_v54 }
 0x524   : > { %v5522_v37 = vcombine.high %v5518_v5, %v5518_v5  ;;  %v5529_v32 = vrot.slane %v5518_v5, %v8728_v33  ;;  %v5517_v31 = vadd.f32 %v7050_v43, %v5510_v63 }
 0x526   : > { %v5536_v42 = vrot.slane %v5522_v37, %v8728_v33  ;;  %v5537_v44 = vcombine.high %v5529_v32, %v5529_v32  ;;  %v5564_v45 = vsel %vm1467_vm3, %v5529_v32, -inf  ;;  %v5519_v51 = vmax.f32 %v5517_v31, 0.0 }
 0x527   : > { %v5565_v17 = vrot.slane %v5564_v45, 4 }
 0x528   : > { %v5538_v52 = vcombine.high %v5536_v42, %v5536_v42  ;;  %v5571_v53 = vsel %vm1467_vm3, %v5537_v44, -inf  ;;  %v5578_v41 = vsel %vm1467_vm3, %v5536_v42, -inf  ;;  %v5539_v6 = vcombine.high %v5519_v51, %v5519_v51 }
 0x529   : > { %v5566_v16 = vmax.f32 %v5564_v45, %v5565_v17  ;;  %v5572_v35 = vrot.slane %v5571_v53, 4  ;;  %v5579_v34 = vrot.slane %v5578_v41, 4  ;;  %v5546_v30 = vrot.slane %v5519_v51, %v8728_v33 }
 0x52a   : > { %v5585_v2 = vsel %vm1467_vm3, %v5538_v52, -inf  ;;  %v5553_v61 = vrot.slane %v5539_v6, %v8728_v33 }
 0x52b   : > { %v5567_v40 = vrot.slane %v5566_v16, 2  ;;  %v5573_v13 = vmax.f32 %v5571_v53, %v5572_v35  ;;  %v5580_v39 = vmax.f32 %v5578_v41, %v5579_v34  ;;  %v5586_v29 = vrot.slane %v5585_v2, 4  ;;  %v8299_v34 = vld [vmem:[#allocation10 + $0xb8] sm:$0xff]  }
 0x52c   : > { %v5554_v19 = vcombine.high %v5546_v30, %v5546_v30  ;;  %v5555_v22 = vcombine.high %v5553_v61, %v5553_v61  ;;  %v5592_v48 = vsel %vm1467_vm3, %v5546_v30, -inf  ;;  %v5606_v58 = vsel %vm1467_vm3, %v5553_v61, -inf }
 0x52d   : > { %v5568_v8 = vmax.f32 %v5566_v16, %v5567_v40  ;;  %v5574_v59 = vrot.slane %v5573_v13, 2  ;;  %v5581_v47 = vrot.slane %v5580_v39, 2  ;;  %v5587_v60 = vmax.f32 %v5585_v2, %v5586_v29  ;;  %v8300_v2 = vld [vmem:[#allocation10 + $0xf8] sm:$0xff]   ;;  %v8301_v40 = vld [vmem:[#allocation10 + $0xb0] sm:$0xff]   ;;  %v8304_v29 = vld [vmem:[#allocation10 + $0xe8] sm:$0xff]  }
 0x52e   : > { %v5593_v9 = vrot.slane %v5592_v48, 4  ;;  %v5599_v21 = vsel %vm1467_vm3, %v5554_v19, -inf  ;;  %v5607_v10 = vrot.slane %v5606_v58, 4  ;;  %v5613_v28 = vsel %vm1467_vm3, %v5555_v22, -inf  ;;  %v8305_v19 = vld [vmem:[#allocation10 + $0xa0] sm:$0xff]  }
 0x52f   : > { %v5575_v26 = vmax.f32 %v5573_v13, %v5574_v59  ;;  %v5582_v0 = vmax.f32 %v5580_v39, %v5581_v47  ;;  %v5588_v7 = vrot.slane %v5587_v60, 2  ;;  %v5600_v18 = vrot.slane %v5599_v21, 4  ;;  %v8302_v13 = vld [vmem:[#allocation10 + $0xf0] sm:$0xff]   ;;  %v8303_v39 = vld [vmem:[#allocation10 + $0xa8] sm:$0xff]   ;;  %v8306_v22 = vld [vmem:[#allocation10 + $0xe0] sm:$0xff]  }
 0x530   : > { %v5594_v57 = vmax.f32 %v5592_v48, %v5593_v9  ;;  %v5608_v20 = vmax.f32 %v5606_v58, %v5607_v10  ;;  %v5614_v56 = vrot.slane %v5613_v28, 4  ;;  %v5569_v3 = vrot.slane %v5568_v8, 1  ;;  %v8307_v48 = vld [vmem:[#allocation10 + $0x98] sm:$0xff]   ;;  %v8310_v59 = vld [vmem:[#allocation10 + $0xd0] sm:$0xff]   ;;  %v8311_v47 = vld [vmem:[#allocation10 + $0x88] sm:$0xff]  }
 0x531   : > { %v5576_v24 = vrot.slane %v5575_v26, 1  ;;  %v5583_v49 = vrot.slane %v5582_v0, 1  ;;  %v5589_v23 = vmax.f32 %v5587_v60, %v5588_v7  ;;  %v5601_v27 = vmax.f32 %v5599_v21, %v5600_v18  ;;  %v8308_v58 = vld [vmem:[#allocation10 + $0xd8] sm:$0xff]   ;;  %v8312_v60 = vld [vmem:[#allocation10 + $0xc8] sm:$0xff]   ;;  %v8313_v10 = vld [vmem:[#allocation10 + $0x80] sm:$0xff]  }
 0x532   : > { %v5595_v12 = vrot.slane %v5594_v57, 2  ;;  %v5609_v62 = vrot.slane %v5608_v20, 2  ;;  %v5615_v50 = vmax.f32 %v5613_v28, %v5614_v56  ;;  %v5570_v55 = vmax.f32 %v5568_v8, %v5569_v3  ;;  %v8309_v8 = vld [vmem:[#allocation10 + $0x90] sm:$0xff]   ;;  %v8314_v28 = vld [vmem:[#allocation10 + $0xc0] sm:$0xff]   ;;  %v8318_v7 = vld [vmem:[#allocation10 + $0x178] sm:$0xff]  }
 0x533   : > { %v5584_v14 = vmax.f32 %v5582_v0, %v5583_v49  ;;  %v5590_v36 = vrot.slane %v5589_v23, 1  ;;  %v5602_v43 = vrot.slane %v5601_v27, 2  ;;  %v5577_v11 = vmax.f32 %v5575_v26, %v5576_v24  ;;  %v8317_v26 = vld [vmem:[#allocation10 + $0x138] sm:$0xff]   ;;  %v8319_v18 = vld [vmem:[#allocation10 + $0x130] sm:$0xff]   ;;  %v8321_v56 = vld [vmem:[#allocation10 + $0x128] sm:$0xff]  }
 0x534   : > { %v5596_v25 = vmax.f32 %v5594_v57, %v5595_v12  ;;  %v5610_v38 = vmax.f32 %v5608_v20, %v5609_v62  ;;  %v5616_v15 = vrot.slane %v5615_v50, 2  ;;  %v8320_v20 = vld [vmem:[#allocation10 + $0x170] sm:$0xff]   ;;  %v8322_v3 = vld [vmem:[#allocation10 + $0x168] sm:$0xff]   ;;  %v8323_v24 = vld [vmem:[#allocation10 + $0x120] sm:$0xff]  }
 0x535   : > { %v5591_v1 = vmax.f32 %v5589_v23, %v5590_v36  ;;  %v5603_v4 = vmax.f32 %v5601_v27, %v5602_v43  ;;  %v5620_v37 = vmax.f32 %v5570_v55, %v5584_v14  ;;  %v8324_v49 = vld [vmem:[#allocation10 + $0x160] sm:$0xff]   ;;  %v8325_v23 = vld [vmem:[#allocation10 + $0x118] sm:$0xff]   ;;  %v8327_v27 = vld [vmem:[#allocation10 + $0x110] sm:$0xff]  }
 0x536   : > { %v5597_v54 = vrot.slane %v5596_v25, 1  ;;  %v5611_v5 = vrot.slane %v5610_v38, 1  ;;  %v5617_v63 = vmax.f32 %v5615_v50, %v5616_v15  ;;  %v8326_v12 = vld [vmem:[#allocation10 + $0x158] sm:$0xff]   ;;  %v8328_v62 = vld [vmem:[#allocation10 + $0x150] sm:$0xff]   ;;  %v8329_v50 = vld [vmem:[#allocation10 + $0x108] sm:$0xff]  }
 0x537   : > { %v5621_v32 = vmax.f32 %v5577_v11, %v5591_v1  ;;  %v5604_v31 = vrot.slane %v5603_v4, 1  ;;  %v8330_v14 = vld [vmem:[#allocation10 + $0x148] sm:$0xff]   ;;  %v8331_v43 = vld [vmem:[#allocation10 + $0x100] sm:$0xff]   ;;  %v8335_v15 = vld [vmem:[#allocation10 + $0x1b8] sm:$0xff]  }
 0x538   : > { %v5612_v42 = vmax.f32 %v5610_v38, %v5611_v5  ;;  %v5618_v44 = vrot.slane %v5617_v63, 1  ;;  %v5598_v51 = vmax.f32 %v5596_v25, %v5597_v54  ;;  %v8332_v38 = vld [vmem:[#allocation10 + $0x140] sm:$0xff]   ;;  %v8336_v1 = vld [vmem:[#allocation10 + $0x1f8] sm:$0xff]   ;;  %v8339_v5 = vld [vmem:[#allocation10 + $0x1a8] sm:$0xff]  }
 0x539   : > { %v5632_v45 = vsel %vm2512_vm4, %v5621_v32, %v5620_v37  ;;  %v5605_v17 = vmax.f32 %v5603_v4, %v5604_v31  ;;  %v9753_v11 = vld [vmem:[#allocation2] sm:$0xff]  ;;  %v8337_v4 = vld [vmem:[#allocation10 + $0x1b0] sm:$0xff]   ;;  %v8343_v31 = vld [vmem:[#allocation10 + $0x198] sm:$0xff]  }
 0x53a   : > { %5637 = vst [vmem:[#allocation4 + $0x5] sm:$0x3] %v5632_v45  ;;  %v5619_v52 = vmax.f32 %v5617_v63, %v5618_v44  ;;  %v5622_v53 = vmax.f32 %v5598_v51, %v5612_v42  ;;  %v8340_v63 = vld [vmem:[#allocation10 + $0x1e8] sm:$0xff]   ;;  %v8341_v37 = vld [vmem:[#allocation10 + $0x1a0] sm:$0xff]   ;;  %v8344_v42 = vld [vmem:[#allocation10 + $0x1d8] sm:$0xff]  }
 0x53b   : > { %v8342_v32 = vld [vmem:[#allocation10 + $0x1e0] sm:$0xff]   ;;  %v8345_v44 = vld [vmem:[#allocation10 + $0x190] sm:$0xff]   ;;  %v8347_v51 = vld [vmem:[#allocation10 + $0x188] sm:$0xff]  }
 0x53c   : > { %v5623_v41 = vmax.f32 %v5605_v17, %v5619_v52  ;;  %v8346_v45 = vld [vmem:[#allocation10 + $0x1d0] sm:$0xff]   ;;  %v8348_v17 = vld [vmem:[#allocation10 + $0x1c8] sm:$0xff]  }
 0x53e   : > { %v5633_v6 = vsel %vm2512_vm4, %v5623_v41, %v5622_v53  ;;  %v8349_v41 = vld [vmem:[#allocation10 + $0x180] sm:$0xff]  }
 0x53f   : > { %5638 = vst [vmem:[#allocation4 + $0x9] sm:$0x3] %v5633_v6  ;;  %v8350_v6 = vld [vmem:[#allocation10 + $0x1c0] sm:$0xff]  }
 0x541   : > { %v8370_v16 = vld.sshfl [vmem:[#allocation4 + $0x1] sm:$0xf pattern:$0x76325410] }
 0x542   : > { %v8371_v35 = vld.sshfl [vmem:[#allocation4] sm:$0xf pattern:$0x76325410]  ;;  %v5682_v30 = vpack.c.bf16 %v8370_v16, %v8370_v16  ;;  %v8353_v16 = vld [vmem:[#allocation10 + $0x238] sm:$0xff]  }
 0x543   : > { %v5652_v61 = vpack.c.bf16 %v8371_v35, %v8371_v35  ;;  %v8372_v9 = vld.sshfl [vmem:[#allocation4 + $0x2] sm:$0xf pattern:$0x76325410] }
 0x544   : > { %7863 = vmatmul.mubr.bf16.vlgmr.msra.gmra.mxu0 %v5682_v30  ;;  %v5889_v0 = vpack.c.bf16 %v8372_v9, %v8372_v9  ;;  %v8354_v30 = vld [vmem:[#allocation10 + $0x230] sm:$0xff]  }
 0x545   : > { %7883 = vmatmul.mubr.bf16.vlgmr.msra.gmra.mxu1 %v5652_v61  ;;  %7887 = vmatpush3.bf16.msra.mxu0 %v8299_v34  ;;  %v8356_v61 = vld [vmem:[#allocation10 + $0x220] sm:$0xff]  }
 0x546   : > { %7907 = vmatpush3.bf16.msra.mxu1 %v8300_v2  ;;  %7888 = vmatprep.subr.bf16.mxu0 %v9603_v46  ;;  %v8373_v21 = vld.sshfl [vmem:[#allocation4 + $0x4] sm:$0xf pattern:$0x76325410]  ;;  %v8355_v2 = vld [vmem:[#allocation10 + $0x228] sm:$0xff]  }
 0x547   : > { %7908 = vmatprep.subr.bf16.mxu1 %v9603_v46  ;;  %7902 = vmatprep.mubr.msk.bf16.mxu0 %vm8535_vm11, %v9603_v46  ;;  %v6009_v57 = vpack.c.bf16 %v8373_v21, %v8373_v21  ;;  %v8374_v36 = vld.sshfl [vmem:[#allocation4 + $0x5] sm:$0xf pattern:$0x76325410] }
 0x548   : > { %7922 = vmatprep.mubr.msk.bf16.mxu1 %vm8535_vm11, %v9603_v46  ;;  %v8375_v25 = vld.sshfl [vmem:[#allocation4 + $0x6] sm:$0xf pattern:$0x76325410]  ;;  %v6129_v55 = vpack.c.bf16 %v8374_v36, %v8374_v36 }
 0x549   : > { %7889 = vmatpush3.bf16.msra.mxu0 %v8301_v40  ;;  %v6249_v54 = vpack.c.bf16 %v8375_v25, %v8375_v25  ;;  %v8376_v52 = vld.sshfl [vmem:[#allocation4 + $0x8] sm:$0xf pattern:$0x76325410] }
 0x54a   : > { %7909 = vmatpush3.bf16.msra.mxu1 %v8302_v13  ;;  %7890 = vmatprep.subr.bf16.mxu0 %v9603_v46  ;;  %v8377_v53 = vld.sshfl [vmem:[#allocation4 + $0x9] sm:$0xf pattern:$0x76325410]  ;;  %v6370_v35 = vpack.c.bf16 %v8376_v52, %v8376_v52  ;;  %v8358_v13 = vld [vmem:[#allocation10 + $0x210] sm:$0xff]  }
 0x54b   : > { %7910 = vmatprep.subr.bf16.mxu1 %v9603_v46  ;;  %v6490_v34 = vpack.c.bf16 %v8377_v53, %v8377_v53  ;;  %v8357_v40 = vld [vmem:[#allocation10 + $0x218] sm:$0xff]  }
 0x54d   : > { %7891 = vmatpush3.bf16.msra.mxu0 %v8303_v39  ;;  %v8359_v39 = vld [vmem:[#allocation10 + $0x208] sm:$0xff]  }
 0x54e   : > { %7911 = vmatpush3.bf16.msra.mxu1 %v8304_v29  ;;  %7892 = vmatprep.subr.bf16.mxu0 %v9603_v46  ;;  %v8378_v29 = vld.sshfl [vmem:[#allocation4 + $0xa] sm:$0xf pattern:$0x76325410] }
 0x54f   : > { %7912 = vmatprep.subr.bf16.mxu1 %v9603_v46 }
 0x551   : > { %7893 = vmatpush3.bf16.msra.mxu0 %v8305_v19  ;;  %v8360_v19 = vld [vmem:[#allocation10 + $0x200] sm:$0xff]  }
 0x552   : > { %7913 = vmatpush3.bf16.msra.mxu1 %v8306_v22  ;;  %7894 = vmatprep.subr.bf16.mxu0 %v9603_v46  ;;  %v6610_v22 = vpack.c.bf16 %v8378_v29, %v8378_v29 }
 0x553   : > { %7914 = vmatprep.subr.bf16.mxu1 %v9603_v46 }
 0x555   : > { %7895 = vmatpush3.bf16.msra.mxu0 %v8307_v48 }
 0x556   : > { %7915 = vmatpush3.bf16.msra.mxu1 %v8308_v58  ;;  %7896 = vmatprep.subr.bf16.mxu0 %v9603_v46 }
 0x557   : > { %7916 = vmatprep.subr.bf16.mxu1 %v9603_v46 }
 0x559   : > { %7897 = vmatpush3.bf16.msra.mxu0 %v8309_v8 }
 0x55a   : > { %7917 = vmatpush3.bf16.msra.mxu1 %v8310_v59  ;;  %7898 = vmatprep.subr.bf16.mxu0 %v9603_v46 }
 0x55b   : > { %7918 = vmatprep.subr.bf16.mxu1 %v9603_v46 }
 0x55d   : > { %7899 = vmatpush3.bf16.msra.mxu0 %v8311_v47 }
 0x55e   : > { %7919 = vmatpush3.bf16.msra.mxu1 %v8312_v60  ;;  %7900 = vmatprep.subr.bf16.mxu0 %v9603_v46 }
 0x55f   : > { %7920 = vmatprep.subr.bf16.mxu1 %v9603_v46 }
 0x561   : > { %7901 = vmatpush3.bf16.msra.mxu0 %v8313_v10 }
 0x562   : > { %7921 = vmatpush3.bf16.msra.mxu1 %v8314_v28  ;;  %7926 = vmatprep.subr.bf16.mxu0 %v9603_v46 }
 0x563   : > { %7946 = vmatprep.subr.bf16.mxu1 %v9603_v46 }
 0x564   : > { %7903 = vmatmul.mubr.bf16.vlgmr.msra.gmra.mxu0 %v5889_v0 }
 0x565   : > { %7923 = vmatmul.mubr.bf16.vlgmr.msra.gmra.mxu1 %v6009_v57  ;;  %7927 = vmatpush3.bf16.msra.mxu0 %v8317_v26 }
 0x566   : > { %7947 = vmatpush3.bf16.msra.mxu1 %v8318_v7  ;;  %7928 = vmatprep.subr.bf16.mxu0 %v9603_v46 }
 0x567   : > { %7948 = vmatprep.subr.bf16.mxu1 %v9603_v46  ;;  %7942 = vmatprep.mubr.msk.bf16.mxu0 %vm8535_vm11, %v9603_v46 }
 0x568   : > { %7962 = vmatprep.mubr.msk.bf16.mxu1 %vm8535_vm11, %v9603_v46 }
 0x569   : > { %7929 = vmatpush3.bf16.msra.mxu0 %v8319_v18 }
 0x56a   : > { %7949 = vmatpush3.bf16.msra.mxu1 %v8320_v20  ;;  %7930 = vmatprep.subr.bf16.mxu0 %v9603_v46 }
 0x56b   : > { %7950 = vmatprep.subr.bf16.mxu1 %v9603_v46 }
 0x56d   : > { %7931 = vmatpush3.bf16.msra.mxu0 %v8321_v56 }
 0x56e   : > { %7951 = vmatpush3.bf16.msra.mxu1 %v8322_v3  ;;  %7932 = vmatprep.subr.bf16.mxu0 %v9603_v46 }
 0x56f   : > { %7952 = vmatprep.subr.bf16.mxu1 %v9603_v46 }
 0x571   : > { %7933 = vmatpush3.bf16.msra.mxu0 %v8323_v24 }
 0x572   : > { %7953 = vmatpush3.bf16.msra.mxu1 %v8324_v49  ;;  %7934 = vmatprep.subr.bf16.mxu0 %v9603_v46 }
 0x573   : > { %7954 = vmatprep.subr.bf16.mxu1 %v9603_v46 }
 0x575   : > { %7935 = vmatpush3.bf16.msra.mxu0 %v8325_v23 }
 0x576   : > { %7955 = vmatpush3.bf16.msra.mxu1 %v8326_v12  ;;  %7936 = vmatprep.subr.bf16.mxu0 %v9603_v46 }
 0x577   : > { %7956 = vmatprep.subr.bf16.mxu1 %v9603_v46 }
 0x579   : > { %7937 = vmatpush3.bf16.msra.mxu0 %v8327_v27 }
 0x57a   : > { %7957 = vmatpush3.bf16.msra.mxu1 %v8328_v62  ;;  %7938 = vmatprep.subr.bf16.mxu0 %v9603_v46 }
 0x57b   : > { %7958 = vmatprep.subr.bf16.mxu1 %v9603_v46 }
 0x57d   : > { %7939 = vmatpush3.bf16.msra.mxu0 %v8329_v50 }
 0x57e   : > { %7959 = vmatpush3.bf16.msra.mxu1 %v8330_v14  ;;  %7940 = vmatprep.subr.bf16.mxu0 %v9603_v46 }
 0x57f   : > { %7960 = vmatprep.subr.bf16.mxu1 %v9603_v46  ;;  %v8338_v46 = vld [vmem:[#allocation10 + $0x1f0] sm:$0xff]  }
 0x581   : > { %7941 = vmatpush3.bf16.msra.mxu0 %v8331_v43 }
 0x582   : > { %7961 = vmatpush3.bf16.msra.mxu1 %v8332_v38  ;;  %7966 = vmatprep.subr.bf16.mxu0 %v9753_v11 }
 0x583   : > { %7986 = vmatprep.subr.bf16.mxu1 %v9753_v11 }
 0x584   : > { %7943 = vmatmul.mubr.bf16.vlgmr.msra.gmra.mxu0 %v6129_v55 }
 0x585   : > { %7963 = vmatmul.mubr.bf16.vlgmr.msra.gmra.mxu1 %v6249_v54  ;;  %7967 = vmatpush3.bf16.msra.mxu0 %v8335_v15 }
 0x586   : > { %7987 = vmatpush3.bf16.msra.mxu1 %v8336_v1  ;;  %7968 = vmatprep.subr.bf16.mxu0 %v9753_v11 }
 0x587   : > { %7988 = vmatprep.subr.bf16.mxu1 %v9753_v11  ;;  %7982 = vmatprep.mubr.msk.bf16.mxu0 %vm8535_vm11, %v9753_v11 }
 0x588   : > { %8002 = vmatprep.mubr.msk.bf16.mxu1 %vm8535_vm11, %v9753_v11 }
 0x589   : > { %7969 = vmatpush3.bf16.msra.mxu0 %v8337_v4 }
 0x58a   : > { %7989 = vmatpush3.bf16.msra.mxu1 %v8338_v46  ;;  %7970 = vmatprep.subr.bf16.mxu0 %v9753_v11 }
 0x58b   : > { %7990 = vmatprep.subr.bf16.mxu1 %v9753_v11 }
 0x58d   : > { %7971 = vmatpush3.bf16.msra.mxu0 %v8339_v5 }
 0x58e   : > { %7991 = vmatpush3.bf16.msra.mxu1 %v8340_v63  ;;  %7972 = vmatprep.subr.bf16.mxu0 %v9753_v11 }
 0x58f   : > { %7992 = vmatprep.subr.bf16.mxu1 %v9753_v11 }
 0x591   : > { %7973 = vmatpush3.bf16.msra.mxu0 %v8341_v37 }
 0x592   : > { %7993 = vmatpush3.bf16.msra.mxu1 %v8342_v32  ;;  %7974 = vmatprep.subr.bf16.mxu0 %v9753_v11  ;;  %v7123_v32 = vld [vmem:[%s9833_s5 + $0x3] ss:$0 sm:$0xff] }
 0x593   : > { %7994 = vmatprep.subr.bf16.mxu1 %v9753_v11 }
 0x595   : > { %7975 = vmatpush3.bf16.msra.mxu0 %v8343_v31 }
 0x596   : > { %7995 = vmatpush3.bf16.msra.mxu1 %v8344_v42  ;;  %7976 = vmatprep.subr.bf16.mxu0 %v9753_v11  ;;  %v7124_v42 = vld [vmem:[%s9834_s6 + $0x3] ss:$0 sm:$0xff] }
 0x597   : > { %7996 = vmatprep.subr.bf16.mxu1 %v9753_v11 }
 0x599   : > { %7977 = vmatpush3.bf16.msra.mxu0 %v8345_v44 }
 0x59a   : > { %7997 = vmatpush3.bf16.msra.mxu1 %v8346_v45  ;;  %7978 = vmatprep.subr.bf16.mxu0 %v9753_v11 }
 0x59b   : > { %7998 = vmatprep.subr.bf16.mxu1 %v9753_v11 }
 0x59d   : > { %7979 = vmatpush3.bf16.msra.mxu0 %v8347_v51 }
 0x59e   : > { %7999 = vmatpush3.bf16.msra.mxu1 %v8348_v17  ;;  %7980 = vmatprep.subr.bf16.mxu0 %v9753_v11 }
 0x59f   : > { %8000 = vmatprep.subr.bf16.mxu1 %v9753_v11 }
 0x5a1   : > { %7981 = vmatpush3.bf16.msra.mxu0 %v8349_v41 }
 0x5a2   : > { %8001 = vmatpush3.bf16.msra.mxu1 %v8350_v6  ;;  %8006 = vmatprep.subr.bf16.mxu0 %v9753_v11 }
 0x5a4   : > { %7983 = vmatmul.mubr.bf16.vlgmr.msra.gmra.mxu0 %v6370_v35 }
 0x5a5   : > { %8003 = vmatmul.mubr.bf16.vlgmr.msra.gmra.mxu1 %v6490_v34  ;;  %8007 = vmatpush3.bf16.msra.mxu0 %v8353_v16 }
 0x5a6   : > { %8008 = vmatprep.subr.bf16.mxu0 %v9753_v11  ;;  %8022 = vmatprep.mubr.msk.bf16.mxu0 %vm8535_vm11, %v9753_v11 }
 0x5a9   : > { %8009 = vmatpush3.bf16.msra.mxu0 %v8354_v30 }
 0x5aa   : > { %8010 = vmatprep.subr.bf16.mxu0 %v9753_v11 }
 0x5ad   : > { %8011 = vmatpush3.bf16.msra.mxu0 %v8355_v2 }
 0x5ae   : > { %8012 = vmatprep.subr.bf16.mxu0 %v9753_v11 }
 0x5b1   : > { %8013 = vmatpush3.bf16.msra.mxu0 %v8356_v61 }
 0x5b2   : > { %8014 = vmatprep.subr.bf16.mxu0 %v9753_v11 }
 0x5b5   : > { %8015 = vmatpush3.bf16.msra.mxu0 %v8357_v40 }
 0x5b6   : > { %8016 = vmatprep.subr.bf16.mxu0 %v9753_v11 }
 0x5b9   : > { %8017 = vmatpush3.bf16.msra.mxu0 %v8358_v13 }
 0x5ba   : > { %8018 = vmatprep.subr.bf16.mxu0 %v9753_v11 }
 0x5bd   : > { %8019 = vmatpush3.bf16.msra.mxu0 %v8359_v39 }
 0x5be   : > { %8020 = vmatprep.subr.bf16.mxu0 %v9753_v11 }
 0x5c1   : > { %8021 = vmatpush3.bf16.msra.mxu0 %v8360_v19 }
 0x5c4   : > { %8023 = vmatmul.mubr.bf16.vlgmr.msra.gmra.mxu0 %v6610_v22 }
 0x604   : > { %v5782_v48 = vpop.f32.mrf.mxu0 }
 0x605   : > { %v5870_v58 = vpop.f32.mrf.mxu1 }
 0x606   : > { %v5871_v8 = vadd.f32 %v5870_v58, %v5782_v48  ;;  %v7864_v59 = vpop.f32.mrf.mxu0 }
 0x607   : > { %v7884_v47 = vpop.f32.mrf.mxu1 }
 0x608   : > { %v5785_v60 = vpop.f32.mrf.mxu0 }
 0x609   : > { %v5873_v9 = vpop.f32.mrf.mxu1 }
 0x60a   : > { %v7865_v21 = vpop.f32.mrf.mxu0 }
 0x60b   : > { %v7885_v10 = vpop.f32.mrf.mxu1 }
 0x624   : > { %v5989_v28 = vpop.f32.mrf.mxu0 }
 0x625   : > { %v5995_v26 = vadd.f32 %v5989_v28, %v5871_v8  ;;  %v6109_v0 = vpop.f32.mrf.mxu1 }
 0x626   : > { %v7904_v7 = vpop.f32.mrf.mxu0 }
 0x627   : > { %v6115_v57 = vadd.f32 %v6109_v0, %v5995_v26  ;;  %v7924_v18 = vpop.f32.mrf.mxu1 }
 0x628   : > { %v5992_v20 = vpop.f32.mrf.mxu0 }
 0x629   : > { %v6112_v56 = vpop.f32.mrf.mxu1 }
 0x62a   : > { %v7905_v3 = vpop.f32.mrf.mxu0 }
 0x62b   : > { %v7925_v24 = vpop.f32.mrf.mxu1 }
 0x644   : > { %v6229_v49 = vpop.f32.mrf.mxu0 }
 0x645   : > { %v6349_v23 = vpop.f32.mrf.mxu1  ;;  %v6235_v4 = vadd.f32 %v6229_v49, %v6115_v57 }
 0x646   : > { %v7944_v12 = vpop.f32.mrf.mxu0 }
 0x647   : > { %v7964_v27 = vpop.f32.mrf.mxu1  ;;  %v6355_v46 = vadd.f32 %v6349_v23, %v6235_v4 }
 0x648   : > { %v6232_v62 = vpop.f32.mrf.mxu0 }
 0x649   : > { %v6352_v50 = vpop.f32.mrf.mxu1 }
 0x64a   : > { %v7945_v14 = vpop.f32.mrf.mxu0 }
 0x64b   : > { %v7965_v36 = vpop.f32.mrf.mxu1 }
 0x664   : > { %v6470_v25 = vpop.f32.mrf.mxu0 }
 0x665   : > { %v6590_v43 = vpop.f32.mrf.mxu1  ;;  %v6476_v5 = vadd.f32 %v6470_v25, %v6355_v46 }
 0x666   : > { %v7984_v38 = vpop.f32.mrf.mxu0 }
 0x667   : > { %v8004_v15 = vpop.f32.mrf.mxu1  ;;  %v6596_v63 = vadd.f32 %v6590_v43, %v6476_v5 }
 0x668   : > { %v6473_v55 = vpop.f32.mrf.mxu0 }
 0x669   : > { %v6593_v11 = vpop.f32.mrf.mxu1 }
 0x66a   : > { %v7985_v1 = vpop.f32.mrf.mxu0 }
 0x66b   : > { %v8005_v54 = vpop.f32.mrf.mxu1 }
 0x684   : > { %v6710_v37 = vpop.f32.mrf.mxu0 }
 0x685   : > { %v6716_v31 = vadd.f32 %v6710_v37, %v6596_v63 }
 0x686   : > { %v8024_v44 = vpop.f32.mrf.mxu0 }
 0x687   : > { %v6722_v45 = vmul.f32 %v7123_v32, %v6716_v31 }
 0x688   : > { %v6713_v51 = vpop.f32.mrf.mxu0 }
 0x689   : > { %v6728_v17 = vadd.f32 %v7124_v42, %v6722_v45 }
 0x68a   : > { %v8025_v52 = vpop.f32.mrf.mxu0 }
 0x68b   : > { %v6729_v53 = vmax.f32 %v6728_v17, 0.0 }
 0x68d   : > { %v6737_v41 = vrot.slane %v6729_v53, %v8728_v33 }
 0x68f   : > { %v6738_v6 = vcombine.high %v6737_v41, %v6737_v41  ;;  %v6741_v16 = vsel %vm1467_vm3, %v6737_v41, -inf }
 0x690   : > { %v6742_v35 = vrot.slane %v6741_v16, 4 }
 0x691   : > { %v6748_v34 = vsel %vm1467_vm3, %v6738_v6, -inf }
 0x692   : > { %v6743_v30 = vmax.f32 %v6741_v16, %v6742_v35  ;;  %v6749_v2 = vrot.slane %v6748_v34, 4 }
 0x694   : > { %v6744_v61 = vrot.slane %v6743_v30, 2  ;;  %v6750_v40 = vmax.f32 %v6748_v34, %v6749_v2 }
 0x696   : > { %v6745_v13 = vmax.f32 %v6743_v30, %v6744_v61  ;;  %v6751_v39 = vrot.slane %v6750_v40, 2 }
 0x698   : > { %v6746_v29 = vrot.slane %v6745_v13, 1  ;;  %v6752_v19 = vmax.f32 %v6750_v40, %v6751_v39 }
 0x69a   : > { %v6753_v22 = vrot.slane %v6752_v19, 1  ;;  %v6747_v33 = vmax.f32 %v6745_v13, %v6746_v29 }
 0x69c   : > { %v6754_v48 = vmax.f32 %v6752_v19, %v6753_v22 }
 0x69e   : > { %v6755_v58 = vmax.f32 %v6747_v33, %v6754_v48 }
 0x6a0   : > { %6756 = vst [vmem:[%s314_s23] sm:$0x1] %v6755_v58 }
 0x6a1   : > { %8470 = shalt.err (!%p8467_p0)
}
 0x6a2   : > { %s8471_s16 = scalar_lea.hbm %s6768_s14, 16  ;;  %s8475_s20 = scalar_lea.hbm %s9835_s7, 32 }
 0x6a3   : > { %p8472_p6 = scmp.ne.s32.totalorder %s6768_s14, %s8471_s16  ;;  %p8476_p1 = scmp.lt.s32.totalorder %s6768_s14, %s9835_s7 }
 0x6a4   : > { %p8477_p5 = scmp.lt.s32.totalorder %s8475_s20, %s8471_s16 }
 0x6a5   : > { %p8473_p9 = pnand %p8472_p6, %p9846_p12 }
 0x6a6   : > { %p8478_p3 = por %p8477_p5, %p8476_p1 }
 0x6a7   : > { %p8474_p13 = pneg %p8473_p9 }
 0x6a9   : > { %p8479_p10 = pnand %p8478_p3, %p8474_p13 }
 0x6ab   : > { %8482 = shalt.err (!%p8479_p10)
}
 0x6ac   : > { %8038 = dma.vmem_to_hbm [thread:$0]  (%p9846_p12), %s6771_s29, 16, %s6768_s14, %s6758_s17  }
 0x6ad PF: > { %p8060_p2 = scmp.ge.s32.totalorder %s8525_s27, 2  ;;  %s6782_s8 = sand.u32 1, %s8513_s24  }
 0x6ae   : > { %p9847_p4 = scmp.ne.s32.totalorder %s9839_s12, 0  ;;  %s6783_s9 = scalar_lea.sflag [#allocation7], %s6782_s8 }
 0x6b0   : > { %p8051_p7 = pnand %p8060_p2, %p9847_p4 }
 0x6b2   : > { %p8052_p8 = pneg %p8051_p7 }
 0x6b4   : > { %8508 = dma.done.wait (%p8052_p8), %s6783_s9, 16  }
 0x6b5   : > { %8510 = vsyncadd (%p8052_p8), %s6783_s9, 4294967280  ;;  %p19_p11 = scmp.ge.s32.totalorder %s8602_s30, 4   ;;  %s9848_s24 = smov %s8517_s25 }
 0x6b6   : > { %s9849_s25 = smov %s8521_s26  ;;  %s9850_s26 = smov %s8613_s10 }
 0x6b7   : > { %s9851_s27 = smov %s8602_s30  ;;  %21 = sbr.rel (!%p19_p11) target bundleno = 5 (0x5), region = 126 }
 0x6bc   :  { %6787 = vsyncpa [#allocation6], 1 }
 0x6bd   :  { %6789 = vsyncpa [#allocation6 + $0x1], 1 }
 0x6be   :  { %6790 = vsyncpa [#allocation9], 1 }
 0x6bf   :  { %6791 = vsyncpa [#allocation7], 1 }
 0x6c0   :  { %6793 = vsyncpa [#allocation7 + $0x1], 1 }

</bundles_post_ra>
